<compile_context>
chip_gen: v7x
topology: tpu7x:2x2x1
jax: 0.10.0
libtpu: 0.0.40
codegen_flags: <defaults>
</compile_context>

<pallas_src>
import jax
import jax.numpy as jnp
from jax import lax
from jax.experimental import pallas as pl
from jax.experimental.pallas import tpu as pltpu

LANES = 128  # every channel dim is zero-padded to 128 lanes inside the kernel


# ------------------------------ fused kernel --------------------------------

def _make_pnet_kernel(H, W):
    H1, W1 = H - 2, W - 2                 # conv1 output (valid conv)
    HP, WP = -(-H1 // 2), -(-W1 // 2)     # ceil-mode 2x2/stride-2 pool output
    H2, W2 = HP - 2, WP - 2               # conv2 output
    H3, W3 = H2 - 2, W2 - 2               # conv3 output == head output

    def kernel(x_ref, w1_ref, bp1_ref, w2_ref, bp2_ref, w3_ref, bp3_ref,
               wh_ref, bh_ref, out_ref, buf_a, buf_b):
        # ---- stage 0: input -> lane-padded (H, W, 128) VMEM activation ----
        buf_a[...] = jnp.zeros((H, W, LANES), jnp.float32)
        buf_a[:, :, 0:3] = x_ref[...]

        # ---- fused 3x3 valid conv + bias + PReLU (in-kernel im2col) --------
        def conv3x3_prelu(src, dst, w_ref, bp_ref, h_in, w_in):
            wo = w_in - 2
            bias = bp_ref[0:1, :]      # (1, 128) f32
            alpha = bp_ref[1:2, :]     # (1, 128) f32

            def row(oy, carry):
                acc = jnp.zeros((wo, LANES), jnp.float32)
                for dy in range(3):
                    for dx in range(3):
                        lhs = src[oy + dy, dx:dx + wo, :].astype(jnp.bfloat16)
                        acc = acc + jnp.dot(lhs, w_ref[dy * 3 + dx],
                                            preferred_element_type=jnp.float32)
                acc = acc + bias
                dst[oy, 0:wo, :] = jnp.where(acc >= 0.0, acc, acc * alpha)
                return carry

            lax.fori_loop(0, h_in - 2, row, 0)

        # conv1 + prelu1: buf_a[:H,:W] -> buf_b[:H1,:W1]
        conv3x3_prelu(buf_a, buf_b, w1_ref, bp1_ref, H, W)

        # pool1: MaxPool2d(2, 2, ceil_mode=True): buf_b[:H1,:W1] -> buf_a[:HP,:WP]
        if W1 % 2 == 1:
            # Duplicate the last valid column so the odd right-edge window
            # (torch ceil_mode reduces over the single valid column) stays exact.
            buf_b[0:H1, W1:W1 + 1, :] = buf_b[0:H1, W1 - 1:W1, :]

        def pool_row(py, carry):
            r0 = 2 * py
            r1 = jnp.minimum(2 * py + 1, H1 - 1)   # bottom-edge ceil_mode window
            a = buf_b[r0, pl.ds(0, WP, stride=2), :]
            b = buf_b[r0, pl.ds(1, WP, stride=2), :]
            c = buf_b[r1, pl.ds(0, WP, stride=2), :]
            d = buf_b[r1, pl.ds(1, WP, stride=2), :]
            buf_a[py, 0:WP, :] = jnp.maximum(jnp.maximum(a, b), jnp.maximum(c, d))
            return carry

        lax.fori_loop(0, HP, pool_row, 0)

        # conv2 + prelu2: buf_a[:HP,:WP] -> buf_b[:H2,:W2]
        conv3x3_prelu(buf_a, buf_b, w2_ref, bp2_ref, HP, WP)
        # conv3 + prelu3: buf_b[:H2,:W2] -> buf_a[:H3,:W3]
        conv3x3_prelu(buf_b, buf_a, w3_ref, bp3_ref, H2, W2)

        # ---- heads: both 1x1 convs in one 128-lane matmul + 2-class softmax ---
        wh = wh_ref[...]          # (128, 128) bf16; cols 0:2 conv4_1, 2:6 conv4_2
        bh = bh_ref[...]          # (1, 128)  f32

        def head_row(oy, carry):
            x = buf_a[oy, 0:W3, :].astype(jnp.bfloat16)              # (W3, 128)
            slab = jnp.dot(x, wh, preferred_element_type=jnp.float32) + bh
            l0 = slab[:, 0:1]
            l1 = slab[:, 1:2]
            # closed-form 2-class softmax: p1 = sigmoid(l1 - l0)
            p1 = pl.reciprocal(1.0 + jnp.exp(l0 - l1), approx=True)
            out_ref[oy, :, :] = slab          # lanes 2:6 already hold the offsets
            out_ref[oy, :, 0:1] = 1.0 - p1
            out_ref[oy, :, 1:2] = p1
            return carry

        lax.fori_loop(0, H3, head_row, 0)

    return kernel, (H3, W3)


# ------------------------------ wrapper --------------------------------------

def pnet_forward(x_nchw, kp):
    """x_nchw: (N, 3, H, W) f32. Returns (offsets, probs) in NCHW like PyTorch."""
    N, C, H, W = x_nchw.shape
    assert C == 3
    kernel, (H3, W3) = _make_pnet_kernel(H, W)
    assert H3 >= 1 and W3 >= 1, "input too small for PNet"

    x = jnp.transpose(x_nchw, (0, 2, 3, 1))   # NHWC; the only layout glue outside

    out = pl.pallas_call(
        kernel,
        out_shape=jax.ShapeDtypeStruct((N, H3, W3, LANES), jnp.float32),
        grid=(N,),
        in_specs=[
            pl.BlockSpec((None, H, W, 3), lambda n: (n, 0, 0, 0)),
            pl.BlockSpec((9, LANES, LANES), lambda n: (0, 0, 0)),
            pl.BlockSpec((2, LANES), lambda n: (0, 0)),
            pl.BlockSpec((9, LANES, LANES), lambda n: (0, 0, 0)),
            pl.BlockSpec((2, LANES), lambda n: (0, 0)),
            pl.BlockSpec((9, LANES, LANES), lambda n: (0, 0, 0)),
            pl.BlockSpec((2, LANES), lambda n: (0, 0)),
            pl.BlockSpec((LANES, LANES), lambda n: (0, 0)),
            pl.BlockSpec((1, LANES), lambda n: (0, 0)),
        ],
        out_specs=pl.BlockSpec((None, H3, W3, LANES), lambda n: (n, 0, 0, 0)),
        scratch_shapes=[
            pltpu.VMEM((H, W, LANES), jnp.float32),   # ping
            pltpu.VMEM((H, W, LANES), jnp.float32),   # pong
        ],
        compiler_params=pltpu.CompilerParams(
            dimension_semantics=("parallel",),        # images shard across TCs
            vmem_limit_bytes=32 * 1024 * 1024,
        ),
    )(x, kp['w1'], kp['bp1'], kp['w2'], kp['bp2'], kp['w3'], kp['bp3'],
      kp['wh'], kp['bh'])

    probs = jnp.transpose(out[:, :, :, 0:2], (0, 3, 1, 2))     # (N, 2, H3, W3)
    offsets = jnp.transpose(out[:, :, :, 2:6], (0, 3, 1, 2))   # (N, 4, H3, W3)
    return offsets, probs


# ------------------------------ parameters -----------------------------------

def init_params(key):
    """Deterministic in-script init (replaces load_pretrained)."""
    ks = [10, 16, 32]
    keys = jax.random.split(key, 10)

    def conv_w(k, cin, cout):
        scale = 1.0 / jnp.sqrt(float(cin * 9))
        return scale * jax.random.normal(k, (3, 3, cin, cout), jnp.float32)

    return {
        'w1': conv_w(keys[0], 3, ks[0]),
        'b1': 0.1 * jax.random.normal(keys[1], (ks[0],), jnp.float32),
        'a1': jnp.full((ks[0],), 0.25, jnp.float32),     # PReLU default init
        'w2': conv_w(keys[2], ks[0], ks[1]),
        'b2': 0.1 * jax.random.normal(keys[3], (ks[1],), jnp.float32),
        'a2': jnp.full((ks[1],), 0.25, jnp.float32),
        'w3': conv_w(keys[4], ks[1], ks[2]),
        'b3': 0.1 * jax.random.normal(keys[5], (ks[2],), jnp.float32),
        'a3': jnp.full((ks[2],), 0.25, jnp.float32),
        'w4_1': jax.random.normal(keys[6], (ks[2], 2), jnp.float32) / jnp.sqrt(float(ks[2])),
        'b4_1': 0.1 * jax.random.normal(keys[7], (2,), jnp.float32),
        'w4_2': jax.random.normal(keys[8], (ks[2], 4), jnp.float32) / jnp.sqrt(float(ks[2])),
        'b4_2': 0.1 * jax.random.normal(keys[9], (4,), jnp.float32),
    }


def pack_params(p):
    """Zero-pad / pack weights into the lane-dense bf16 layout the kernel uses."""
    def pack_conv(w, b, a):
        _, _, cin, cout = w.shape
        wt = jnp.zeros((9, LANES, LANES), jnp.float32)
        wt = wt.at[:, :cin, :cout].set(w.reshape(9, cin, cout))
        bp = jnp.zeros((2, LANES), jnp.float32)
        bp = bp.at[0, :cout].set(b).at[1, :cout].set(a)
        return wt.astype(jnp.bfloat16), bp

    w1, bp1 = pack_conv(p['w1'], p['b1'], p['a1'])
    w2, bp2 = pack_conv(p['w2'], p['b2'], p['a2'])
    w3, bp3 = pack_conv(p['w3'], p['b3'], p['a3'])
    wh = jnp.zeros((LANES, LANES), jnp.float32)
    wh = wh.at[:32, 0:2].set(p['w4_1']).at[:32, 2:6].set(p['w4_2'])
    bh = jnp.zeros((1, LANES), jnp.float32)
    bh = bh.at[0, 0:2].set(p['b4_1']).at[0, 2:6].set(p['b4_2'])
    return {'w1': w1, 'bp1': bp1, 'w2': w2, 'bp2': bp2, 'w3': w3, 'bp3': bp3,
            'wh': wh.astype(jnp.bfloat16), 'bh': bh}


# ------------------------------ reference ------------------------------------

def pnet_reference(x_nchw, p):
    """Pure-JAX reference using the same bf16-matmul / f32-accumulate precision."""
    def conv_prelu(x, w, b, a):
        N, H, W, _ = x.shape
        cout = w.shape[-1]
        Ho, Wo = H - 2, W - 2
        y = jnp.zeros((N, Ho, Wo, cout), jnp.float32)
        for dy in range(3):
            for dx in range(3):
                xs = x[:, dy:dy + Ho, dx:dx + Wo, :].astype(jnp.bfloat16)
                wt = w[dy, dx].astype(jnp.bfloat16)
                y = y + jnp.einsum('nhwc,cf->nhwf', xs, wt,
                                   preferred_element_type=jnp.float32)
        y = y + b
        return jnp.where(y >= 0.0, y, y * a)

    def pool_ceil(y):
        N, H, W, C = y.shape
        Hp, Wp = -(-H // 2), -(-W // 2)
        yp = jnp.pad(y, ((0, 0), (0, 2 * Hp - H), (0, 2 * Wp - W), (0, 0)),
                     constant_values=-jnp.inf)
        cands = jnp.stack([yp[:, dy::2, dx::2, :] for dy in (0, 1) for dx in (0, 1)], 0)
        return jnp.max(cands, axis=0)

    x = jnp.transpose(x_nchw, (0, 2, 3, 1))
    y = conv_prelu(x, p['w1'], p['b1'], p['a1'])
    y = pool_ceil(y)
    y = conv_prelu(y, p['w2'], p['b2'], p['a2'])
    y = conv_prelu(y, p['w3'], p['b3'], p['a3'])
    N, H3, W3, _ = y.shape
    ym = y.reshape(N * H3 * W3, 32).astype(jnp.bfloat16)
    logits = jnp.dot(ym, p['w4_1'].astype(jnp.bfloat16),
                     preferred_element_type=jnp.float32) + p['b4_1']
    probs = jax.nn.softmax(logits, axis=-1)
    offs = jnp.dot(ym, p['w4_2'].astype(jnp.bfloat16),
                   preferred_element_type=jnp.float32) + p['b4_2']
    probs = jnp.transpose(probs.reshape(N, H3, W3, 2), (0, 3, 1, 2))
    offs = jnp.transpose(offs.reshape(N, H3, W3, 4), (0, 3, 1, 2))
    return offs, probs


# ------------------------------ self-test ------------------------------------

def _check(offsets, probs, x, params, n, h3, w3, atol=2e-2):
    assert offsets.shape == (n, 4, h3, w3), offsets.shape
    assert probs.shape == (n, 2, h3, w3), probs.shape
    assert float(jnp.max(jnp.abs(jnp.sum(probs, axis=1) - 1.0))) < 1e-5
    ref_off, ref_probs = pnet_reference(x, params)
    assert float(jnp.max(jnp.abs(offsets - ref_off))) < atol
    assert float(jnp.max(jnp.abs(probs - ref_probs))) < atol


if __name__ == "__main__":
    key = jax.random.PRNGKey(0)
    pkey, xkey, xkey2 = jax.random.split(key, 3)
    params = init_params(pkey)
    kparams = pack_params(params)

    fwd = jax.jit(pnet_forward)

    # even spatial dims
    x = jax.random.normal(xkey, (2, 3, 16, 16), jnp.float32)   # NCHW, like PyTorch
    offsets, probs = fwd(x, kparams)
    jax.block_until_ready((offsets, probs))
    _check(offsets, probs, x, params, 2, 3, 3)

    # odd spatial dims: exercises the ceil-mode pooling edge windows
    x2 = jax.random.normal(xkey2, (2, 3, 15, 15), jnp.float32)
    offsets2, probs2 = fwd(x2, kparams)
    jax.block_until_ready((offsets2, probs2))
    _check(offsets2, probs2, x2, params, 2, 3, 3)

    print("KERNEL_OK")
</pallas_src>

<mosaic_0001>
module attributes {stable_mosaic.version = 11 : i64} {
  func.func @kernel(%arg0: i32, %arg1: memref<1x16x16x3xf32, #tpu.memory_space<vmem>>, %arg2: memref<9x128x128xbf16, #tpu.memory_space<vmem>>, %arg3: memref<2x128xf32, #tpu.memory_space<vmem>>, %arg4: memref<9x128x128xbf16, #tpu.memory_space<vmem>>, %arg5: memref<2x128xf32, #tpu.memory_space<vmem>>, %arg6: memref<9x128x128xbf16, #tpu.memory_space<vmem>>, %arg7: memref<2x128xf32, #tpu.memory_space<vmem>>, %arg8: memref<128x128xbf16, #tpu.memory_space<vmem>>, %arg9: memref<1x128xf32, #tpu.memory_space<vmem>>, %arg10: memref<1x3x3x128xf32, #tpu.memory_space<vmem>>, %arg11: memref<16x16x128xf32, #tpu.memory_space<vmem>>, %arg12: memref<16x16x128xf32, #tpu.memory_space<vmem>>) attributes {dimension_semantics = [#tpu.dimension_semantics<parallel>], iteration_bounds = array<i64: 2>, scalar_prefetch = 0 : i64, scratch_operands = 2 : i64, tpu.core_type = #tpu.core_type<tc>, window_params = [{transform_indices = @transform_0, window_bounds = array<i64: 1, 16, 16, 3>}, {pipeline_mode = #tpu.pipeline_mode<synchronous>, transform_indices = @transform_1, window_bounds = array<i64: 9, 128, 128>}, {pipeline_mode = #tpu.pipeline_mode<synchronous>, transform_indices = @transform_2, window_bounds = array<i64: 2, 128>}, {pipeline_mode = #tpu.pipeline_mode<synchronous>, transform_indices = @transform_3, window_bounds = array<i64: 9, 128, 128>}, {pipeline_mode = #tpu.pipeline_mode<synchronous>, transform_indices = @transform_4, window_bounds = array<i64: 2, 128>}, {pipeline_mode = #tpu.pipeline_mode<synchronous>, transform_indices = @transform_5, window_bounds = array<i64: 9, 128, 128>}, {pipeline_mode = #tpu.pipeline_mode<synchronous>, transform_indices = @transform_6, window_bounds = array<i64: 2, 128>}, {pipeline_mode = #tpu.pipeline_mode<synchronous>, transform_indices = @transform_7, window_bounds = array<i64: 128, 128>}, {pipeline_mode = #tpu.pipeline_mode<synchronous>, transform_indices = @transform_8, window_bounds = array<i64: 1, 128>}, {transform_indices = @transform_9, window_bounds = array<i64: 1, 3, 3, 128>}]} {
    %cst = arith.constant 0.000000e+00 : f32
    %0 = vector.broadcast %cst : f32 to vector<16x16x128xf32>
    %c0 = arith.constant 0 : index
    %c0_0 = arith.constant 0 : index
    %c0_1 = arith.constant 0 : index
    %1 = vector.load %arg11[%c0, %c0_0, %c0_1] : memref<16x16x128xf32, #tpu.memory_space<vmem>>, vector<16x16x128xf32>
    tpu.vector_store %arg11[%c0, %c0_0, %c0_1], %0 {strides = array<i32>} : memref<16x16x128xf32, #tpu.memory_space<vmem>>, vector<16x16x128xf32>,
    %c0_2 = arith.constant 0 : index
    %c0_3 = arith.constant 0 : index
    %c0_4 = arith.constant 0 : index
    %c0_5 = arith.constant 0 : index
    %2 = vector.load %arg1[%c0_2, %c0_3, %c0_4, %c0_5] : memref<1x16x16x3xf32, #tpu.memory_space<vmem>>, vector<1x16x16x3xf32>
    %3 = vector.shape_cast %2 : vector<1x16x16x3xf32> to vector<16x16x3xf32>
    %c0_6 = arith.constant 0 : index
    %c0_7 = arith.constant 0 : index
    %c0_8 = arith.constant 0 : index
    %4 = vector.load %arg11[%c0_6, %c0_7, %c0_8] : memref<16x16x128xf32, #tpu.memory_space<vmem>>, vector<16x16x3xf32>
    tpu.vector_store %arg11[%c0_6, %c0_7, %c0_8], %3 {strides = array<i32>} : memref<16x16x128xf32, #tpu.memory_space<vmem>>, vector<16x16x3xf32>,
    %c0_9 = arith.constant 0 : index
    %c0_10 = arith.constant 0 : index
    %5 = vector.load %arg3[%c0_9, %c0_10] : memref<2x128xf32, #tpu.memory_space<vmem>>, vector<1x128xf32>
    %c1 = arith.constant 1 : index
    %c0_11 = arith.constant 0 : index
    %6 = vector.load %arg3[%c1, %c0_11] : memref<2x128xf32, #tpu.memory_space<vmem>>, vector<1x128xf32>
    %c0_i32 = arith.constant 0 : i32
    %c14_i32 = arith.constant 14 : i32
    %7 = arith.addi %c0_i32, %c14_i32 : i32
    %c1_i32 = arith.constant 1 : i32
    scf.for %arg13 = %c0_i32 to %7 step %c1_i32  : i32 {
      %cst_38 = arith.constant 0.000000e+00 : f32
      %18 = vector.broadcast %cst_38 : f32 to vector<14x128xf32>
      %c0_i32_39 = arith.constant 0 : i32
      %19 = arith.addi %arg13, %c0_i32_39 : i32
      %20 = arith.index_cast %19 : i32 to index
      %c0_40 = arith.constant 0 : index
      %c0_41 = arith.constant 0 : index
      %21 = vector.load %arg11[%20, %c0_40, %c0_41] : memref<16x16x128xf32, #tpu.memory_space<vmem>>, vector<1x14x128xf32>
      %22 = vector.shape_cast %21 : vector<1x14x128xf32> to vector<14x128xf32>
      %23 = arith.truncf %22 : vector<14x128xf32> to vector<14x128xbf16>
      %c0_42 = arith.constant 0 : index
      %c0_43 = arith.constant 0 : index
      %c0_44 = arith.constant 0 : index
      %24 = vector.load %arg2[%c0_42, %c0_43, %c0_44] : memref<9x128x128xbf16, #tpu.memory_space<vmem>>, vector<1x128x128xbf16>
      %25 = vector.shape_cast %24 : vector<1x128x128xbf16> to vector<128x128xbf16>
      %cst_45 = arith.constant dense<0.000000e+00> : vector<14x128xf32>
      %26 = tpu.matmul %23, %25, %cst_45 {dimension_numbers = #tpu.dot_dimension_numbers<[1], [0], [0], [1], [0, 0, 1, 1], [], []>} : vector<14x128xbf16>, vector<128x128xbf16>, vector<14x128xf32> -> vector<14x128xf32>
      %27 = arith.addf %18, %26 : vector<14x128xf32>
      %c0_i32_46 = arith.constant 0 : i32
      %28 = arith.addi %arg13, %c0_i32_46 : i32
      %29 = arith.index_cast %28 : i32 to index
      %c1_47 = arith.constant 1 : index
      %c0_48 = arith.constant 0 : index
      %30 = vector.load %arg11[%29, %c1_47, %c0_48] : memref<16x16x128xf32, #tpu.memory_space<vmem>>, vector<1x14x128xf32>
      %31 = vector.shape_cast %30 : vector<1x14x128xf32> to vector<14x128xf32>
      %32 = arith.truncf %31 : vector<14x128xf32> to vector<14x128xbf16>
      %c1_49 = arith.constant 1 : index
      %c0_50 = arith.constant 0 : index
      %c0_51 = arith.constant 0 : index
      %33 = vector.load %arg2[%c1_49, %c0_50, %c0_51] : memref<9x128x128xbf16, #tpu.memory_space<vmem>>, vector<1x128x128xbf16>
      %34 = vector.shape_cast %33 : vector<1x128x128xbf16> to vector<128x128xbf16>
      %cst_52 = arith.constant dense<0.000000e+00> : vector<14x128xf32>
      %35 = tpu.matmul %32, %34, %cst_52 {dimension_numbers = #tpu.dot_dimension_numbers<[1], [0], [0], [1], [0, 0, 1, 1], [], []>} : vector<14x128xbf16>, vector<128x128xbf16>, vector<14x128xf32> -> vector<14x128xf32>
      %36 = arith.addf %27, %35 : vector<14x128xf32>
      %c0_i32_53 = arith.constant 0 : i32
      %37 = arith.addi %arg13, %c0_i32_53 : i32
      %38 = arith.index_cast %37 : i32 to index
      %c2 = arith.constant 2 : index
      %c0_54 = arith.constant 0 : index
      %39 = vector.load %arg11[%38, %c2, %c0_54] : memref<16x16x128xf32, #tpu.memory_space<vmem>>, vector<1x14x128xf32>
      %40 = vector.shape_cast %39 : vector<1x14x128xf32> to vector<14x128xf32>
      %41 = arith.truncf %40 : vector<14x128xf32> to vector<14x128xbf16>
      %c2_55 = arith.constant 2 : index
      %c0_56 = arith.constant 0 : index
      %c0_57 = arith.constant 0 : index
      %42 = vector.load %arg2[%c2_55, %c0_56, %c0_57] : memref<9x128x128xbf16, #tpu.memory_space<vmem>>, vector<1x128x128xbf16>
      %43 = vector.shape_cast %42 : vector<1x128x128xbf16> to vector<128x128xbf16>
      %cst_58 = arith.constant dense<0.000000e+00> : vector<14x128xf32>
      %44 = tpu.matmul %41, %43, %cst_58 {dimension_numbers = #tpu.dot_dimension_numbers<[1], [0], [0], [1], [0, 0, 1, 1], [], []>} : vector<14x128xbf16>, vector<128x128xbf16>, vector<14x128xf32> -> vector<14x128xf32>
      %45 = arith.addf %36, %44 : vector<14x128xf32>
      %c1_i32_59 = arith.constant 1 : i32
      %46 = arith.addi %arg13, %c1_i32_59 : i32
      %47 = arith.index_cast %46 : i32 to index
      %c0_60 = arith.constant 0 : index
      %c0_61 = arith.constant 0 : index
      %48 = vector.load %arg11[%47, %c0_60, %c0_61] : memref<16x16x128xf32, #tpu.memory_space<vmem>>, vector<1x14x128xf32>
      %49 = vector.shape_cast %48 : vector<1x14x128xf32> to vector<14x128xf32>
      %50 = arith.truncf %49 : vector<14x128xf32> to vector<14x128xbf16>
      %c3 = arith.constant 3 : index
      %c0_62 = arith.constant 0 : index
      %c0_63 = arith.constant 0 : index
      %51 = vector.load %arg2[%c3, %c0_62, %c0_63] : memref<9x128x128xbf16, #tpu.memory_space<vmem>>, vector<1x128x128xbf16>
      %52 = vector.shape_cast %51 : vector<1x128x128xbf16> to vector<128x128xbf16>
      %cst_64 = arith.constant dense<0.000000e+00> : vector<14x128xf32>
      %53 = tpu.matmul %50, %52, %cst_64 {dimension_numbers = #tpu.dot_dimension_numbers<[1], [0], [0], [1], [0, 0, 1, 1], [], []>} : vector<14x128xbf16>, vector<128x128xbf16>, vector<14x128xf32> -> vector<14x128xf32>
      %54 = arith.addf %45, %53 : vector<14x128xf32>
      %c1_i32_65 = arith.constant 1 : i32
      %55 = arith.addi %arg13, %c1_i32_65 : i32
      %56 = arith.index_cast %55 : i32 to index
      %c1_66 = arith.constant 1 : index
      %c0_67 = arith.constant 0 : index
      %57 = vector.load %arg11[%56, %c1_66, %c0_67] : memref<16x16x128xf32, #tpu.memory_space<vmem>>, vector<1x14x128xf32>
      %58 = vector.shape_cast %57 : vector<1x14x128xf32> to vector<14x128xf32>
      %59 = arith.truncf %58 : vector<14x128xf32> to vector<14x128xbf16>
      %c4 = arith.constant 4 : index
      %c0_68 = arith.constant 0 : index
      %c0_69 = arith.constant 0 : index
      %60 = vector.load %arg2[%c4, %c0_68, %c0_69] : memref<9x128x128xbf16, #tpu.memory_space<vmem>>, vector<1x128x128xbf16>
      %61 = vector.shape_cast %60 : vector<1x128x128xbf16> to vector<128x128xbf16>
      %cst_70 = arith.constant dense<0.000000e+00> : vector<14x128xf32>
      %62 = tpu.matmul %59, %61, %cst_70 {dimension_numbers = #tpu.dot_dimension_numbers<[1], [0], [0], [1], [0, 0, 1, 1], [], []>} : vector<14x128xbf16>, vector<128x128xbf16>, vector<14x128xf32> -> vector<14x128xf32>
      %63 = arith.addf %54, %62 : vector<14x128xf32>
      %c1_i32_71 = arith.constant 1 : i32
      %64 = arith.addi %arg13, %c1_i32_71 : i32
      %65 = arith.index_cast %64 : i32 to index
      %c2_72 = arith.constant 2 : index
      %c0_73 = arith.constant 0 : index
      %66 = vector.load %arg11[%65, %c2_72, %c0_73] : memref<16x16x128xf32, #tpu.memory_space<vmem>>, vector<1x14x128xf32>
      %67 = vector.shape_cast %66 : vector<1x14x128xf32> to vector<14x128xf32>
      %68 = arith.truncf %67 : vector<14x128xf32> to vector<14x128xbf16>
      %c5 = arith.constant 5 : index
      %c0_74 = arith.constant 0 : index
      %c0_75 = arith.constant 0 : index
      %69 = vector.load %arg2[%c5, %c0_74, %c0_75] : memref<9x128x128xbf16, #tpu.memory_space<vmem>>, vector<1x128x128xbf16>
      %70 = vector.shape_cast %69 : vector<1x128x128xbf16> to vector<128x128xbf16>
      %cst_76 = arith.constant dense<0.000000e+00> : vector<14x128xf32>
      %71 = tpu.matmul %68, %70, %cst_76 {dimension_numbers = #tpu.dot_dimension_numbers<[1], [0], [0], [1], [0, 0, 1, 1], [], []>} : vector<14x128xbf16>, vector<128x128xbf16>, vector<14x128xf32> -> vector<14x128xf32>
      %72 = arith.addf %63, %71 : vector<14x128xf32>
      %c2_i32 = arith.constant 2 : i32
      %73 = arith.addi %arg13, %c2_i32 : i32
      %74 = arith.index_cast %73 : i32 to index
      %c0_77 = arith.constant 0 : index
      %c0_78 = arith.constant 0 : index
      %75 = vector.load %arg11[%74, %c0_77, %c0_78] : memref<16x16x128xf32, #tpu.memory_space<vmem>>, vector<1x14x128xf32>
      %76 = vector.shape_cast %75 : vector<1x14x128xf32> to vector<14x128xf32>
      %77 = arith.truncf %76 : vector<14x128xf32> to vector<14x128xbf16>
      %c6 = arith.constant 6 : index
      %c0_79 = arith.constant 0 : index
      %c0_80 = arith.constant 0 : index
      %78 = vector.load %arg2[%c6, %c0_79, %c0_80] : memref<9x128x128xbf16, #tpu.memory_space<vmem>>, vector<1x128x128xbf16>
      %79 = vector.shape_cast %78 : vector<1x128x128xbf16> to vector<128x128xbf16>
      %cst_81 = arith.constant dense<0.000000e+00> : vector<14x128xf32>
      %80 = tpu.matmul %77, %79, %cst_81 {dimension_numbers = #tpu.dot_dimension_numbers<[1], [0], [0], [1], [0, 0, 1, 1], [], []>} : vector<14x128xbf16>, vector<128x128xbf16>, vector<14x128xf32> -> vector<14x128xf32>
      %81 = arith.addf %72, %80 : vector<14x128xf32>
      %c2_i32_82 = arith.constant 2 : i32
      %82 = arith.addi %arg13, %c2_i32_82 : i32
      %83 = arith.index_cast %82 : i32 to index
      %c1_83 = arith.constant 1 : index
      %c0_84 = arith.constant 0 : index
      %84 = vector.load %arg11[%83, %c1_83, %c0_84] : memref<16x16x128xf32, #tpu.memory_space<vmem>>, vector<1x14x128xf32>
      %85 = vector.shape_cast %84 : vector<1x14x128xf32> to vector<14x128xf32>
      %86 = arith.truncf %85 : vector<14x128xf32> to vector<14x128xbf16>
      %c7 = arith.constant 7 : index
      %c0_85 = arith.constant 0 : index
      %c0_86 = arith.constant 0 : index
      %87 = vector.load %arg2[%c7, %c0_85, %c0_86] : memref<9x128x128xbf16, #tpu.memory_space<vmem>>, vector<1x128x128xbf16>
      %88 = vector.shape_cast %87 : vector<1x128x128xbf16> to vector<128x128xbf16>
      %cst_87 = arith.constant dense<0.000000e+00> : vector<14x128xf32>
      %89 = tpu.matmul %86, %88, %cst_87 {dimension_numbers = #tpu.dot_dimension_numbers<[1], [0], [0], [1], [0, 0, 1, 1], [], []>} : vector<14x128xbf16>, vector<128x128xbf16>, vector<14x128xf32> -> vector<14x128xf32>
      %90 = arith.addf %81, %89 : vector<14x128xf32>
      %c2_i32_88 = arith.constant 2 : i32
      %91 = arith.addi %arg13, %c2_i32_88 : i32
      %92 = arith.index_cast %91 : i32 to index
      %c2_89 = arith.constant 2 : index
      %c0_90 = arith.constant 0 : index
      %93 = vector.load %arg11[%92, %c2_89, %c0_90] : memref<16x16x128xf32, #tpu.memory_space<vmem>>, vector<1x14x128xf32>
      %94 = vector.shape_cast %93 : vector<1x14x128xf32> to vector<14x128xf32>
      %95 = arith.truncf %94 : vector<14x128xf32> to vector<14x128xbf16>
      %c8 = arith.constant 8 : index
      %c0_91 = arith.constant 0 : index
      %c0_92 = arith.constant 0 : index
      %96 = vector.load %arg2[%c8, %c0_91, %c0_92] : memref<9x128x128xbf16, #tpu.memory_space<vmem>>, vector<1x128x128xbf16>
      %97 = vector.shape_cast %96 : vector<1x128x128xbf16> to vector<128x128xbf16>
      %cst_93 = arith.constant dense<0.000000e+00> : vector<14x128xf32>
      %98 = tpu.matmul %95, %97, %cst_93 {dimension_numbers = #tpu.dot_dimension_numbers<[1], [0], [0], [1], [0, 0, 1, 1], [], []>} : vector<14x128xbf16>, vector<128x128xbf16>, vector<14x128xf32> -> vector<14x128xf32>
      %99 = arith.addf %90, %98 : vector<14x128xf32>
      %100 = vector.broadcast %5 : vector<1x128xf32> to vector<14x128xf32>
      %101 = arith.addf %99, %100 : vector<14x128xf32>
      %cst_94 = arith.constant 0.000000e+00 : f32
      %102 = vector.broadcast %cst_94 : f32 to vector<14x128xf32>
      %103 = arith.cmpf oge, %101, %102 : vector<14x128xf32>
      %104 = vector.broadcast %6 : vector<1x128xf32> to vector<14x128xf32>
      %105 = arith.mulf %101, %104 : vector<14x128xf32>
      %106 = arith.select %103, %101, %105 : vector<14x128xi1>, vector<14x128xf32>
      %107 = arith.index_cast %arg13 : i32 to index
      %c0_95 = arith.constant 0 : index
      %c0_96 = arith.constant 0 : index
      %108 = vector.load %arg12[%107, %c0_95, %c0_96] : memref<16x16x128xf32, #tpu.memory_space<vmem>>, vector<1x14x128xf32>
      %109 = vector.shape_cast %108 : vector<1x14x128xf32> to vector<14x128xf32>
      %110 = vector.shape_cast %106 : vector<14x128xf32> to vector<1x14x128xf32>
      tpu.vector_store %arg12[%107, %c0_95, %c0_96], %110 {strides = array<i32>} : memref<16x16x128xf32, #tpu.memory_space<vmem>>, vector<1x14x128xf32>,
    }
    %c14_i32_12 = arith.constant 14 : i32
    %c0_i32_13 = arith.constant 0 : i32
    %c7_i32 = arith.constant 7 : i32
    %8 = arith.addi %c0_i32_13, %c7_i32 : i32
    %c1_i32_14 = arith.constant 1 : i32
    scf.for %arg13 = %c0_i32_13 to %8 step %c1_i32_14  : i32 {
      %c2_i32 = arith.constant 2 : i32
      %18 = arith.muli %c2_i32, %arg13 : i32
      %c2_i32_38 = arith.constant 2 : i32
      %19 = arith.muli %c2_i32_38, %arg13 : i32
      %c1_i32_39 = arith.constant 1 : i32
      %20 = arith.addi %19, %c1_i32_39 : i32
      %c13_i32 = arith.constant 13 : i32
      %21 = arith.minsi %20, %c13_i32 : i32
      %22 = arith.index_cast %18 : i32 to index
      %c0_40 = arith.constant 0 : index
      %c0_41 = arith.constant 0 : index
      %23 = tpu.strided_load %arg12[%22, %c0_40, %c0_41] {strides = array<i32: 1, 2, 1>} : memref<16x16x128xf32, #tpu.memory_space<vmem>>, vector<1x7x128xf32>
      %24 = vector.shape_cast %23 : vector<1x7x128xf32> to vector<7x128xf32>
      %25 = arith.index_cast %18 : i32 to index
      %c1_42 = arith.constant 1 : index
      %c0_43 = arith.constant 0 : index
      %26 = tpu.strided_load %arg12[%25, %c1_42, %c0_43] {strides = array<i32: 1, 2, 1>} : memref<16x16x128xf32, #tpu.memory_space<vmem>>, vector<1x7x128xf32>
      %27 = vector.shape_cast %26 : vector<1x7x128xf32> to vector<7x128xf32>
      %28 = arith.index_cast %21 : i32 to index
      %c0_44 = arith.constant 0 : index
      %c0_45 = arith.constant 0 : index
      %29 = tpu.strided_load %arg12[%28, %c0_44, %c0_45] {strides = array<i32: 1, 2, 1>} : memref<16x16x128xf32, #tpu.memory_space<vmem>>, vector<1x7x128xf32>
      %30 = vector.shape_cast %29 : vector<1x7x128xf32> to vector<7x128xf32>
      %31 = arith.index_cast %21 : i32 to index
      %c1_46 = arith.constant 1 : index
      %c0_47 = arith.constant 0 : index
      %32 = tpu.strided_load %arg12[%31, %c1_46, %c0_47] {strides = array<i32: 1, 2, 1>} : memref<16x16x128xf32, #tpu.memory_space<vmem>>, vector<1x7x128xf32>
      %33 = vector.shape_cast %32 : vector<1x7x128xf32> to vector<7x128xf32>
      %34 = arith.maximumf %24, %27 : vector<7x128xf32>
      %35 = arith.maximumf %30, %33 : vector<7x128xf32>
      %36 = arith.maximumf %34, %35 : vector<7x128xf32>
      %37 = arith.index_cast %arg13 : i32 to index
      %c0_48 = arith.constant 0 : index
      %c0_49 = arith.constant 0 : index
      %38 = vector.load %arg11[%37, %c0_48, %c0_49] : memref<16x16x128xf32, #tpu.memory_space<vmem>>, vector<1x7x128xf32>
      %39 = vector.shape_cast %38 : vector<1x7x128xf32> to vector<7x128xf32>
      %40 = vector.shape_cast %36 : vector<7x128xf32> to vector<1x7x128xf32>
      tpu.vector_store %arg11[%37, %c0_48, %c0_49], %40 {strides = array<i32>} : memref<16x16x128xf32, #tpu.memory_space<vmem>>, vector<1x7x128xf32>,
    }
    %c7_i32_15 = arith.constant 7 : i32
    %c0_16 = arith.constant 0 : index
    %c0_17 = arith.constant 0 : index
    %9 = vector.load %arg5[%c0_16, %c0_17] : memref<2x128xf32, #tpu.memory_space<vmem>>, vector<1x128xf32>
    %c1_18 = arith.constant 1 : index
    %c0_19 = arith.constant 0 : index
    %10 = vector.load %arg5[%c1_18, %c0_19] : memref<2x128xf32, #tpu.memory_space<vmem>>, vector<1x128xf32>
    %c0_i32_20 = arith.constant 0 : i32
    %c5_i32 = arith.constant 5 : i32
    %11 = arith.addi %c0_i32_20, %c5_i32 : i32
    %c1_i32_21 = arith.constant 1 : i32
    scf.for %arg13 = %c0_i32_20 to %11 step %c1_i32_21  : i32 {
      %cst_38 = arith.constant 0.000000e+00 : f32
      %18 = vector.broadcast %cst_38 : f32 to vector<5x128xf32>
      %c0_i32_39 = arith.constant 0 : i32
      %19 = arith.addi %arg13, %c0_i32_39 : i32
      %20 = arith.index_cast %19 : i32 to index
      %c0_40 = arith.constant 0 : index
      %c0_41 = arith.constant 0 : index
      %21 = vector.load %arg11[%20, %c0_40, %c0_41] : memref<16x16x128xf32, #tpu.memory_space<vmem>>, vector<1x5x128xf32>
      %22 = vector.shape_cast %21 : vector<1x5x128xf32> to vector<5x128xf32>
      %23 = arith.truncf %22 : vector<5x128xf32> to vector<5x128xbf16>
      %c0_42 = arith.constant 0 : index
      %c0_43 = arith.constant 0 : index
      %c0_44 = arith.constant 0 : index
      %24 = vector.load %arg4[%c0_42, %c0_43, %c0_44] : memref<9x128x128xbf16, #tpu.memory_space<vmem>>, vector<1x128x128xbf16>
      %25 = vector.shape_cast %24 : vector<1x128x128xbf16> to vector<128x128xbf16>
      %cst_45 = arith.constant dense<0.000000e+00> : vector<5x128xf32>
      %26 = tpu.matmul %23, %25, %cst_45 {dimension_numbers = #tpu.dot_dimension_numbers<[1], [0], [0], [1], [0, 0, 1, 1], [], []>} : vector<5x128xbf16>, vector<128x128xbf16>, vector<5x128xf32> -> vector<5x128xf32>
      %27 = arith.addf %18, %26 : vector<5x128xf32>
      %c0_i32_46 = arith.constant 0 : i32
      %28 = arith.addi %arg13, %c0_i32_46 : i32
      %29 = arith.index_cast %28 : i32 to index
      %c1_47 = arith.constant 1 : index
      %c0_48 = arith.constant 0 : index
      %30 = vector.load %arg11[%29, %c1_47, %c0_48] : memref<16x16x128xf32, #tpu.memory_space<vmem>>, vector<1x5x128xf32>
      %31 = vector.shape_cast %30 : vector<1x5x128xf32> to vector<5x128xf32>
      %32 = arith.truncf %31 : vector<5x128xf32> to vector<5x128xbf16>
      %c1_49 = arith.constant 1 : index
      %c0_50 = arith.constant 0 : index
      %c0_51 = arith.constant 0 : index
      %33 = vector.load %arg4[%c1_49, %c0_50, %c0_51] : memref<9x128x128xbf16, #tpu.memory_space<vmem>>, vector<1x128x128xbf16>
      %34 = vector.shape_cast %33 : vector<1x128x128xbf16> to vector<128x128xbf16>
      %cst_52 = arith.constant dense<0.000000e+00> : vector<5x128xf32>
      %35 = tpu.matmul %32, %34, %cst_52 {dimension_numbers = #tpu.dot_dimension_numbers<[1], [0], [0], [1], [0, 0, 1, 1], [], []>} : vector<5x128xbf16>, vector<128x128xbf16>, vector<5x128xf32> -> vector<5x128xf32>
      %36 = arith.addf %27, %35 : vector<5x128xf32>
      %c0_i32_53 = arith.constant 0 : i32
      %37 = arith.addi %arg13, %c0_i32_53 : i32
      %38 = arith.index_cast %37 : i32 to index
      %c2 = arith.constant 2 : index
      %c0_54 = arith.constant 0 : index
      %39 = vector.load %arg11[%38, %c2, %c0_54] : memref<16x16x128xf32, #tpu.memory_space<vmem>>, vector<1x5x128xf32>
      %40 = vector.shape_cast %39 : vector<1x5x128xf32> to vector<5x128xf32>
      %41 = arith.truncf %40 : vector<5x128xf32> to vector<5x128xbf16>
      %c2_55 = arith.constant 2 : index
      %c0_56 = arith.constant 0 : index
      %c0_57 = arith.constant 0 : index
      %42 = vector.load %arg4[%c2_55, %c0_56, %c0_57] : memref<9x128x128xbf16, #tpu.memory_space<vmem>>, vector<1x128x128xbf16>
      %43 = vector.shape_cast %42 : vector<1x128x128xbf16> to vector<128x128xbf16>
      %cst_58 = arith.constant dense<0.000000e+00> : vector<5x128xf32>
      %44 = tpu.matmul %41, %43, %cst_58 {dimension_numbers = #tpu.dot_dimension_numbers<[1], [0], [0], [1], [0, 0, 1, 1], [], []>} : vector<5x128xbf16>, vector<128x128xbf16>, vector<5x128xf32> -> vector<5x128xf32>
      %45 = arith.addf %36, %44 : vector<5x128xf32>
      %c1_i32_59 = arith.constant 1 : i32
      %46 = arith.addi %arg13, %c1_i32_59 : i32
      %47 = arith.index_cast %46 : i32 to index
      %c0_60 = arith.constant 0 : index
      %c0_61 = arith.constant 0 : index
      %48 = vector.load %arg11[%47, %c0_60, %c0_61] : memref<16x16x128xf32, #tpu.memory_space<vmem>>, vector<1x5x128xf32>
      %49 = vector.shape_cast %48 : vector<1x5x128xf32> to vector<5x128xf32>
      %50 = arith.truncf %49 : vector<5x128xf32> to vector<5x128xbf16>
      %c3 = arith.constant 3 : index
      %c0_62 = arith.constant 0 : index
      %c0_63 = arith.constant 0 : index
      %51 = vector.load %arg4[%c3, %c0_62, %c0_63] : memref<9x128x128xbf16, #tpu.memory_space<vmem>>, vector<1x128x128xbf16>
      %52 = vector.shape_cast %51 : vector<1x128x128xbf16> to vector<128x128xbf16>
      %cst_64 = arith.constant dense<0.000000e+00> : vector<5x128xf32>
      %53 = tpu.matmul %50, %52, %cst_64 {dimension_numbers = #tpu.dot_dimension_numbers<[1], [0], [0], [1], [0, 0, 1, 1], [], []>} : vector<5x128xbf16>, vector<128x128xbf16>, vector<5x128xf32> -> vector<5x128xf32>
      %54 = arith.addf %45, %53 : vector<5x128xf32>
      %c1_i32_65 = arith.constant 1 : i32
      %55 = arith.addi %arg13, %c1_i32_65 : i32
      %56 = arith.index_cast %55 : i32 to index
      %c1_66 = arith.constant 1 : index
      %c0_67 = arith.constant 0 : index
      %57 = vector.load %arg11[%56, %c1_66, %c0_67] : memref<16x16x128xf32, #tpu.memory_space<vmem>>, vector<1x5x128xf32>
      %58 = vector.shape_cast %57 : vector<1x5x128xf32> to vector<5x128xf32>
      %59 = arith.truncf %58 : vector<5x128xf32> to vector<5x128xbf16>
      %c4 = arith.constant 4 : index
      %c0_68 = arith.constant 0 : index
      %c0_69 = arith.constant 0 : index
      %60 = vector.load %arg4[%c4, %c0_68, %c0_69] : memref<9x128x128xbf16, #tpu.memory_space<vmem>>, vector<1x128x128xbf16>
      %61 = vector.shape_cast %60 : vector<1x128x128xbf16> to vector<128x128xbf16>
      %cst_70 = arith.constant dense<0.000000e+00> : vector<5x128xf32>
      %62 = tpu.matmul %59, %61, %cst_70 {dimension_numbers = #tpu.dot_dimension_numbers<[1], [0], [0], [1], [0, 0, 1, 1], [], []>} : vector<5x128xbf16>, vector<128x128xbf16>, vector<5x128xf32> -> vector<5x128xf32>
      %63 = arith.addf %54, %62 : vector<5x128xf32>
      %c1_i32_71 = arith.constant 1 : i32
      %64 = arith.addi %arg13, %c1_i32_71 : i32
      %65 = arith.index_cast %64 : i32 to index
      %c2_72 = arith.constant 2 : index
      %c0_73 = arith.constant 0 : index
      %66 = vector.load %arg11[%65, %c2_72, %c0_73] : memref<16x16x128xf32, #tpu.memory_space<vmem>>, vector<1x5x128xf32>
      %67 = vector.shape_cast %66 : vector<1x5x128xf32> to vector<5x128xf32>
      %68 = arith.truncf %67 : vector<5x128xf32> to vector<5x128xbf16>
      %c5 = arith.constant 5 : index
      %c0_74 = arith.constant 0 : index
      %c0_75 = arith.constant 0 : index
      %69 = vector.load %arg4[%c5, %c0_74, %c0_75] : memref<9x128x128xbf16, #tpu.memory_space<vmem>>, vector<1x128x128xbf16>
      %70 = vector.shape_cast %69 : vector<1x128x128xbf16> to vector<128x128xbf16>
      %cst_76 = arith.constant dense<0.000000e+00> : vector<5x128xf32>
      %71 = tpu.matmul %68, %70, %cst_76 {dimension_numbers = #tpu.dot_dimension_numbers<[1], [0], [0], [1], [0, 0, 1, 1], [], []>} : vector<5x128xbf16>, vector<128x128xbf16>, vector<5x128xf32> -> vector<5x128xf32>
      %72 = arith.addf %63, %71 : vector<5x128xf32>
      %c2_i32 = arith.constant 2 : i32
      %73 = arith.addi %arg13, %c2_i32 : i32
      %74 = arith.index_cast %73 : i32 to index
      %c0_77 = arith.constant 0 : index
      %c0_78 = arith.constant 0 : index
      %75 = vector.load %arg11[%74, %c0_77, %c0_78] : memref<16x16x128xf32, #tpu.memory_space<vmem>>, vector<1x5x128xf32>
      %76 = vector.shape_cast %75 : vector<1x5x128xf32> to vector<5x128xf32>
      %77 = arith.truncf %76 : vector<5x128xf32> to vector<5x128xbf16>
      %c6 = arith.constant 6 : index
      %c0_79 = arith.constant 0 : index
      %c0_80 = arith.constant 0 : index
      %78 = vector.load %arg4[%c6, %c0_79, %c0_80] : memref<9x128x128xbf16, #tpu.memory_space<vmem>>, vector<1x128x128xbf16>
      %79 = vector.shape_cast %78 : vector<1x128x128xbf16> to vector<128x128xbf16>
      %cst_81 = arith.constant dense<0.000000e+00> : vector<5x128xf32>
      %80 = tpu.matmul %77, %79, %cst_81 {dimension_numbers = #tpu.dot_dimension_numbers<[1], [0], [0], [1], [0, 0, 1, 1], [], []>} : vector<5x128xbf16>, vector<128x128xbf16>, vector<5x128xf32> -> vector<5x128xf32>
      %81 = arith.addf %72, %80 : vector<5x128xf32>
      %c2_i32_82 = arith.constant 2 : i32
      %82 = arith.addi %arg13, %c2_i32_82 : i32
      %83 = arith.index_cast %82 : i32 to index
      %c1_83 = arith.constant 1 : index
      %c0_84 = arith.constant 0 : index
      %84 = vector.load %arg11[%83, %c1_83, %c0_84] : memref<16x16x128xf32, #tpu.memory_space<vmem>>, vector<1x5x128xf32>
      %85 = vector.shape_cast %84 : vector<1x5x128xf32> to vector<5x128xf32>
      %86 = arith.truncf %85 : vector<5x128xf32> to vector<5x128xbf16>
      %c7 = arith.constant 7 : index
      %c0_85 = arith.constant 0 : index
      %c0_86 = arith.constant 0 : index
      %87 = vector.load %arg4[%c7, %c0_85, %c0_86] : memref<9x128x128xbf16, #tpu.memory_space<vmem>>, vector<1x128x128xbf16>
      %88 = vector.shape_cast %87 : vector<1x128x128xbf16> to vector<128x128xbf16>
      %cst_87 = arith.constant dense<0.000000e+00> : vector<5x128xf32>
      %89 = tpu.matmul %86, %88, %cst_87 {dimension_numbers = #tpu.dot_dimension_numbers<[1], [0], [0], [1], [0, 0, 1, 1], [], []>} : vector<5x128xbf16>, vector<128x128xbf16>, vector<5x128xf32> -> vector<5x128xf32>
      %90 = arith.addf %81, %89 : vector<5x128xf32>
      %c2_i32_88 = arith.constant 2 : i32
      %91 = arith.addi %arg13, %c2_i32_88 : i32
      %92 = arith.index_cast %91 : i32 to index
      %c2_89 = arith.constant 2 : index
      %c0_90 = arith.constant 0 : index
      %93 = vector.load %arg11[%92, %c2_89, %c0_90] : memref<16x16x128xf32, #tpu.memory_space<vmem>>, vector<1x5x128xf32>
      %94 = vector.shape_cast %93 : vector<1x5x128xf32> to vector<5x128xf32>
      %95 = arith.truncf %94 : vector<5x128xf32> to vector<5x128xbf16>
      %c8 = arith.constant 8 : index
      %c0_91 = arith.constant 0 : index
      %c0_92 = arith.constant 0 : index
      %96 = vector.load %arg4[%c8, %c0_91, %c0_92] : memref<9x128x128xbf16, #tpu.memory_space<vmem>>, vector<1x128x128xbf16>
      %97 = vector.shape_cast %96 : vector<1x128x128xbf16> to vector<128x128xbf16>
      %cst_93 = arith.constant dense<0.000000e+00> : vector<5x128xf32>
      %98 = tpu.matmul %95, %97, %cst_93 {dimension_numbers = #tpu.dot_dimension_numbers<[1], [0], [0], [1], [0, 0, 1, 1], [], []>} : vector<5x128xbf16>, vector<128x128xbf16>, vector<5x128xf32> -> vector<5x128xf32>
      %99 = arith.addf %90, %98 : vector<5x128xf32>
      %100 = vector.broadcast %9 : vector<1x128xf32> to vector<5x128xf32>
      %101 = arith.addf %99, %100 : vector<5x128xf32>
      %cst_94 = arith.constant 0.000000e+00 : f32
      %102 = vector.broadcast %cst_94 : f32 to vector<5x128xf32>
      %103 = arith.cmpf oge, %101, %102 : vector<5x128xf32>
      %104 = vector.broadcast %10 : vector<1x128xf32> to vector<5x128xf32>
      %105 = arith.mulf %101, %104 : vector<5x128xf32>
      %106 = arith.select %103, %101, %105 : vector<5x128xi1>, vector<5x128xf32>
      %107 = arith.index_cast %arg13 : i32 to index
      %c0_95 = arith.constant 0 : index
      %c0_96 = arith.constant 0 : index
      %108 = vector.load %arg12[%107, %c0_95, %c0_96] : memref<16x16x128xf32, #tpu.memory_space<vmem>>, vector<1x5x128xf32>
      %109 = vector.shape_cast %108 : vector<1x5x128xf32> to vector<5x128xf32>
      %110 = vector.shape_cast %106 : vector<5x128xf32> to vector<1x5x128xf32>
      tpu.vector_store %arg12[%107, %c0_95, %c0_96], %110 {strides = array<i32>} : memref<16x16x128xf32, #tpu.memory_space<vmem>>, vector<1x5x128xf32>,
    }
    %c5_i32_22 = arith.constant 5 : i32
    %c0_23 = arith.constant 0 : index
    %c0_24 = arith.constant 0 : index
    %12 = vector.load %arg7[%c0_23, %c0_24] : memref<2x128xf32, #tpu.memory_space<vmem>>, vector<1x128xf32>
    %c1_25 = arith.constant 1 : index
    %c0_26 = arith.constant 0 : index
    %13 = vector.load %arg7[%c1_25, %c0_26] : memref<2x128xf32, #tpu.memory_space<vmem>>, vector<1x128xf32>
    %c0_i32_27 = arith.constant 0 : i32
    %c3_i32 = arith.constant 3 : i32
    %14 = arith.addi %c0_i32_27, %c3_i32 : i32
    %c1_i32_28 = arith.constant 1 : i32
    scf.for %arg13 = %c0_i32_27 to %14 step %c1_i32_28  : i32 {
      %cst_38 = arith.constant 0.000000e+00 : f32
      %18 = vector.broadcast %cst_38 : f32 to vector<3x128xf32>
      %c0_i32_39 = arith.constant 0 : i32
      %19 = arith.addi %arg13, %c0_i32_39 : i32
      %20 = arith.index_cast %19 : i32 to index
      %c0_40 = arith.constant 0 : index
      %c0_41 = arith.constant 0 : index
      %21 = vector.load %arg12[%20, %c0_40, %c0_41] : memref<16x16x128xf32, #tpu.memory_space<vmem>>, vector<1x3x128xf32>
      %22 = vector.shape_cast %21 : vector<1x3x128xf32> to vector<3x128xf32>
      %23 = arith.truncf %22 : vector<3x128xf32> to vector<3x128xbf16>
      %c0_42 = arith.constant 0 : index
      %c0_43 = arith.constant 0 : index
      %c0_44 = arith.constant 0 : index
      %24 = vector.load %arg6[%c0_42, %c0_43, %c0_44] : memref<9x128x128xbf16, #tpu.memory_space<vmem>>, vector<1x128x128xbf16>
      %25 = vector.shape_cast %24 : vector<1x128x128xbf16> to vector<128x128xbf16>
      %cst_45 = arith.constant dense<0.000000e+00> : vector<3x128xf32>
      %26 = tpu.matmul %23, %25, %cst_45 {dimension_numbers = #tpu.dot_dimension_numbers<[1], [0], [0], [1], [0, 0, 1, 1], [], []>} : vector<3x128xbf16>, vector<128x128xbf16>, vector<3x128xf32> -> vector<3x128xf32>
      %27 = arith.addf %18, %26 : vector<3x128xf32>
      %c0_i32_46 = arith.constant 0 : i32
      %28 = arith.addi %arg13, %c0_i32_46 : i32
      %29 = arith.index_cast %28 : i32 to index
      %c1_47 = arith.constant 1 : index
      %c0_48 = arith.constant 0 : index
      %30 = vector.load %arg12[%29, %c1_47, %c0_48] : memref<16x16x128xf32, #tpu.memory_space<vmem>>, vector<1x3x128xf32>
      %31 = vector.shape_cast %30 : vector<1x3x128xf32> to vector<3x128xf32>
      %32 = arith.truncf %31 : vector<3x128xf32> to vector<3x128xbf16>
      %c1_49 = arith.constant 1 : index
      %c0_50 = arith.constant 0 : index
      %c0_51 = arith.constant 0 : index
      %33 = vector.load %arg6[%c1_49, %c0_50, %c0_51] : memref<9x128x128xbf16, #tpu.memory_space<vmem>>, vector<1x128x128xbf16>
      %34 = vector.shape_cast %33 : vector<1x128x128xbf16> to vector<128x128xbf16>
      %cst_52 = arith.constant dense<0.000000e+00> : vector<3x128xf32>
      %35 = tpu.matmul %32, %34, %cst_52 {dimension_numbers = #tpu.dot_dimension_numbers<[1], [0], [0], [1], [0, 0, 1, 1], [], []>} : vector<3x128xbf16>, vector<128x128xbf16>, vector<3x128xf32> -> vector<3x128xf32>
      %36 = arith.addf %27, %35 : vector<3x128xf32>
      %c0_i32_53 = arith.constant 0 : i32
      %37 = arith.addi %arg13, %c0_i32_53 : i32
      %38 = arith.index_cast %37 : i32 to index
      %c2 = arith.constant 2 : index
      %c0_54 = arith.constant 0 : index
      %39 = vector.load %arg12[%38, %c2, %c0_54] : memref<16x16x128xf32, #tpu.memory_space<vmem>>, vector<1x3x128xf32>
      %40 = vector.shape_cast %39 : vector<1x3x128xf32> to vector<3x128xf32>
      %41 = arith.truncf %40 : vector<3x128xf32> to vector<3x128xbf16>
      %c2_55 = arith.constant 2 : index
      %c0_56 = arith.constant 0 : index
      %c0_57 = arith.constant 0 : index
      %42 = vector.load %arg6[%c2_55, %c0_56, %c0_57] : memref<9x128x128xbf16, #tpu.memory_space<vmem>>, vector<1x128x128xbf16>
      %43 = vector.shape_cast %42 : vector<1x128x128xbf16> to vector<128x128xbf16>
      %cst_58 = arith.constant dense<0.000000e+00> : vector<3x128xf32>
      %44 = tpu.matmul %41, %43, %cst_58 {dimension_numbers = #tpu.dot_dimension_numbers<[1], [0], [0], [1], [0, 0, 1, 1], [], []>} : vector<3x128xbf16>, vector<128x128xbf16>, vector<3x128xf32> -> vector<3x128xf32>
      %45 = arith.addf %36, %44 : vector<3x128xf32>
      %c1_i32_59 = arith.constant 1 : i32
      %46 = arith.addi %arg13, %c1_i32_59 : i32
      %47 = arith.index_cast %46 : i32 to index
      %c0_60 = arith.constant 0 : index
      %c0_61 = arith.constant 0 : index
      %48 = vector.load %arg12[%47, %c0_60, %c0_61] : memref<16x16x128xf32, #tpu.memory_space<vmem>>, vector<1x3x128xf32>
      %49 = vector.shape_cast %48 : vector<1x3x128xf32> to vector<3x128xf32>
      %50 = arith.truncf %49 : vector<3x128xf32> to vector<3x128xbf16>
      %c3 = arith.constant 3 : index
      %c0_62 = arith.constant 0 : index
      %c0_63 = arith.constant 0 : index
      %51 = vector.load %arg6[%c3, %c0_62, %c0_63] : memref<9x128x128xbf16, #tpu.memory_space<vmem>>, vector<1x128x128xbf16>
      %52 = vector.shape_cast %51 : vector<1x128x128xbf16> to vector<128x128xbf16>
      %cst_64 = arith.constant dense<0.000000e+00> : vector<3x128xf32>
      %53 = tpu.matmul %50, %52, %cst_64 {dimension_numbers = #tpu.dot_dimension_numbers<[1], [0], [0], [1], [0, 0, 1, 1], [], []>} : vector<3x128xbf16>, vector<128x128xbf16>, vector<3x128xf32> -> vector<3x128xf32>
      %54 = arith.addf %45, %53 : vector<3x128xf32>
      %c1_i32_65 = arith.constant 1 : i32
      %55 = arith.addi %arg13, %c1_i32_65 : i32
      %56 = arith.index_cast %55 : i32 to index
      %c1_66 = arith.constant 1 : index
      %c0_67 = arith.constant 0 : index
      %57 = vector.load %arg12[%56, %c1_66, %c0_67] : memref<16x16x128xf32, #tpu.memory_space<vmem>>, vector<1x3x128xf32>
      %58 = vector.shape_cast %57 : vector<1x3x128xf32> to vector<3x128xf32>
      %59 = arith.truncf %58 : vector<3x128xf32> to vector<3x128xbf16>
      %c4 = arith.constant 4 : index
      %c0_68 = arith.constant 0 : index
      %c0_69 = arith.constant 0 : index
      %60 = vector.load %arg6[%c4, %c0_68, %c0_69] : memref<9x128x128xbf16, #tpu.memory_space<vmem>>, vector<1x128x128xbf16>
      %61 = vector.shape_cast %60 : vector<1x128x128xbf16> to vector<128x128xbf16>
      %cst_70 = arith.constant dense<0.000000e+00> : vector<3x128xf32>
      %62 = tpu.matmul %59, %61, %cst_70 {dimension_numbers = #tpu.dot_dimension_numbers<[1], [0], [0], [1], [0, 0, 1, 1], [], []>} : vector<3x128xbf16>, vector<128x128xbf16>, vector<3x128xf32> -> vector<3x128xf32>
      %63 = arith.addf %54, %62 : vector<3x128xf32>
      %c1_i32_71 = arith.constant 1 : i32
      %64 = arith.addi %arg13, %c1_i32_71 : i32
      %65 = arith.index_cast %64 : i32 to index
      %c2_72 = arith.constant 2 : index
      %c0_73 = arith.constant 0 : index
      %66 = vector.load %arg12[%65, %c2_72, %c0_73] : memref<16x16x128xf32, #tpu.memory_space<vmem>>, vector<1x3x128xf32>
      %67 = vector.shape_cast %66 : vector<1x3x128xf32> to vector<3x128xf32>
      %68 = arith.truncf %67 : vector<3x128xf32> to vector<3x128xbf16>
      %c5 = arith.constant 5 : index
      %c0_74 = arith.constant 0 : index
      %c0_75 = arith.constant 0 : index
      %69 = vector.load %arg6[%c5, %c0_74, %c0_75] : memref<9x128x128xbf16, #tpu.memory_space<vmem>>, vector<1x128x128xbf16>
      %70 = vector.shape_cast %69 : vector<1x128x128xbf16> to vector<128x128xbf16>
      %cst_76 = arith.constant dense<0.000000e+00> : vector<3x128xf32>
      %71 = tpu.matmul %68, %70, %cst_76 {dimension_numbers = #tpu.dot_dimension_numbers<[1], [0], [0], [1], [0, 0, 1, 1], [], []>} : vector<3x128xbf16>, vector<128x128xbf16>, vector<3x128xf32> -> vector<3x128xf32>
      %72 = arith.addf %63, %71 : vector<3x128xf32>
      %c2_i32 = arith.constant 2 : i32
      %73 = arith.addi %arg13, %c2_i32 : i32
      %74 = arith.index_cast %73 : i32 to index
      %c0_77 = arith.constant 0 : index
      %c0_78 = arith.constant 0 : index
      %75 = vector.load %arg12[%74, %c0_77, %c0_78] : memref<16x16x128xf32, #tpu.memory_space<vmem>>, vector<1x3x128xf32>
      %76 = vector.shape_cast %75 : vector<1x3x128xf32> to vector<3x128xf32>
      %77 = arith.truncf %76 : vector<3x128xf32> to vector<3x128xbf16>
      %c6 = arith.constant 6 : index
      %c0_79 = arith.constant 0 : index
      %c0_80 = arith.constant 0 : index
      %78 = vector.load %arg6[%c6, %c0_79, %c0_80] : memref<9x128x128xbf16, #tpu.memory_space<vmem>>, vector<1x128x128xbf16>
      %79 = vector.shape_cast %78 : vector<1x128x128xbf16> to vector<128x128xbf16>
      %cst_81 = arith.constant dense<0.000000e+00> : vector<3x128xf32>
      %80 = tpu.matmul %77, %79, %cst_81 {dimension_numbers = #tpu.dot_dimension_numbers<[1], [0], [0], [1], [0, 0, 1, 1], [], []>} : vector<3x128xbf16>, vector<128x128xbf16>, vector<3x128xf32> -> vector<3x128xf32>
      %81 = arith.addf %72, %80 : vector<3x128xf32>
      %c2_i32_82 = arith.constant 2 : i32
      %82 = arith.addi %arg13, %c2_i32_82 : i32
      %83 = arith.index_cast %82 : i32 to index
      %c1_83 = arith.constant 1 : index
      %c0_84 = arith.constant 0 : index
      %84 = vector.load %arg12[%83, %c1_83, %c0_84] : memref<16x16x128xf32, #tpu.memory_space<vmem>>, vector<1x3x128xf32>
      %85 = vector.shape_cast %84 : vector<1x3x128xf32> to vector<3x128xf32>
      %86 = arith.truncf %85 : vector<3x128xf32> to vector<3x128xbf16>
      %c7 = arith.constant 7 : index
      %c0_85 = arith.constant 0 : index
      %c0_86 = arith.constant 0 : index
      %87 = vector.load %arg6[%c7, %c0_85, %c0_86] : memref<9x128x128xbf16, #tpu.memory_space<vmem>>, vector<1x128x128xbf16>
      %88 = vector.shape_cast %87 : vector<1x128x128xbf16> to vector<128x128xbf16>
      %cst_87 = arith.constant dense<0.000000e+00> : vector<3x128xf32>
      %89 = tpu.matmul %86, %88, %cst_87 {dimension_numbers = #tpu.dot_dimension_numbers<[1], [0], [0], [1], [0, 0, 1, 1], [], []>} : vector<3x128xbf16>, vector<128x128xbf16>, vector<3x128xf32> -> vector<3x128xf32>
      %90 = arith.addf %81, %89 : vector<3x128xf32>
      %c2_i32_88 = arith.constant 2 : i32
      %91 = arith.addi %arg13, %c2_i32_88 : i32
      %92 = arith.index_cast %91 : i32 to index
      %c2_89 = arith.constant 2 : index
      %c0_90 = arith.constant 0 : index
      %93 = vector.load %arg12[%92, %c2_89, %c0_90] : memref<16x16x128xf32, #tpu.memory_space<vmem>>, vector<1x3x128xf32>
      %94 = vector.shape_cast %93 : vector<1x3x128xf32> to vector<3x128xf32>
      %95 = arith.truncf %94 : vector<3x128xf32> to vector<3x128xbf16>
      %c8 = arith.constant 8 : index
      %c0_91 = arith.constant 0 : index
      %c0_92 = arith.constant 0 : index
      %96 = vector.load %arg6[%c8, %c0_91, %c0_92] : memref<9x128x128xbf16, #tpu.memory_space<vmem>>, vector<1x128x128xbf16>
      %97 = vector.shape_cast %96 : vector<1x128x128xbf16> to vector<128x128xbf16>
      %cst_93 = arith.constant dense<0.000000e+00> : vector<3x128xf32>
      %98 = tpu.matmul %95, %97, %cst_93 {dimension_numbers = #tpu.dot_dimension_numbers<[1], [0], [0], [1], [0, 0, 1, 1], [], []>} : vector<3x128xbf16>, vector<128x128xbf16>, vector<3x128xf32> -> vector<3x128xf32>
      %99 = arith.addf %90, %98 : vector<3x128xf32>
      %100 = vector.broadcast %12 : vector<1x128xf32> to vector<3x128xf32>
      %101 = arith.addf %99, %100 : vector<3x128xf32>
      %cst_94 = arith.constant 0.000000e+00 : f32
      %102 = vector.broadcast %cst_94 : f32 to vector<3x128xf32>
      %103 = arith.cmpf oge, %101, %102 : vector<3x128xf32>
      %104 = vector.broadcast %13 : vector<1x128xf32> to vector<3x128xf32>
      %105 = arith.mulf %101, %104 : vector<3x128xf32>
      %106 = arith.select %103, %101, %105 : vector<3x128xi1>, vector<3x128xf32>
      %107 = arith.index_cast %arg13 : i32 to index
      %c0_95 = arith.constant 0 : index
      %c0_96 = arith.constant 0 : index
      %108 = vector.load %arg11[%107, %c0_95, %c0_96] : memref<16x16x128xf32, #tpu.memory_space<vmem>>, vector<1x3x128xf32>
      %109 = vector.shape_cast %108 : vector<1x3x128xf32> to vector<3x128xf32>
      %110 = vector.shape_cast %106 : vector<3x128xf32> to vector<1x3x128xf32>
      tpu.vector_store %arg11[%107, %c0_95, %c0_96], %110 {strides = array<i32>} : memref<16x16x128xf32, #tpu.memory_space<vmem>>, vector<1x3x128xf32>,
    }
    %c3_i32_29 = arith.constant 3 : i32
    %c0_30 = arith.constant 0 : index
    %c0_31 = arith.constant 0 : index
    %15 = vector.load %arg8[%c0_30, %c0_31] : memref<128x128xbf16, #tpu.memory_space<vmem>>, vector<128x128xbf16>
    %c0_32 = arith.constant 0 : index
    %c0_33 = arith.constant 0 : index
    %16 = vector.load %arg9[%c0_32, %c0_33] : memref<1x128xf32, #tpu.memory_space<vmem>>, vector<1x128xf32>
    %c0_i32_34 = arith.constant 0 : i32
    %c3_i32_35 = arith.constant 3 : i32
    %17 = arith.addi %c0_i32_34, %c3_i32_35 : i32
    %c1_i32_36 = arith.constant 1 : i32
    scf.for %arg13 = %c0_i32_34 to %17 step %c1_i32_36  : i32 {
      %18 = arith.index_cast %arg13 : i32 to index
      %c0_38 = arith.constant 0 : index
      %c0_39 = arith.constant 0 : index
      %19 = vector.load %arg11[%18, %c0_38, %c0_39] : memref<16x16x128xf32, #tpu.memory_space<vmem>>, vector<1x3x128xf32>
      %20 = vector.shape_cast %19 : vector<1x3x128xf32> to vector<3x128xf32>
      %21 = arith.truncf %20 : vector<3x128xf32> to vector<3x128xbf16>
      %cst_40 = arith.constant dense<0.000000e+00> : vector<3x128xf32>
      %22 = tpu.matmul %21, %15, %cst_40 {dimension_numbers = #tpu.dot_dimension_numbers<[1], [0], [0], [1], [0, 0, 1, 1], [], []>} : vector<3x128xbf16>, vector<128x128xbf16>, vector<3x128xf32> -> vector<3x128xf32>
      %23 = vector.broadcast %16 : vector<1x128xf32> to vector<3x128xf32>
      %24 = arith.addf %22, %23 : vector<3x128xf32>
      %25 = vector.extract_strided_slice %24 {offsets = [0, 0], sizes = [3, 1], strides = [1, 1]} : vector<3x128xf32> to vector<3x1xf32>
      %26 = vector.extract_strided_slice %24 {offsets = [0, 1], sizes = [3, 1], strides = [1, 1]} : vector<3x128xf32> to vector<3x1xf32>
      %27 = arith.subf %25, %26 : vector<3x1xf32>
      %28 = math.exp %27 : vector<3x1xf32>
      %cst_41 = arith.constant 1.000000e+00 : f32
      %29 = vector.broadcast %cst_41 : f32 to vector<3x1xf32>
      %30 = arith.addf %29, %28 : vector<3x1xf32>
      %31 = tpu.reciprocal %30 {approx = true} : vector<3x1xf32> -> vector<3x1xf32>
      %c0_42 = arith.constant 0 : index
      %32 = arith.index_cast %arg13 : i32 to index
      %c0_43 = arith.constant 0 : index
      %c0_44 = arith.constant 0 : index
      %33 = vector.load %arg10[%c0_42, %32, %c0_43, %c0_44] : memref<1x3x3x128xf32, #tpu.memory_space<vmem>>, vector<1x1x3x128xf32>
      %34 = vector.shape_cast %33 : vector<1x1x3x128xf32> to vector<3x128xf32>
      %35 = vector.shape_cast %24 : vector<3x128xf32> to vector<1x1x3x128xf32>
      tpu.vector_store %arg10[%c0_42, %32, %c0_43, %c0_44], %35 {strides = array<i32>} : memref<1x3x3x128xf32, #tpu.memory_space<vmem>>, vector<1x1x3x128xf32>,
      %cst_45 = arith.constant 1.000000e+00 : f32
      %36 = vector.broadcast %cst_45 : f32 to vector<3x1xf32>
      %37 = arith.subf %36, %31 : vector<3x1xf32>
      %c0_46 = arith.constant 0 : index
      %38 = arith.index_cast %arg13 : i32 to index
      %c0_47 = arith.constant 0 : index
      %c0_48 = arith.constant 0 : index
      %39 = vector.load %arg10[%c0_46, %38, %c0_47, %c0_48] : memref<1x3x3x128xf32, #tpu.memory_space<vmem>>, vector<1x1x3x1xf32>
      %40 = vector.shape_cast %39 : vector<1x1x3x1xf32> to vector<3x1xf32>
      %41 = vector.shape_cast %37 : vector<3x1xf32> to vector<1x1x3x1xf32>
      tpu.vector_store %arg10[%c0_46, %38, %c0_47, %c0_48], %41 {strides = array<i32>} : memref<1x3x3x128xf32, #tpu.memory_space<vmem>>, vector<1x1x3x1xf32>,
      %c0_49 = arith.constant 0 : index
      %42 = arith.index_cast %arg13 : i32 to index
      %c0_50 = arith.constant 0 : index
      %c1_51 = arith.constant 1 : index
      %43 = vector.load %arg10[%c0_49, %42, %c0_50, %c1_51] : memref<1x3x3x128xf32, #tpu.memory_space<vmem>>, vector<1x1x3x1xf32>
      %44 = vector.shape_cast %43 : vector<1x1x3x1xf32> to vector<3x1xf32>
      %45 = vector.shape_cast %31 : vector<3x1xf32> to vector<1x1x3x1xf32>
      tpu.vector_store %arg10[%c0_49, %42, %c0_50, %c1_51], %45 {strides = array<i32>} : memref<1x3x3x128xf32, #tpu.memory_space<vmem>>, vector<1x1x3x1xf32>,
    }
    %c3_i32_37 = arith.constant 3 : i32
    return
  }
  func.func @transform_0(%arg0: i32) -> (i32, i32, i32, i32) {
    %c0_i32 = arith.constant 0 : i32
    %c0_i32_0 = arith.constant 0 : i32
    %c0_i32_1 = arith.constant 0 : i32
    %c0_i32_2 = arith.constant 0 : i32
    return %arg0, %c0_i32, %c0_i32_0, %c0_i32_1 : i32, i32, i32, i32
  }
  func.func @transform_1(%arg0: i32) -> (i32, i32, i32) {
    %c0_i32 = arith.constant 0 : i32
    %c0_i32_0 = arith.constant 0 : i32
    %c0_i32_1 = arith.constant 0 : i32
    %c0_i32_2 = arith.constant 0 : i32
    return %c0_i32, %c0_i32_0, %c0_i32_1 : i32, i32, i32
  }
  func.func @transform_2(%arg0: i32) -> (i32, i32) {
    %c0_i32 = arith.constant 0 : i32
    %c0_i32_0 = arith.constant 0 : i32
    %c0_i32_1 = arith.constant 0 : i32
    return %c0_i32, %c0_i32_0 : i32, i32
  }
  func.func @transform_3(%arg0: i32) -> (i32, i32, i32) {
    %c0_i32 = arith.constant 0 : i32
    %c0_i32_0 = arith.constant 0 : i32
    %c0_i32_1 = arith.constant 0 : i32
    %c0_i32_2 = arith.constant 0 : i32
    return %c0_i32, %c0_i32_0, %c0_i32_1 : i32, i32, i32
  }
  func.func @transform_4(%arg0: i32) -> (i32, i32) {
    %c0_i32 = arith.constant 0 : i32
    %c0_i32_0 = arith.constant 0 : i32
    %c0_i32_1 = arith.constant 0 : i32
    return %c0_i32, %c0_i32_0 : i32, i32
  }
  func.func @transform_5(%arg0: i32) -> (i32, i32, i32) {
    %c0_i32 = arith.constant 0 : i32
    %c0_i32_0 = arith.constant 0 : i32
    %c0_i32_1 = arith.constant 0 : i32
    %c0_i32_2 = arith.constant 0 : i32
    return %c0_i32, %c0_i32_0, %c0_i32_1 : i32, i32, i32
  }
  func.func @transform_6(%arg0: i32) -> (i32, i32) {
    %c0_i32 = arith.constant 0 : i32
    %c0_i32_0 = arith.constant 0 : i32
    %c0_i32_1 = arith.constant 0 : i32
    return %c0_i32, %c0_i32_0 : i32, i32
  }
  func.func @transform_7(%arg0: i32) -> (i32, i32) {
    %c0_i32 = arith.constant 0 : i32
    %c0_i32_0 = arith.constant 0 : i32
    %c0_i32_1 = arith.constant 0 : i32
    return %c0_i32, %c0_i32_0 : i32, i32
  }
  func.func @transform_8(%arg0: i32) -> (i32, i32) {
    %c0_i32 = arith.constant 0 : i32
    %c0_i32_0 = arith.constant 0 : i32
    %c0_i32_1 = arith.constant 0 : i32
    return %c0_i32, %c0_i32_0 : i32, i32
  }
  func.func @transform_9(%arg0: i32) -> (i32, i32, i32, i32) {
    %c0_i32 = arith.constant 0 : i32
    %c0_i32_0 = arith.constant 0 : i32
    %c0_i32_1 = arith.constant 0 : i32
    %c0_i32_2 = arith.constant 0 : i32
    return %arg0, %c0_i32, %c0_i32_0, %c0_i32_1 : i32, i32, i32, i32
  }
}

</mosaic_0001>

<bundles_post_ra>
// kernel: pnet_forward.1
= control target key start
LH: loop header
LB: loop body
LE: loop exit
PB: predicated region body
PF: predicated region fallthrough
CT: control target
= control target key end

     0   :  { %14 = vsyncpa [#allocation5], 0  ;;  %s6639_s0 = inlined_call_operand.vmem [shape: f32[2,16,16,3], index: 0, kind: input, shape index: {}]   ;;  %s6640_s1 = inlined_call_operand.vmem [shape: bf16[9,128,128], index: 1, kind: input, shape index: {}]   ;;  %s6641_s2 = inlined_call_operand.vmem [shape: f32[2,128], index: 2, kind: input, shape index: {}]   ;;  %s6642_s3 = inlined_call_operand.hbm [shape: bf16[9,128,128], index: 3, kind: input, shape index: {}]   ;;  %s6643_s4 = inlined_call_operand.hbm [shape: f32[2,128], index: 4, kind: input, shape index: {}]   ;;  %s6644_s5 = inlined_call_operand.hbm [shape: bf16[9,128,128], index: 5, kind: input, shape index: {}]   ;;  %s6645_s6 = inlined_call_operand.hbm [shape: f32[2,128], index: 6, kind: input, shape index: {}]   ;;  %s6646_s7 = inlined_call_operand.vmem [shape: bf16[128,128], index: 7, kind: input, shape index: {}]   ;;  %s6647_s8 = inlined_call_operand.hbm [shape: f32[1,128], index: 8, kind: input, shape index: {}]   ;;  %s6648_s9 = inlined_call_operand.vmem [shape: f32[2,3,3,128], index: 9, kind: output, shape index: {}]  }
   0x1   :  { %15 = vsyncpa [#allocation7], 0 }
   0x2   :  { %16 = vsyncpa [#allocation10], 0  ;;  %s5698_s30 = smov 0  }
   0x3 LB: > { %s5630_s10 = smov [#allocation6]   ;;  %s5704_s12 = sadd.s32 4294967295, %s5608_s30   ;;  %s5608_s30 = sphi %s5698_s30, %s22_s30  }
   0x4   : > { %s279_s11 = sshll.u32 %s5630_s10, 4  ;;  %p3865_p0 = scmp.ge.s32.totalorder %s5608_s30, 1  ;;  %s5709_s11 = int_to_ptr.vmem [resolvable:$true] %s279_s11 }
   0x5   : > { %p247_p1 = scmp.lt.s32.totalorder %s5608_s30, 3  ;;  %p6649_p2 = scmp.eq.s32.totalorder %s5704_s12, 0 }
   0x6   : > { %s5631_s14 = smov [#allocation9]   ;;  %s5632_s16 = smov [#allocation4]  }
   0x7   : > { %p5711_p3 = pnand %p3865_p0, %p247_p1  ;;  %s303_s15 = sshll.u32 %s5631_s14, 4  ;;  %s5717_s15 = int_to_ptr.vmem [resolvable:$true] %s303_s15 }
   0x8   : > { %s265_s17 = sshll.u32 %s5632_s16, 4  ;;  %s5633_s19 = smov [#allocation8]   ;;  %s5725_s17 = int_to_ptr.vmem [resolvable:$true] %s265_s17 }
   0x9   : > { %s6651_s13 = scalar_select %p5711_p3, 1, 0 }
   0xa   : > { %p5118_p4 = pneg %p5711_p3  ;;  %s5727_s20 = sshll.u32 %s5633_s19, 4  ;;  %s290_s20 = int_to_ptr.vmem [resolvable:$true] %s5727_s20 }
   0xb   : > { %s5430_s23 = scalar_lea.hbm %s6643_s4, 32 }
   0xc   : > { %p5721_p5 = pnand %p6649_p2, %p5118_p4  ;;  %p5431_p6 = scmp.ne.s32.totalorder %s6643_s4, %s5430_s23 }
   0xd   : > { %p5437_p10 = scmp.lt.u32.totalorder %s5430_s23, %s6643_s4 }
   0xe   : > { %p5737_p7 = pneg %p5721_p5 }
  0x10   : > { %p5433_p8 = pnand %p5737_p7, %p5431_p6 }
  0x12   : > { %p5434_p9 = pneg %p5433_p8 }
  0x14   : > { %p5439_p11 = pnand %p5437_p10, %p5434_p9 }
  0x16   : > { %5442 = shalt.err (!%p5439_p11)
}
  0x17   : > { %s5443_s29 = scalar_lea.vmem %s5709_s11, 32  ;;  %p5451_p1 = scmp.lt.s32.totalorder %s5709_s11, %s5709_s11 }
  0x18   : > { %p5444_p12 = scmp.ne.s32.totalorder %s5709_s11, %s5443_s29  ;;  %p5452_p4 = scmp.lt.s32.totalorder %s5443_s29, %s5443_s29 }
  0x1a   : > { %p5446_p13 = pnand %p5444_p12, %p5737_p7  ;;  %p5453_p6 = por %p5452_p4, %p5451_p1 }
  0x1c   : > { %p5447_p0 = pneg %p5446_p13 }
  0x1e   : > { %p5454_p8 = pnand %p5453_p6, %p5447_p0 }
  0x20   : > { %5457 = shalt.err (!%p5454_p8)
}
  0x21   : > { %5124 = dma.hbm_to_vmem [thread:$0]  (!%p5721_p5), %s6643_s4, 32, %s5709_s11, [#allocation7]  }
  0x22   : > { %s5458_s21 = scalar_lea.hbm %s6645_s6, 32 }
  0x23   : > { %p5459_p9 = scmp.ne.s32.totalorder %s6645_s6, %s5458_s21  ;;  %p5465_p12 = scmp.lt.u32.totalorder %s5458_s21, %s6645_s6 }
  0x25   : > { %p5461_p10 = pnand %p5459_p9, %p5737_p7 }
  0x27   : > { %p5462_p11 = pneg %p5461_p10 }
  0x29   : > { %p5467_p13 = pnand %p5465_p12, %p5462_p11 }
  0x2b   : > { %5470 = shalt.err (!%p5467_p13)
}
  0x2c   : > { %s5471_s11 = scalar_lea.vmem %s5717_s15, 32  ;;  %p5479_p6 = scmp.lt.s32.totalorder %s5717_s15, %s5717_s15 }
  0x2d   : > { %p5472_p0 = scmp.ne.s32.totalorder %s5717_s15, %s5471_s11  ;;  %p5480_p8 = scmp.lt.s32.totalorder %s5471_s11, %s5471_s11 }
  0x2f   : > { %p5474_p1 = pnand %p5472_p0, %p5737_p7  ;;  %p5481_p9 = por %p5480_p8, %p5479_p6 }
  0x31   : > { %p5475_p4 = pneg %p5474_p1 }
  0x33   : > { %p5482_p10 = pnand %p5481_p9, %p5475_p4 }
  0x35   : > { %5485 = shalt.err (!%p5482_p10)
}
  0x36   : > { %5130 = dma.hbm_to_vmem [thread:$0]  (!%p5721_p5), %s6645_s6, 32, %s5717_s15, [#allocation10]  }
  0x37   : > { %s5486_s14 = scalar_lea.hbm %s6642_s3, 9216 }
  0x38   : > { %p5487_p11 = scmp.ne.s32.totalorder %s6642_s3, %s5486_s14  ;;  %p5493_p0 = scmp.lt.u32.totalorder %s5486_s14, %s6642_s3 }
  0x3a   : > { %p5489_p12 = pnand %p5487_p11, %p5737_p7 }
  0x3c   : > { %p5490_p13 = pneg %p5489_p12 }
  0x3e   : > { %p5495_p1 = pnand %p5493_p0, %p5490_p13 }
  0x40   : > { %5498 = shalt.err (!%p5495_p1)
}
  0x41   : > { %s5499_s15 = scalar_lea.vmem %s5725_s17, 9216  ;;  %p5507_p9 = scmp.lt.s32.totalorder %s5725_s17, %s5725_s17 }
  0x42   : > { %p5500_p4 = scmp.ne.s32.totalorder %s5725_s17, %s5499_s15  ;;  %p5508_p10 = scmp.lt.s32.totalorder %s5499_s15, %s5499_s15 }
  0x44   : > { %p5502_p6 = pnand %p5500_p4, %p5737_p7  ;;  %p5509_p11 = por %p5508_p10, %p5507_p9 }
  0x46   : > { %p5503_p8 = pneg %p5502_p6 }
  0x48   : > { %p5510_p12 = pnand %p5509_p11, %p5503_p8 }
  0x4a   : > { %5513 = shalt.err (!%p5510_p12)
}
  0x4b   : > { %s5634_s23 = smov 64   ;;  %s5635_s24 = smov 4  }
  0x4c   : > { %5121 = dma.hbm_to_vmem [thread:$0]  (!%p5721_p5), %s6642_s3, 9216, %s5725_s17, [#allocation5], %s5634_s23, %s5634_s23, %s5635_s24  }
  0x4d   : > { %s5514_s29 = scalar_lea.hbm %s6644_s5, 9216 }
  0x4e   : > { %p5515_p13 = scmp.ne.s32.totalorder %s6644_s5, %s5514_s29  ;;  %p5521_p4 = scmp.lt.u32.totalorder %s5514_s29, %s6644_s5 }
  0x50   : > { %p5517_p0 = pnand %p5515_p13, %p5737_p7 }
  0x52   : > { %p5518_p1 = pneg %p5517_p0 }
  0x54   : > { %p5523_p6 = pnand %p5521_p4, %p5518_p1 }
  0x56   : > { %5526 = shalt.err (!%p5523_p6)
}
  0x57   : > { %s5527_s21 = scalar_lea.vmem %s290_s20, 9216  ;;  %p5535_p11 = scmp.lt.s32.totalorder %s290_s20, %s290_s20 }
  0x58   : > { %p5528_p8 = scmp.ne.s32.totalorder %s290_s20, %s5527_s21  ;;  %p5536_p12 = scmp.lt.s32.totalorder %s5527_s21, %s5527_s21 }
  0x5a   : > { %p5530_p9 = pnand %p5528_p8, %p5737_p7  ;;  %p5537_p2 = por %p5536_p12, %p5535_p11 }
  0x5c   : > { %p5531_p10 = pneg %p5530_p9 }
  0x5e   : > { %p5538_p3 = pnand %p5537_p2, %p5531_p10 }
  0x60   : > { %5541 = shalt.err (!%p5538_p3)
}
  0x61   : > { %5127 = dma.hbm_to_vmem [thread:$0]  (!%p5721_p5), %s6644_s5, 9216, %s290_s20, [#allocation7], %s5634_s23, %s5634_s23, %s5635_s24  }
  0x62   : > { %s5636_s15 = smov [#allocation11]   ;;  %s5542_s28 = scalar_lea.hbm %s6647_s8, 16 }
  0x63   : > { %s317_s25 = sshll.u32 %s5636_s15, 4  ;;  %p5543_p13 = scmp.ne.s32.totalorder %s6647_s8, %s5542_s28  ;;  %s318_s25 = int_to_ptr.vmem [resolvable:$true] %s317_s25 }
  0x64   : > { %p5549_p0 = scmp.lt.u32.totalorder %s5542_s28, %s6647_s8 }
  0x65   : > { %p5545_p2 = pnand %p5543_p13, %p5737_p7 }
  0x67   : > { %p5546_p3 = pneg %p5545_p2 }
  0x69   : > { %p5551_p1 = pnand %p5549_p0, %p5546_p3 }
  0x6b   : > { %5554 = shalt.err (!%p5551_p1)
}
  0x6c   : > { %s5555_s20 = scalar_lea.vmem %s318_s25, 16  ;;  %s5562_s23 = scalar_lea.vmem %s318_s25, 32 }
  0x6d   : > { %p5556_p4 = scmp.ne.s32.totalorder %s318_s25, %s5555_s20  ;;  %p5563_p9 = scmp.lt.s32.totalorder %s318_s25, %s318_s25 }
  0x6e   : > { %p5564_p10 = scmp.lt.s32.totalorder %s5562_s23, %s5555_s20 }
  0x6f   : > { %p5558_p6 = pnand %p5556_p4, %p5737_p7 }
  0x70   : > { %p5565_p11 = por %p5564_p10, %p5563_p9 }
  0x71   : > { %p5559_p8 = pneg %p5558_p6 }
  0x73   : > { %p5566_p12 = pnand %p5565_p11, %p5559_p8 }
  0x75   : > { %5569 = shalt.err (!%p5566_p12)
}
  0x76   : > { %5133 = dma.hbm_to_vmem [thread:$0]  (!%p5721_p5), %s6647_s8, 16, %s318_s25, [#allocation10]  }
  0x77   : > { %p6654_p13 = scmp.ne.s32.totalorder %s6651_s13, 0 }
  0x78   : > { %p6655_p2 = scmp.eq.s32.totalorder (!%p6654_p13), %s5704_s12, 0 }
  0x79   : > { %338 = sbr.rel (%p6654_p13) target bundleno = 1834 (0x72a), region = 56 }
  0x80   : > { %5595 = dma.done.wait (%p6655_p2), [#allocation5], 9216   ;;  %p6656_p7 = pmov %p6655_p2 }
  0x81   : > { %p6657_p3 = pmov %p6655_p2 }
  0x82   : > { %5597 = vsyncadd (%p6656_p7), [#allocation5], 4294958080 }
  0x83   : > { %5599 = dma.done.wait (%p6657_p3), [#allocation7], 9248   ;;  %p6658_p0 = pmov %p6655_p2 }
  0x85   : > { %5601 = vsyncadd (%p6658_p0), [#allocation7], 4294958048  ;;  %p6659_p1 = pmov %p6658_p0 }
  0x86   : > { %p6660_p5 = pmov %p6658_p0 }
  0x87   : > { %5603 = dma.done.wait (%p6659_p1), [#allocation10], 48  }
  0x88   : > { %5605 = vsyncadd (%p6660_p5), [#allocation10], 4294967248  ;;  %p390_p4 = scmp.lt.s32.totalorder %s5704_s12, 1  ;;  %v5637_v0 = vmov 0.0   ;;  %vm465_vm0 = vcmask 23552   ;;  %s5943_s29 = smov 0  }
  0x89   : > { %401 = vst [vmem:[#allocation2] sm:$0xff] %v5637_v0  ;;  %402 = vst [vmem:[#allocation2 + $0x8] sm:$0xff] %v5637_v0  ;;  %v5872_v1 = vld [vmem:[%s6641_s2] ss:$0 sm:$0xff]  ;;  %v5877_v2 = vld [vmem:[%s6641_s2 + $0x1] ss:$0 sm:$0xff] }
  0x8a   : > { %403 = vst [vmem:[#allocation2 + $0x10] sm:$0xff] %v5637_v0  ;;  %404 = vst [vmem:[#allocation2 + $0x18] sm:$0xff] %v5637_v0  ;;  %s6662_s12 = smov (!%p390_p4, %s5704_s12), 1 }
  0x8b   : > { %405 = vst [vmem:[#allocation2 + $0x20] sm:$0xff] %v5637_v0  ;;  %406 = vst [vmem:[#allocation2 + $0x28] sm:$0xff] %v5637_v0  ;;  %s4283_s13 = sshll.u32 %s6662_s12, 8  ;;  %s5097_s18 = smul.u32 12, %s6662_s12 }
  0x8c   : > { %407 = vst [vmem:[#allocation2 + $0x30] sm:$0xff] %v5637_v0  ;;  %408 = vst [vmem:[#allocation2 + $0x38] sm:$0xff] %v5637_v0  ;;  %s5862_s17 = scalar_lea.vmem %s6639_s0, %s4283_s13 }
  0x8d   : > { %409 = vst [vmem:[#allocation2 + $0x40] sm:$0xff] %v5637_v0  ;;  %410 = vst [vmem:[#allocation2 + $0x48] sm:$0xff] %v5637_v0  ;;  %s5867_s25 = scalar_lea.vmem %s6648_s9, %s5097_s18  ;;  %v433_v3 = vld [vmem:[%s5862_s17] sm:$0xff]  ;;  %v434_v4 = vld [vmem:[%s5862_s17 + $0x8] sm:$0xff] }
  0x8e   : > { %411 = vst [vmem:[#allocation2 + $0x50] sm:$0xff] %v5637_v0  ;;  %412 = vst [vmem:[#allocation2 + $0x58] sm:$0xff] %v5637_v0  ;;  %v435_v5 = vld [vmem:[%s5862_s17 + $0x10] sm:$0xff]  ;;  %v436_v6 = vld [vmem:[%s5862_s17 + $0x18] sm:$0xff] }
  0x8f   : > { %413 = vst [vmem:[#allocation2 + $0x60] sm:$0xff] %v5637_v0  ;;  %414 = vst [vmem:[#allocation2 + $0x68] sm:$0xff] %v5637_v0  ;;  %v437_v7 = vld [vmem:[%s5862_s17 + $0x20] sm:$0xff]  ;;  %v438_v8 = vld [vmem:[%s5862_s17 + $0x28] sm:$0xff] }
  0x90   : > { %415 = vst [vmem:[#allocation2 + $0x70] sm:$0xff] %v5637_v0  ;;  %416 = vst [vmem:[#allocation2 + $0x78] sm:$0xff] %v5637_v0  ;;  %v439_v9 = vld [vmem:[%s5862_s17 + $0x30] sm:$0xff]  ;;  %v440_v10 = vld [vmem:[%s5862_s17 + $0x38] sm:$0xff] }
  0x91   : > { %417 = vst [vmem:[#allocation2 + $0x80] sm:$0xff] %v5637_v0  ;;  %418 = vst [vmem:[#allocation2 + $0x88] sm:$0xff] %v5637_v0  ;;  %v441_v11 = vld [vmem:[%s5862_s17 + $0x40] sm:$0xff]  ;;  %v442_v12 = vld [vmem:[%s5862_s17 + $0x48] sm:$0xff] }
  0x92   : > { %419 = vst [vmem:[#allocation2 + $0x90] sm:$0xff] %v5637_v0  ;;  %420 = vst [vmem:[#allocation2 + $0x98] sm:$0xff] %v5637_v0  ;;  %v443_v13 = vld [vmem:[%s5862_s17 + $0x50] sm:$0xff]  ;;  %v444_v14 = vld [vmem:[%s5862_s17 + $0x58] sm:$0xff] }
  0x93   : > { %421 = vst [vmem:[#allocation2 + $0xa0] sm:$0xff] %v5637_v0  ;;  %422 = vst [vmem:[#allocation2 + $0xa8] sm:$0xff] %v5637_v0  ;;  %v445_v15 = vld [vmem:[%s5862_s17 + $0x60] sm:$0xff]  ;;  %v446_v16 = vld [vmem:[%s5862_s17 + $0x68] sm:$0xff] }
  0x94   : > { %423 = vst [vmem:[#allocation2 + $0xb0] sm:$0xff] %v5637_v0  ;;  %424 = vst [vmem:[#allocation2 + $0xb8] sm:$0xff] %v5637_v0  ;;  %v447_v17 = vld [vmem:[%s5862_s17 + $0x70] sm:$0xff]  ;;  %v448_v18 = vld [vmem:[%s5862_s17 + $0x78] sm:$0xff] }
  0x95   : > { %425 = vst [vmem:[#allocation2 + $0xc0] sm:$0xff] %v5637_v0  ;;  %426 = vst [vmem:[#allocation2 + $0xc8] sm:$0xff] %v5637_v0  ;;  %v449_v19 = vld [vmem:[%s5862_s17 + $0x80] sm:$0xff]  ;;  %v450_v20 = vld [vmem:[%s5862_s17 + $0x88] sm:$0xff] }
  0x96   : > { %427 = vst [vmem:[#allocation2 + $0xd0] sm:$0xff] %v5637_v0  ;;  %428 = vst [vmem:[#allocation2 + $0xd8] sm:$0xff] %v5637_v0  ;;  %v451_v21 = vld [vmem:[%s5862_s17 + $0x90] sm:$0xff]  ;;  %v452_v22 = vld [vmem:[%s5862_s17 + $0x98] sm:$0xff] }
  0x97   : > { %429 = vst [vmem:[#allocation2 + $0xe0] sm:$0xff] %v5637_v0  ;;  %430 = vst [vmem:[#allocation2 + $0xe8] sm:$0xff] %v5637_v0  ;;  %v453_v23 = vld [vmem:[%s5862_s17 + $0xa0] sm:$0xff]  ;;  %v454_v24 = vld [vmem:[%s5862_s17 + $0xa8] sm:$0xff] }
  0x98   : > { %431 = vst [vmem:[#allocation2 + $0xf0] sm:$0xff] %v5637_v0  ;;  %432 = vst [vmem:[#allocation2 + $0xf8] sm:$0xff] %v5637_v0  ;;  %v455_v25 = vld [vmem:[%s5862_s17 + $0xb0] sm:$0xff]  ;;  %v456_v26 = vld [vmem:[%s5862_s17 + $0xb8] sm:$0xff] }
  0x99   : > { %466 = vst.msk [vmem:[#allocation2] sm:$0xff] %vm465_vm0, %v433_v3  ;;  %467 = vst.msk [vmem:[#allocation2 + $0x8] sm:$0xff] %vm465_vm0, %v434_v4  ;;  %v457_v27 = vld [vmem:[%s5862_s17 + $0xc0] sm:$0xff]  ;;  %v458_v28 = vld [vmem:[%s5862_s17 + $0xc8] sm:$0xff] }
  0x9a   : > { %468 = vst.msk [vmem:[#allocation2 + $0x10] sm:$0xff] %vm465_vm0, %v435_v5  ;;  %469 = vst.msk [vmem:[#allocation2 + $0x18] sm:$0xff] %vm465_vm0, %v436_v6  ;;  %v459_v29 = vld [vmem:[%s5862_s17 + $0xd0] sm:$0xff]  ;;  %v460_v30 = vld [vmem:[%s5862_s17 + $0xd8] sm:$0xff] }
  0x9b   : > { %470 = vst.msk [vmem:[#allocation2 + $0x20] sm:$0xff] %vm465_vm0, %v437_v7  ;;  %471 = vst.msk [vmem:[#allocation2 + $0x28] sm:$0xff] %vm465_vm0, %v438_v8  ;;  %v461_v31 = vld [vmem:[%s5862_s17 + $0xe0] sm:$0xff]  ;;  %v462_v32 = vld [vmem:[%s5862_s17 + $0xe8] sm:$0xff] }
  0x9c   : > { %472 = vst.msk [vmem:[#allocation2 + $0x30] sm:$0xff] %vm465_vm0, %v439_v9  ;;  %473 = vst.msk [vmem:[#allocation2 + $0x38] sm:$0xff] %vm465_vm0, %v440_v10  ;;  %v463_v33 = vld [vmem:[%s5862_s17 + $0xf0] sm:$0xff]  ;;  %v464_v34 = vld [vmem:[%s5862_s17 + $0xf8] sm:$0xff] }
  0x9d   : > { %474 = vst.msk [vmem:[#allocation2 + $0x40] sm:$0xff] %vm465_vm0, %v441_v11  ;;  %475 = vst.msk [vmem:[#allocation2 + $0x48] sm:$0xff] %vm465_vm0, %v442_v12 }
  0x9e   : > { %476 = vst.msk [vmem:[#allocation2 + $0x50] sm:$0xff] %vm465_vm0, %v443_v13  ;;  %477 = vst.msk [vmem:[#allocation2 + $0x58] sm:$0xff] %vm465_vm0, %v444_v14 }
  0x9f   : > { %478 = vst.msk [vmem:[#allocation2 + $0x60] sm:$0xff] %vm465_vm0, %v445_v15  ;;  %479 = vst.msk [vmem:[#allocation2 + $0x68] sm:$0xff] %vm465_vm0, %v446_v16 }
  0xa0   : > { %480 = vst.msk [vmem:[#allocation2 + $0x70] sm:$0xff] %vm465_vm0, %v447_v17  ;;  %481 = vst.msk [vmem:[#allocation2 + $0x78] sm:$0xff] %vm465_vm0, %v448_v18 }
  0xa1   : > { %482 = vst.msk [vmem:[#allocation2 + $0x80] sm:$0xff] %vm465_vm0, %v449_v19  ;;  %483 = vst.msk [vmem:[#allocation2 + $0x88] sm:$0xff] %vm465_vm0, %v450_v20 }
  0xa2   : > { %484 = vst.msk [vmem:[#allocation2 + $0x90] sm:$0xff] %vm465_vm0, %v451_v21  ;;  %485 = vst.msk [vmem:[#allocation2 + $0x98] sm:$0xff] %vm465_vm0, %v452_v22 }
  0xa3   : > { %486 = vst.msk [vmem:[#allocation2 + $0xa0] sm:$0xff] %vm465_vm0, %v453_v23  ;;  %487 = vst.msk [vmem:[#allocation2 + $0xa8] sm:$0xff] %vm465_vm0, %v454_v24 }
  0xa4   : > { %488 = vst.msk [vmem:[#allocation2 + $0xb0] sm:$0xff] %vm465_vm0, %v455_v25  ;;  %489 = vst.msk [vmem:[#allocation2 + $0xb8] sm:$0xff] %vm465_vm0, %v456_v26 }
  0xa5   : > { %490 = vst.msk [vmem:[#allocation2 + $0xc0] sm:$0xff] %vm465_vm0, %v457_v27  ;;  %491 = vst.msk [vmem:[#allocation2 + $0xc8] sm:$0xff] %vm465_vm0, %v458_v28 }
  0xa6   : > { %492 = vst.msk [vmem:[#allocation2 + $0xd0] sm:$0xff] %vm465_vm0, %v459_v29  ;;  %493 = vst.msk [vmem:[#allocation2 + $0xd8] sm:$0xff] %vm465_vm0, %v460_v30 }
  0xa7   : > { %494 = vst.msk [vmem:[#allocation2 + $0xe0] sm:$0xff] %vm465_vm0, %v461_v31  ;;  %495 = vst.msk [vmem:[#allocation2 + $0xe8] sm:$0xff] %vm465_vm0, %v462_v32 }
  0xa8   : > { %496 = vst.msk [vmem:[#allocation2 + $0xf0] sm:$0xff] %vm465_vm0, %v463_v33  ;;  %497 = vst.msk [vmem:[#allocation2 + $0xf8] sm:$0xff] %vm465_vm0, %v464_v34 }
  0xa9 LB: >> { %v5210_v35 = vld [vmem:[%s6640_s1 + $0x40] sm:$0xff]   ;;  %v5638_v36 = vmov 0.0   ;;  %v5212_v38 = vld [vmem:[%s6640_s1 + $0x48] sm:$0xff]   ;;  %vm5639_vm1 = vmmov 0   ;;  %v5214_v40 = vld [vmem:[%s6640_s1 + $0x50] sm:$0xff]   ;;  %s3881_s23 = sshll.u32 %s5612_s29, 4  ;;  %s5612_s29 = sphi %s5943_s29, %s505_s29  }
  0xaa   : >> { %4537 = vmatprep.subr.bf16.mxu0 %v5638_v36  ;;  %4557 = vmatprep.subr.bf16.mxu1 %v5638_v36  ;;  %v5211_v37 = vld [vmem:[%s6640_s1] sm:$0xff]   ;;  %v5213_v39 = vld [vmem:[%s6640_s1 + $0x8] sm:$0xff]   ;;  %v5215_v41 = vld [vmem:[%s6640_s1 + $0x10] sm:$0xff]   ;;  %s6014_s15 = scalar_lea.vmem [#allocation2], %s3881_s23  ;;  %s505_s29 = sadd.s32 1, %s5612_s29  }
  0xab   : >> { %4538 = vmatpush3.bf16.msra.mxu0 %v5210_v35  ;;  %4553 = vmatprep.mubr.msk.bf16.mxu0 %vm5639_vm1, %v5638_v36  ;;  %v5216_v42 = vld [vmem:[%s6640_s1 + $0x58] sm:$0xff]   ;;  %v5218_v44 = vld [vmem:[%s6640_s1 + $0x60] sm:$0xff]   ;;  %v5220_v46 = vld [vmem:[%s6640_s1 + $0x68] sm:$0xff]   ;;  %p502_p6 = scmp.ge.s32.totalorder %s505_s29, 14  }
  0xac   : >> { %4558 = vmatpush3.bf16.msra.mxu1 %v5211_v37  ;;  %4539 = vmatprep.subr.bf16.mxu0 %v5638_v36  ;;  %v5217_v43 = vld [vmem:[%s6640_s1 + $0x18] sm:$0xff]   ;;  %v5219_v45 = vld [vmem:[%s6640_s1 + $0x20] sm:$0xff]   ;;  %v5221_v47 = vld [vmem:[%s6640_s1 + $0x28] sm:$0xff]   ;;  %s5614_s27 = smov (%p502_p6), 0  }
  0xad   : >> { %4559 = vmatprep.subr.bf16.mxu1 %v5638_v36  ;;  %4573 = vmatprep.mubr.msk.bf16.mxu1 %vm5639_vm1, %v5638_v36  ;;  %v5222_v48 = vld [vmem:[%s6640_s1 + $0x70] sm:$0xff]   ;;  %v5224_v50 = vld [vmem:[%s6640_s1 + $0x78] sm:$0xff]   ;;  %v5226_v58 = vld [vmem:[%s6640_s1 + $0x80] sm:$0xff]  }
  0xae   : >> { %v5223_v49 = vld [vmem:[%s6640_s1 + $0x30] sm:$0xff]   ;;  %v5225_v52 = vld [vmem:[%s6640_s1 + $0x38] sm:$0xff]   ;;  %v5227_v59 = vld [vmem:[%s6640_s1 + $0xc0] sm:$0xff]  }
  0xaf   : >> { %4540 = vmatpush3.bf16.msra.mxu0 %v5212_v38  ;;  %v527_v51 = vld [vmem:[%s6014_s15 + $0x1] sm:$0xff]  ;;  %v528_v53 = vld [vmem:[%s6014_s15 + $0x9] sm:$0x3f]  ;;  %v5230_v62 = vld [vmem:[%s6640_s1 + $0x90] sm:$0xff]  }
  0xb0   : >> { %4560 = vmatpush3.bf16.msra.mxu1 %v5213_v39  ;;  %4541 = vmatprep.subr.bf16.mxu0 %v5638_v36  ;;  %v508_v54 = vld [vmem:[%s6014_s15] sm:$0xff]  ;;  %v509_v55 = vld [vmem:[%s6014_s15 + $0x8] sm:$0x3f]  ;;  %v529_v56 = vpack.c.bf16 %v528_v53, %v527_v51  ;;  %v5231_v63 = vld [vmem:[%s6640_s1 + $0xd0] sm:$0xff]  }
  0xb1   : >> { %4561 = vmatprep.subr.bf16.mxu1 %v5638_v36  ;;  %v510_v57 = vpack.c.bf16 %v509_v55, %v508_v54  ;;  %v5228_v60 = vld [vmem:[%s6640_s1 + $0x88] sm:$0xff]   ;;  %v5232_v0 = vld [vmem:[%s6640_s1 + $0x98] sm:$0xff]   ;;  %v5234_v4 = vld [vmem:[%s6640_s1 + $0xa0] sm:$0xff]  }
  0xb2   : >> { %v5229_v61 = vld [vmem:[%s6640_s1 + $0xc8] sm:$0xff]   ;;  %v5233_v3 = vld [vmem:[%s6640_s1 + $0xd8] sm:$0xff]   ;;  %v5235_v5 = vld [vmem:[%s6640_s1 + $0xe0] sm:$0xff]  }
  0xb3   : >> { %4542 = vmatpush3.bf16.msra.mxu0 %v5214_v40  ;;  %v5236_v6 = vld [vmem:[%s6640_s1 + $0xa8] sm:$0xff]   ;;  %v5238_v8 = vld [vmem:[%s6640_s1 + $0xb0] sm:$0xff]   ;;  %v5240_v10 = vld [vmem:[%s6640_s1 + $0xb8] sm:$0xff]  }
  0xb4   : >> { %4562 = vmatpush3.bf16.msra.mxu1 %v5215_v41  ;;  %4543 = vmatprep.subr.bf16.mxu0 %v5638_v36  ;;  %v5237_v7 = vld [vmem:[%s6640_s1 + $0xe8] sm:$0xff]   ;;  %v5239_v9 = vld [vmem:[%s6640_s1 + $0xf0] sm:$0xff]   ;;  %v5241_v12 = vld [vmem:[%s6640_s1 + $0xf8] sm:$0xff]  }
  0xb5   : >> { %4563 = vmatprep.subr.bf16.mxu1 %v5638_v36  ;;  %v725_v11 = vld [vmem:[%s6014_s15 + $0x2] sm:$0xff]  ;;  %v726_v13 = vld [vmem:[%s6014_s15 + $0xa] sm:$0x3f]  ;;  %v3939_v14 = vld [vmem:[%s6014_s15 + $0x10] sm:$0xff] }
  0xb6   : >> { %v3940_v15 = vld [vmem:[%s6014_s15 + $0x18] sm:$0x3f]  ;;  %v727_v16 = vpack.c.bf16 %v726_v13, %v725_v11  ;;  %v5242_v17 = vld [vmem:[%s6640_s1 + $0x100] sm:$0xff]   ;;  %v5244_v20 = vld [vmem:[%s6640_s1 + $0x108] sm:$0xff]  }
  0xb7   : >> { %4544 = vmatpush3.bf16.msra.mxu0 %v5216_v42  ;;  %v841_v18 = vpack.c.bf16 %v3940_v15, %v3939_v14  ;;  %v5243_v19 = vld [vmem:[%s6640_s1 + $0x140] sm:$0xff]   ;;  %v5245_v21 = vld [vmem:[%s6640_s1 + $0x148] sm:$0xff]   ;;  %v5246_v22 = vld [vmem:[%s6640_s1 + $0x110] sm:$0xff]  }
  0xb8   : >> { %4564 = vmatpush3.bf16.msra.mxu1 %v5217_v43  ;;  %4545 = vmatprep.subr.bf16.mxu0 %v5638_v36  ;;  %v5247_v23 = vld [vmem:[%s6640_s1 + $0x150] sm:$0xff]   ;;  %v5248_v24 = vld [vmem:[%s6640_s1 + $0x118] sm:$0xff]   ;;  %v5250_v26 = vld [vmem:[%s6640_s1 + $0x120] sm:$0xff]  }
  0xb9   : >> { %4565 = vmatprep.subr.bf16.mxu1 %v5638_v36  ;;  %v5249_v25 = vld [vmem:[%s6640_s1 + $0x158] sm:$0xff]   ;;  %v5251_v27 = vld [vmem:[%s6640_s1 + $0x160] sm:$0xff]   ;;  %v5252_v28 = vld [vmem:[%s6640_s1 + $0x128] sm:$0xff]  }
  0xba   : >> { %v5253_v29 = vld [vmem:[%s6640_s1 + $0x168] sm:$0xff]   ;;  %v5254_v30 = vld [vmem:[%s6640_s1 + $0x130] sm:$0xff]   ;;  %v5256_v32 = vld [vmem:[%s6640_s1 + $0x138] sm:$0xff]  }
  0xbb   : >> { %4546 = vmatpush3.bf16.msra.mxu0 %v5218_v44  ;;  %v5255_v31 = vld [vmem:[%s6640_s1 + $0x170] sm:$0xff]   ;;  %v3966_v34 = vld [vmem:[%s6014_s15 + $0x19] sm:$0x3f]  ;;  %v5258_v40 = vld [vmem:[%s6640_s1 + $0x180] sm:$0xff]  }
  0xbc   : >> { %4566 = vmatpush3.bf16.msra.mxu1 %v5219_v45  ;;  %4547 = vmatprep.subr.bf16.mxu0 %v5638_v36  ;;  %v3965_v33 = vld [vmem:[%s6014_s15 + $0x11] sm:$0xff]  ;;  %v3992_v38 = vld [vmem:[%s6014_s15 + $0x1a] sm:$0x3f]  ;;  %v5259_v42 = vld [vmem:[%s6640_s1 + $0x1c0] sm:$0xff]  }
  0xbd   : >> { %4567 = vmatprep.subr.bf16.mxu1 %v5638_v36  ;;  %v5257_v35 = vld [vmem:[%s6640_s1 + $0x178] sm:$0xff]   ;;  %v952_v39 = vpack.c.bf16 %v3966_v34, %v3965_v33  ;;  %v5260_v43 = vld [vmem:[%s6640_s1 + $0x188] sm:$0xff]   ;;  %v5262_v45 = vld [vmem:[%s6640_s1 + $0x190] sm:$0xff]  }
  0xbe   : >> { %v3991_v37 = vld [vmem:[%s6014_s15 + $0x12] sm:$0xff]  ;;  %v5261_v44 = vld [vmem:[%s6640_s1 + $0x1c8] sm:$0xff]  }
  0xbf   : >> { %4548 = vmatpush3.bf16.msra.mxu0 %v5220_v46  ;;  %v1063_v41 = vpack.c.bf16 %v3992_v38, %v3991_v37  ;;  %v5263_v46 = vld [vmem:[%s6640_s1 + $0x1d0] sm:$0xff]   ;;  %v5268_v51 = vld [vmem:[%s6640_s1 + $0x1a8] sm:$0xff]   ;;  %v5272_v55 = vld [vmem:[%s6640_s1 + $0x1b8] sm:$0xff]  }
  0xc0   : >> { %4568 = vmatpush3.bf16.msra.mxu1 %v5221_v47  ;;  %4549 = vmatprep.subr.bf16.mxu0 %v5638_v36  ;;  %v5264_v47 = vld [vmem:[%s6640_s1 + $0x198] sm:$0xff]   ;;  %v5270_v53 = vld [vmem:[%s6640_s1 + $0x1b0] sm:$0xff]  }
  0xc1   : >> { %4569 = vmatprep.subr.bf16.mxu1 %v5638_v36  ;;  %v5271_v54 = vld [vmem:[%s6640_s1 + $0x1f0] sm:$0xff]  }
  0xc3   : >> { %4550 = vmatpush3.bf16.msra.mxu0 %v5222_v48  ;;  %v5265_v48 = vld [vmem:[%s6640_s1 + $0x1d8] sm:$0xff]  }
  0xc4   : >> { %4570 = vmatpush3.bf16.msra.mxu1 %v5223_v49  ;;  %4551 = vmatprep.subr.bf16.mxu0 %v5638_v36  ;;  %v5266_v49 = vld [vmem:[%s6640_s1 + $0x1a0] sm:$0xff]  }
  0xc5   : >> { %4571 = vmatprep.subr.bf16.mxu1 %v5638_v36 }
  0xc7   : >> { %4552 = vmatpush3.bf16.msra.mxu0 %v5224_v50  ;;  %v5267_v50 = vld [vmem:[%s6640_s1 + $0x1e0] sm:$0xff]  }
  0xc8   : >> { %4572 = vmatpush3.bf16.msra.mxu1 %v5225_v52  ;;  %4577 = vmatprep.subr.bf16.mxu0 %v5638_v36  ;;  %v5269_v52 = vld [vmem:[%s6640_s1 + $0x1e8] sm:$0xff]  }
  0xc9   : >> { %4597 = vmatprep.subr.bf16.mxu1 %v5638_v36 }
  0xca   : >> { %4554 = vmatmul.mubr.bf16.vlgmr.msra.gmra.mrb[0].mxu0 %v529_v56  ;;  %v4018_v56 = vld [vmem:[%s6014_s15 + $0x20] sm:$0xff] }
  0xcb   : >> { %4574 = vmatmul.mubr.bf16.vlgmr.msra.gmra.mrb[0].mxu1 %v510_v57  ;;  %4578 = vmatpush3.bf16.msra.mxu0 %v5226_v58  ;;  %v4019_v57 = vld [vmem:[%s6014_s15 + $0x28] sm:$0x3f]  ;;  %v5273_v58 = vld [vmem:[%s6640_s1 + $0x1f8] sm:$0xff]  }
  0xcc   : >> { %4598 = vmatpush3.bf16.msra.mxu1 %v5227_v59  ;;  %4579 = vmatprep.subr.bf16.mxu0 %v5638_v36  ;;  %v4044_v59 = vld [vmem:[%s6014_s15 + $0x21] sm:$0xff] }
  0xcd   : >> { %4599 = vmatprep.subr.bf16.mxu1 %v5638_v36  ;;  %4593 = vmatprep.mubr.msk.bf16.mxu0 %vm5639_vm1, %v5638_v36 }
  0xce   : >> { %4613 = vmatprep.mubr.msk.bf16.mxu1 %vm5639_vm1, %v5638_v36 }
  0xcf   : >> { %4580 = vmatpush3.bf16.msra.mxu0 %v5228_v60  ;;  %v4045_v60 = vld [vmem:[%s6014_s15 + $0x29] sm:$0x3f] }
  0xd0   : >> { %4600 = vmatpush3.bf16.msra.mxu1 %v5229_v61  ;;  %4581 = vmatprep.subr.bf16.mxu0 %v5638_v36  ;;  %v1177_v61 = vpack.c.bf16 %v4019_v57, %v4018_v56 }
  0xd1   : >> { %4601 = vmatprep.subr.bf16.mxu1 %v5638_v36 }
  0xd3   : >> { %4582 = vmatpush3.bf16.msra.mxu0 %v5230_v62  ;;  %v5274_v62 = vld [vmem:[%s6640_s1 + $0x200] sm:$0xff]  }
  0xd4   : >> { %4602 = vmatpush3.bf16.msra.mxu1 %v5231_v63  ;;  %4583 = vmatprep.subr.bf16.mxu0 %v5638_v36  ;;  %v1288_v63 = vpack.c.bf16 %v4045_v60, %v4044_v59 }
  0xd5   : >> { %4603 = vmatprep.subr.bf16.mxu1 %v5638_v36 }
  0xd7   : >> { %4584 = vmatpush3.bf16.msra.mxu0 %v5232_v0  ;;  %v5275_v0 = vld [vmem:[%s6640_s1 + $0x208] sm:$0xff]  }
  0xd8   : >> { %4604 = vmatpush3.bf16.msra.mxu1 %v5233_v3  ;;  %4585 = vmatprep.subr.bf16.mxu0 %v5638_v36  ;;  %v5276_v3 = vld [vmem:[%s6640_s1 + $0x210] sm:$0xff]  }
  0xd9   : >> { %4605 = vmatprep.subr.bf16.mxu1 %v5638_v36 }
  0xdb   : >> { %4586 = vmatpush3.bf16.msra.mxu0 %v5234_v4  ;;  %v5277_v4 = vld [vmem:[%s6640_s1 + $0x218] sm:$0xff]  }
  0xdc   : >> { %4606 = vmatpush3.bf16.msra.mxu1 %v5235_v5  ;;  %4587 = vmatprep.subr.bf16.mxu0 %v5638_v36  ;;  %v5278_v5 = vld [vmem:[%s6640_s1 + $0x220] sm:$0xff]  }
  0xdd   : >> { %4607 = vmatprep.subr.bf16.mxu1 %v5638_v36 }
  0xdf   : >> { %4588 = vmatpush3.bf16.msra.mxu0 %v5236_v6  ;;  %v5279_v6 = vld [vmem:[%s6640_s1 + $0x228] sm:$0xff]  }
  0xe0   : >> { %4608 = vmatpush3.bf16.msra.mxu1 %v5237_v7  ;;  %4589 = vmatprep.subr.bf16.mxu0 %v5638_v36  ;;  %v5280_v7 = vld [vmem:[%s6640_s1 + $0x230] sm:$0xff]  }
  0xe1   : >> { %4609 = vmatprep.subr.bf16.mxu1 %v5638_v36 }
  0xe3   : >> { %4590 = vmatpush3.bf16.msra.mxu0 %v5238_v8  ;;  %v5281_v8 = vld [vmem:[%s6640_s1 + $0x238] sm:$0xff]  }
  0xe4   : >> { %4610 = vmatpush3.bf16.msra.mxu1 %v5239_v9  ;;  %4591 = vmatprep.subr.bf16.mxu0 %v5638_v36  ;;  %v4070_v9 = vld [vmem:[%s6014_s15 + $0x22] sm:$0xff] }
  0xe5   : >> { %4611 = vmatprep.subr.bf16.mxu1 %v5638_v36 }
  0xe7   : >> { %4592 = vmatpush3.bf16.msra.mxu0 %v5240_v10  ;;  %v4071_v10 = vld [vmem:[%s6014_s15 + $0x2a] sm:$0x3f]  ;;  %s1524_s15 = scalar_lea.vmem [#allocation3], %s3881_s23 }
  0xe8   : >> { %4612 = vmatpush3.bf16.msra.mxu1 %v5241_v12  ;;  %4617 = vmatprep.subr.bf16.mxu0 %v5638_v36  ;;  %v1399_v11 = vpack.c.bf16 %v4071_v10, %v4070_v9 }
  0xe9   : >> { %4637 = vmatprep.subr.bf16.mxu1 %v5638_v36 }
  0xea   : >> { %4594 = vmatmul.mubr.bf16.vlgmr.msra.gmra.mrb[4].mxu0 %v727_v16 }
  0xeb   : >> { %4618 = vmatpush3.bf16.msra.mxu0 %v5242_v17  ;;  %4614 = vmatmul.mubr.bf16.vlgmr.msra.gmra.mrb[4].mxu1 %v841_v18 }
  0xec   : >> { %4638 = vmatpush3.bf16.msra.mxu1 %v5243_v19  ;;  %4619 = vmatprep.subr.bf16.mxu0 %v5638_v36 }
  0xed   : >> { %4639 = vmatprep.subr.bf16.mxu1 %v5638_v36  ;;  %4633 = vmatprep.mubr.msk.bf16.mxu0 %vm5639_vm1, %v5638_v36 }
  0xee   : >> { %4653 = vmatprep.mubr.msk.bf16.mxu1 %vm5639_vm1, %v5638_v36 }
  0xef   : >> { %4620 = vmatpush3.bf16.msra.mxu0 %v5244_v20 }
  0xf0   : >> { %4640 = vmatpush3.bf16.msra.mxu1 %v5245_v21  ;;  %4621 = vmatprep.subr.bf16.mxu0 %v5638_v36 }
  0xf1   : >> { %4641 = vmatprep.subr.bf16.mxu1 %v5638_v36 }
  0xf3   : >> { %4622 = vmatpush3.bf16.msra.mxu0 %v5246_v22 }
  0xf4   : >> { %4642 = vmatpush3.bf16.msra.mxu1 %v5247_v23  ;;  %4623 = vmatprep.subr.bf16.mxu0 %v5638_v36 }
  0xf5   : >> { %4643 = vmatprep.subr.bf16.mxu1 %v5638_v36 }
  0xf7   : >> { %4624 = vmatpush3.bf16.msra.mxu0 %v5248_v24 }
  0xf8   : >> { %4644 = vmatpush3.bf16.msra.mxu1 %v5249_v25  ;;  %4625 = vmatprep.subr.bf16.mxu0 %v5638_v36 }
  0xf9   : >> { %4645 = vmatprep.subr.bf16.mxu1 %v5638_v36 }
  0xfb   : >> { %4626 = vmatpush3.bf16.msra.mxu0 %v5250_v26 }
  0xfc   : >> { %4646 = vmatpush3.bf16.msra.mxu1 %v5251_v27  ;;  %4627 = vmatprep.subr.bf16.mxu0 %v5638_v36 }
  0xfd   : >> { %4647 = vmatprep.subr.bf16.mxu1 %v5638_v36 }
  0xff   : >> { %4628 = vmatpush3.bf16.msra.mxu0 %v5252_v28 }
 0x100   : >> { %4648 = vmatpush3.bf16.msra.mxu1 %v5253_v29  ;;  %4629 = vmatprep.subr.bf16.mxu0 %v5638_v36 }
 0x101   : >> { %4649 = vmatprep.subr.bf16.mxu1 %v5638_v36 }
 0x103   : >> { %4630 = vmatpush3.bf16.msra.mxu0 %v5254_v30 }
 0x104   : >> { %4650 = vmatpush3.bf16.msra.mxu1 %v5255_v31  ;;  %4631 = vmatprep.subr.bf16.mxu0 %v5638_v36 }
 0x105   : >> { %4651 = vmatprep.subr.bf16.mxu1 %v5638_v36 }
 0x107   : >> { %4632 = vmatpush3.bf16.msra.mxu0 %v5256_v32 }
 0x108   : >> { %4652 = vmatpush3.bf16.msra.mxu1 %v5257_v35  ;;  %4657 = vmatprep.subr.bf16.mxu0 %v5638_v36 }
 0x109   : >> { %4677 = vmatprep.subr.bf16.mxu1 %v5638_v36 }
 0x10a   : >> { %4634 = vmatmul.mubr.bf16.vlgmr.msra.gmra.mrb[8].mxu0 %v952_v39 }
 0x10b   : >> { %4658 = vmatpush3.bf16.msra.mxu0 %v5258_v40  ;;  %4654 = vmatmul.mubr.bf16.vlgmr.msra.gmra.mrb[8].mxu1 %v1063_v41 }
 0x10c   : >> { %4678 = vmatpush3.bf16.msra.mxu1 %v5259_v42  ;;  %4659 = vmatprep.subr.bf16.mxu0 %v5638_v36 }
 0x10d   : >> { %4679 = vmatprep.subr.bf16.mxu1 %v5638_v36  ;;  %4673 = vmatprep.mubr.msk.bf16.mxu0 %vm5639_vm1, %v5638_v36 }
 0x10e   : >> { %4693 = vmatprep.mubr.msk.bf16.mxu1 %vm5639_vm1, %v5638_v36 }
 0x10f   : >> { %4660 = vmatpush3.bf16.msra.mxu0 %v5260_v43 }
 0x110   : >> { %4680 = vmatpush3.bf16.msra.mxu1 %v5261_v44  ;;  %4661 = vmatprep.subr.bf16.mxu0 %v5638_v36 }
 0x111   : >> { %4681 = vmatprep.subr.bf16.mxu1 %v5638_v36 }
 0x113   : >> { %4662 = vmatpush3.bf16.msra.mxu0 %v5262_v45 }
 0x114   : >> { %4682 = vmatpush3.bf16.msra.mxu1 %v5263_v46  ;;  %4663 = vmatprep.subr.bf16.mxu0 %v5638_v36 }
 0x115   : >> { %4683 = vmatprep.subr.bf16.mxu1 %v5638_v36 }
 0x117   : >> { %4664 = vmatpush3.bf16.msra.mxu0 %v5264_v47 }
 0x118   : >> { %4684 = vmatpush3.bf16.msra.mxu1 %v5265_v48  ;;  %4665 = vmatprep.subr.bf16.mxu0 %v5638_v36 }
 0x119   : >> { %4685 = vmatprep.subr.bf16.mxu1 %v5638_v36 }
 0x11b   : >> { %4666 = vmatpush3.bf16.msra.mxu0 %v5266_v49 }
 0x11c   : >> { %4686 = vmatpush3.bf16.msra.mxu1 %v5267_v50  ;;  %4667 = vmatprep.subr.bf16.mxu0 %v5638_v36 }
 0x11d   : >> { %4687 = vmatprep.subr.bf16.mxu1 %v5638_v36 }
 0x11f   : >> { %4668 = vmatpush3.bf16.msra.mxu0 %v5268_v51 }
 0x120   : >> { %4688 = vmatpush3.bf16.msra.mxu1 %v5269_v52  ;;  %4669 = vmatprep.subr.bf16.mxu0 %v5638_v36 }
 0x121   : >> { %4689 = vmatprep.subr.bf16.mxu1 %v5638_v36 }
 0x123   : >> { %4670 = vmatpush3.bf16.msra.mxu0 %v5270_v53 }
 0x124   : >> { %4690 = vmatpush3.bf16.msra.mxu1 %v5271_v54  ;;  %4671 = vmatprep.subr.bf16.mxu0 %v5638_v36 }
 0x125   : >> { %4691 = vmatprep.subr.bf16.mxu1 %v5638_v36 }
 0x127   : >> { %4672 = vmatpush3.bf16.msra.mxu0 %v5272_v55 }
 0x128   : >> { %4692 = vmatpush3.bf16.msra.mxu1 %v5273_v58  ;;  %4697 = vmatprep.subr.bf16.mxu0 %v5638_v36 }
 0x12a   : >> { %4674 = vmatmul.mubr.bf16.vlgmr.msra.gmra.mrb[12].mxu0 %v1177_v61 }
 0x12b   : >> { %4698 = vmatpush3.bf16.msra.mxu0 %v5274_v62  ;;  %4694 = vmatmul.mubr.bf16.vlgmr.msra.gmra.mrb[12].mxu1 %v1288_v63 }
 0x12c   : >> { %4699 = vmatprep.subr.bf16.mxu0 %v5638_v36  ;;  %4713 = vmatprep.mubr.msk.bf16.mxu0 %vm5639_vm1, %v5638_v36 }
 0x12f   : >> { %4700 = vmatpush3.bf16.msra.mxu0 %v5275_v0 }
 0x130   : >> { %4701 = vmatprep.subr.bf16.mxu0 %v5638_v36 }
 0x133   : >> { %4702 = vmatpush3.bf16.msra.mxu0 %v5276_v3 }
 0x134   : >> { %4703 = vmatprep.subr.bf16.mxu0 %v5638_v36 }
 0x137   : >> { %4704 = vmatpush3.bf16.msra.mxu0 %v5277_v4 }
 0x138   : >> { %4705 = vmatprep.subr.bf16.mxu0 %v5638_v36 }
 0x13b   : >> { %4706 = vmatpush3.bf16.msra.mxu0 %v5278_v5 }
 0x13c   : >> { %4707 = vmatprep.subr.bf16.mxu0 %v5638_v36 }
 0x13f   : >> { %4708 = vmatpush3.bf16.msra.mxu0 %v5279_v6 }
 0x140   : >> { %4709 = vmatprep.subr.bf16.mxu0 %v5638_v36 }
 0x143   : >> { %4710 = vmatpush3.bf16.msra.mxu0 %v5280_v7 }
 0x144   : >> { %4711 = vmatprep.subr.bf16.mxu0 %v5638_v36 }
 0x147   : >> { %4712 = vmatpush3.bf16.msra.mxu0 %v5281_v8 }
 0x14a   : >> { %4714 = vmatmul.mubr.bf16.vlgmr.msra.gmra.mrb[16].mxu0 %v1399_v11 }
 0x19d   : >> { %v629_v12 = vpop.f32.mrb[0].mxu0 }
 0x19e   : >> { %v718_v13 = vpop.f32.mrb[0].mxu1  ;;  %v4555_v14 = vpop.f32.mrb[1].mxu0 }
 0x19f   : >> { %v719_v15 = vadd.f32 %v718_v13, %v629_v12  ;;  %v4575_v16 = vpop.f32.mrb[1].mxu1  ;;  %v632_v17 = vpop.f32.mrb[2].mxu0 }
 0x1a0   : >> { %v721_v18 = vpop.f32.mrb[2].mxu1  ;;  %v4556_v19 = vpop.f32.mrb[3].mxu0 }
 0x1a1   : >> { %v722_v20 = vadd.f32 %v721_v18, %v632_v17  ;;  %v4576_v21 = vpop.f32.mrb[3].mxu1 }
 0x1bd   : >> { %v827_v22 = vpop.f32.mrb[4].mxu0 }
 0x1be   : >> { %v834_v23 = vadd.f32 %v827_v22, %v719_v15  ;;  %v4595_v24 = vpop.f32.mrb[5].mxu0  ;;  %v941_v25 = vpop.f32.mrb[4].mxu1 }
 0x1bf   : >> { %v830_v26 = vpop.f32.mrb[6].mxu0  ;;  %v4615_v27 = vpop.f32.mrb[5].mxu1 }
 0x1c0   : >> { %v835_v36 = vadd.f32 %v830_v26, %v722_v20  ;;  %v948_v28 = vadd.f32 %v941_v25, %v834_v23  ;;  %v4596_v29 = vpop.f32.mrb[7].mxu0  ;;  %v944_v30 = vpop.f32.mrb[6].mxu1 }
 0x1c1   : >> { %v4616_v31 = vpop.f32.mrb[7].mxu1 }
 0x1c2   : >> { %v949_v32 = vadd.f32 %v944_v30, %v835_v36 }
 0x1dd   : >> { %v1052_v33 = vpop.f32.mrb[8].mxu0 }
 0x1de   : >> { %v1059_v34 = vadd.f32 %v1052_v33, %v948_v28  ;;  %v4635_v35 = vpop.f32.mrb[9].mxu0  ;;  %v1163_v37 = vpop.f32.mrb[8].mxu1 }
 0x1df   : >> { %v1055_v38 = vpop.f32.mrb[10].mxu0  ;;  %v4655_v39 = vpop.f32.mrb[9].mxu1 }
 0x1e0   : >> { %v1060_v40 = vadd.f32 %v1055_v38, %v949_v32  ;;  %v1170_v41 = vadd.f32 %v1163_v37, %v1059_v34  ;;  %v4636_v42 = vpop.f32.mrb[11].mxu0  ;;  %v1166_v43 = vpop.f32.mrb[10].mxu1 }
 0x1e1   : >> { %v4656_v44 = vpop.f32.mrb[11].mxu1 }
 0x1e2   : >> { %v1171_v45 = vadd.f32 %v1166_v43, %v1060_v40 }
 0x1fd   : >> { %v1277_v46 = vpop.f32.mrb[12].mxu0 }
 0x1fe   : >> { %v1284_v47 = vadd.f32 %v1277_v46, %v1170_v41  ;;  %v4675_v48 = vpop.f32.mrb[13].mxu0  ;;  %v1388_v49 = vpop.f32.mrb[12].mxu1 }
 0x1ff   : >> { %v1280_v50 = vpop.f32.mrb[14].mxu0  ;;  %v4695_v51 = vpop.f32.mrb[13].mxu1 }
 0x200   : >> { %v1285_v52 = vadd.f32 %v1280_v50, %v1171_v45  ;;  %v1395_v53 = vadd.f32 %v1388_v49, %v1284_v47  ;;  %v4676_v54 = vpop.f32.mrb[15].mxu0  ;;  %v1391_v55 = vpop.f32.mrb[14].mxu1 }
 0x201   : >> { %v4696_v56 = vpop.f32.mrb[15].mxu1 }
 0x202   : >> { %v1396_v57 = vadd.f32 %v1391_v55, %v1285_v52 }
 0x21d   : >> { %v1499_v58 = vpop.f32.mrb[16].mxu0 }
 0x21e   : >> { %v1506_v59 = vadd.f32 %v1499_v58, %v1395_v53  ;;  %v4715_v60 = vpop.f32.mrb[17].mxu0 }
 0x21f   : >> { %v1502_v61 = vpop.f32.mrb[18].mxu0 }
 0x220   : >> { %v1512_v62 = vadd.f32 %v5872_v1, %v1506_v59  ;;  %v1507_v63 = vadd.f32 %v1502_v61, %v1396_v57  ;;  %v4716_v0 = vpop.f32.mrb[19].mxu0 }
 0x221   : > { %504 = sbr.rel (!%p502_p6) target bundleno = 169 (0xa9), region = 185 }
 0x222   : >> { %vm1514_vm2 = vcmp.ge.f32.partialorder %v1512_v62, 0.0  ;;  %v1520_v3 = vmul.f32 %v5877_v2, %v1512_v62  ;;  %v1513_v4 = vadd.f32 %v5872_v1, %v1507_v63 }
 0x224   : >> { %v1522_v5 = vsel %vm1514_vm2, %v1512_v62, %v1520_v3  ;;  %vm1515_vm3 = vcmp.ge.f32.partialorder %v1513_v4, 0.0  ;;  %v1521_v6 = vmul.f32 %v5877_v2, %v1513_v4 }
 0x225   : >> { %1525 = vst [vmem:[%s1524_s15] sm:$0xff] %v1522_v5 }
 0x226   : >> { %v1523_v7 = vsel %vm1515_vm3, %v1513_v4, %v1521_v6 }
 0x227   : >> { %1526 = vst [vmem:[%s1524_s15 + $0x8] sm:$0x3f] %v1523_v7 }
 0x228 LB: >> { %s4098_s28 = sshll.u32 %s5616_s27, 1  ;;  %s4284_s10 = sshll.u32 %s5616_s27, 5  ;;  %s5616_s27 = sphi %s5614_s27, %s1532_s27  }
 0x229   : >> { %s1534_s14 = sadd.s32 1, %s4098_s28  ;;  %s1538_s16 = scalar_lea.vmem [#allocation3], %s4284_s10 }
 0x22a   : >> { %p1535_p8 = scmp.lt.s32.totalorder %s1534_s14, 13  ;;  %s4103_s20 = sshll.u32 %s5616_s27, 4 }
 0x22b   : >> { %s1551_s29 = scalar_lea.vmem [#allocation2], %s4103_s20  ;;  %s1532_s27 = sadd.s32 1, %s5616_s27  }
 0x22c   : >> { %s6664_s14 = smov (!%p1535_p8, %s1534_s14), 13  ;;  %p1529_p9 = scmp.ge.s32.totalorder %s1532_s27, 7  }
 0x22d   : >> { %s4101_s23 = sshll.u32 %s6664_s14, 4  ;;  %v6286_v1 = vld [vmem:[#allocation6] ss:$0 sm:$0xff] (%p1529_p9)  ;;  %v6288_v2 = vld [vmem:[#allocation6 + $0x1] ss:$0 sm:$0xff] (%p1529_p9)  ;;  %s6290_s19 = smov (%p1529_p9), 0  }
 0x22e   : >> { %v1539_v8 = vld [vmem:[%s1538_s16] ss:$2 sm:$0x7f]  ;;  %v4100_v9 = vld [vmem:[%s1538_s16 + $0x1] ss:$2 sm:$0x7f] }
 0x22f   : >> { %v1547_v10 = vmax.f32 %v1539_v8, %v4100_v9  ;;  %s1543_s24 = scalar_lea.vmem [#allocation3], %s4101_s23  ;;  %1531 = sbr.rel (!%p1529_p9) target bundleno = 552 (0x228), region = 196 }
 0x230   : >> { %v1544_v11 = vld [vmem:[%s1543_s24] ss:$2 sm:$0x7f]  ;;  %v4102_v12 = vld [vmem:[%s1543_s24 + $0x1] ss:$2 sm:$0x7f] }
 0x231   : >> { %v1548_v13 = vmax.f32 %v1544_v11, %v4102_v12 }
 0x233   : >> { %v1549_v14 = vmax.f32 %v1547_v10, %v1548_v13 }
 0x235   : >> { %1552 = vst [vmem:[%s1551_s29] sm:$0x7f] %v1549_v14 }
 0x236 LB: >> { %v5282_v15 = vld [vmem:[#allocation4 + $0x40] sm:$0xff]   ;;  %v5640_v16 = vmov 0.0   ;;  %v5284_v18 = vld [vmem:[#allocation4 + $0x48] sm:$0xff]   ;;  %vm5641_vm4 = vmmov 0   ;;  %v5286_v20 = vld [vmem:[#allocation4 + $0x50] sm:$0xff]   ;;  %s4104_s13 = sshll.u32 %s5620_s19, 4  ;;  %s5620_s19 = sphi %s6290_s19, %s1560_s19  }
 0x237   : >> { %4717 = vmatprep.subr.bf16.mxu0 %v5640_v16  ;;  %4737 = vmatprep.subr.bf16.mxu1 %v5640_v16  ;;  %v5283_v17 = vld [vmem:[#allocation4] sm:$0xff]   ;;  %v5285_v19 = vld [vmem:[#allocation4 + $0x8] sm:$0xff]   ;;  %v5287_v21 = vld [vmem:[#allocation4 + $0x10] sm:$0xff]   ;;  %s6316_s18 = scalar_lea.vmem [#allocation2], %s4104_s13  ;;  %s2550_s26 = scalar_lea.vmem [#allocation3], %s4104_s13 }
 0x238   : >> { %4718 = vmatpush3.bf16.msra.mxu0 %v5282_v15  ;;  %4733 = vmatprep.mubr.msk.bf16.mxu0 %vm5641_vm4, %v5640_v16  ;;  %v5288_v22 = vld [vmem:[#allocation4 + $0x58] sm:$0xff]   ;;  %v5290_v24 = vld [vmem:[#allocation4 + $0x60] sm:$0xff]   ;;  %v5292_v26 = vld [vmem:[#allocation4 + $0x68] sm:$0xff]   ;;  %s1560_s19 = sadd.s32 1, %s5620_s19  }
 0x239   : >> { %4738 = vmatpush3.bf16.msra.mxu1 %v5283_v17  ;;  %4719 = vmatprep.subr.bf16.mxu0 %v5640_v16  ;;  %v5289_v23 = vld [vmem:[#allocation4 + $0x18] sm:$0xff]   ;;  %v5291_v25 = vld [vmem:[#allocation4 + $0x20] sm:$0xff]   ;;  %v5293_v27 = vld [vmem:[#allocation4 + $0x28] sm:$0xff]   ;;  %p1557_p10 = scmp.ge.s32.totalorder %s1560_s19, 5  }
 0x23a   : >> { %4739 = vmatprep.subr.bf16.mxu1 %v5640_v16  ;;  %4753 = vmatprep.mubr.msk.bf16.mxu1 %vm5641_vm4, %v5640_v16  ;;  %v5294_v36 = vld [vmem:[#allocation4 + $0x70] sm:$0xff]   ;;  %v5296_v29 = vld [vmem:[#allocation4 + $0x78] sm:$0xff]   ;;  %v5298_v35 = vld [vmem:[#allocation4 + $0x80] sm:$0xff]   ;;  %s6410_s21 = smov (%p1557_p10), 0  }
 0x23b   : >> { %v5295_v28 = vld [vmem:[#allocation4 + $0x30] sm:$0xff]   ;;  %v5297_v30 = vld [vmem:[#allocation4 + $0x38] sm:$0xff]   ;;  %v5299_v37 = vld [vmem:[#allocation4 + $0xc0] sm:$0xff]  }
 0x23c   : >> { %4720 = vmatpush3.bf16.msra.mxu0 %v5284_v18  ;;  %v1581_v31 = vld [vmem:[%s6316_s18 + $0x1] sm:$0x1f]  ;;  %v5302_v40 = vld [vmem:[#allocation4 + $0x90] sm:$0xff]   ;;  %v5304_v42 = vld [vmem:[#allocation4 + $0x98] sm:$0xff]  }
 0x23d   : >> { %4740 = vmatpush3.bf16.msra.mxu1 %v5285_v19  ;;  %4721 = vmatprep.subr.bf16.mxu0 %v5640_v16  ;;  %v1563_v32 = vld [vmem:[%s6316_s18] sm:$0x1f]  ;;  %v1582_v33 = vpack.c.bf16 %v1581_v31, %v1581_v31  ;;  %v5303_v41 = vld [vmem:[#allocation4 + $0xd0] sm:$0xff]   ;;  %v5305_v43 = vld [vmem:[#allocation4 + $0xd8] sm:$0xff]  }
 0x23e   : >> { %4741 = vmatprep.subr.bf16.mxu1 %v5640_v16  ;;  %v1564_v34 = vpack.c.bf16 %v1563_v32, %v1563_v32  ;;  %v5300_v38 = vld [vmem:[#allocation4 + $0x88] sm:$0xff]   ;;  %v5306_v44 = vld [vmem:[#allocation4 + $0xa0] sm:$0xff]   ;;  %v5310_v48 = vld [vmem:[#allocation4 + $0xb0] sm:$0xff]  }
 0x23f   : >> { %v5301_v39 = vld [vmem:[#allocation4 + $0xc8] sm:$0xff]   ;;  %v5307_v45 = vld [vmem:[#allocation4 + $0xe0] sm:$0xff]   ;;  %v5311_v49 = vld [vmem:[#allocation4 + $0xf0] sm:$0xff]  }
 0x240   : >> { %4722 = vmatpush3.bf16.msra.mxu0 %v5286_v20  ;;  %v5308_v46 = vld [vmem:[#allocation4 + $0xa8] sm:$0xff]   ;;  %v5312_v50 = vld [vmem:[#allocation4 + $0xb8] sm:$0xff]   ;;  %v5314_v55 = vld [vmem:[#allocation4 + $0x100] sm:$0xff]  }
 0x241   : >> { %4742 = vmatpush3.bf16.msra.mxu1 %v5287_v21  ;;  %4723 = vmatprep.subr.bf16.mxu0 %v5640_v16  ;;  %v5309_v47 = vld [vmem:[#allocation4 + $0xe8] sm:$0xff]   ;;  %v5313_v51 = vld [vmem:[#allocation4 + $0xf8] sm:$0xff]   ;;  %v5315_v57 = vld [vmem:[#allocation4 + $0x140] sm:$0xff]  }
 0x242   : >> { %4743 = vmatprep.subr.bf16.mxu1 %v5640_v16  ;;  %v1776_v52 = vld [vmem:[%s6316_s18 + $0x2] sm:$0x1f]  ;;  %v4130_v53 = vld [vmem:[%s6316_s18 + $0x10] sm:$0x1f]  ;;  %v5318_v60 = vld [vmem:[#allocation4 + $0x110] sm:$0xff]  }
 0x243   : >> { %v1777_v54 = vpack.c.bf16 %v1776_v52, %v1776_v52  ;;  %v1888_v56 = vpack.c.bf16 %v4130_v53, %v4130_v53  ;;  %v5316_v58 = vld [vmem:[#allocation4 + $0x108] sm:$0xff]   ;;  %v5319_v61 = vld [vmem:[#allocation4 + $0x150] sm:$0xff]   ;;  %v5320_v62 = vld [vmem:[#allocation4 + $0x118] sm:$0xff]  }
 0x244   : >> { %4724 = vmatpush3.bf16.msra.mxu0 %v5288_v22  ;;  %v5317_v59 = vld [vmem:[#allocation4 + $0x148] sm:$0xff]   ;;  %v5321_v63 = vld [vmem:[#allocation4 + $0x158] sm:$0xff]   ;;  %v5322_v0 = vld [vmem:[#allocation4 + $0x120] sm:$0xff]  }
 0x245   : >> { %4744 = vmatpush3.bf16.msra.mxu1 %v5289_v23  ;;  %4725 = vmatprep.subr.bf16.mxu0 %v5640_v16  ;;  %v5323_v3 = vld [vmem:[#allocation4 + $0x160] sm:$0xff]   ;;  %v5324_v4 = vld [vmem:[#allocation4 + $0x128] sm:$0xff]   ;;  %v5326_v6 = vld [vmem:[#allocation4 + $0x130] sm:$0xff]  }
 0x246   : >> { %4745 = vmatprep.subr.bf16.mxu1 %v5640_v16  ;;  %v5325_v5 = vld [vmem:[#allocation4 + $0x168] sm:$0xff]   ;;  %v5327_v7 = vld [vmem:[#allocation4 + $0x170] sm:$0xff]   ;;  %v5328_v8 = vld [vmem:[#allocation4 + $0x138] sm:$0xff]  }
 0x247   : >> { %v4139_v9 = vld [vmem:[%s6316_s18 + $0x11] sm:$0x1f]  ;;  %v5330_v13 = vld [vmem:[#allocation4 + $0x180] sm:$0xff]   ;;  %v5332_v17 = vld [vmem:[#allocation4 + $0x188] sm:$0xff]  }
 0x248   : >> { %4726 = vmatpush3.bf16.msra.mxu0 %v5290_v24  ;;  %v5329_v10 = vld [vmem:[#allocation4 + $0x178] sm:$0xff]   ;;  %v1996_v12 = vpack.c.bf16 %v4139_v9, %v4139_v9  ;;  %v5331_v15 = vld [vmem:[#allocation4 + $0x1c0] sm:$0xff]   ;;  %v5333_v18 = vld [vmem:[#allocation4 + $0x1c8] sm:$0xff]  }
 0x249   : >> { %4746 = vmatpush3.bf16.msra.mxu1 %v5291_v25  ;;  %4727 = vmatprep.subr.bf16.mxu0 %v5640_v16  ;;  %v4148_v11 = vld [vmem:[%s6316_s18 + $0x12] sm:$0x1f]  ;;  %v5334_v19 = vld [vmem:[#allocation4 + $0x190] sm:$0xff]   ;;  %v5338_v23 = vld [vmem:[#allocation4 + $0x1a0] sm:$0xff]  }
 0x24a   : >> { %4747 = vmatprep.subr.bf16.mxu1 %v5640_v16  ;;  %v2104_v14 = vpack.c.bf16 %v4148_v11, %v4148_v11  ;;  %v5335_v20 = vld [vmem:[#allocation4 + $0x1d0] sm:$0xff]   ;;  %v5336_v21 = vld [vmem:[#allocation4 + $0x198] sm:$0xff]   ;;  %v5339_v24 = vld [vmem:[#allocation4 + $0x1e0] sm:$0xff]  }
 0x24b   : >> { %v5337_v22 = vld [vmem:[#allocation4 + $0x1d8] sm:$0xff]   ;;  %v5340_v25 = vld [vmem:[#allocation4 + $0x1a8] sm:$0xff]  }
 0x24c   : >> { %4728 = vmatpush3.bf16.msra.mxu0 %v5292_v26  ;;  %v5341_v26 = vld [vmem:[#allocation4 + $0x1e8] sm:$0xff]  }
 0x24d   : >> { %4748 = vmatpush3.bf16.msra.mxu1 %v5293_v27  ;;  %4729 = vmatprep.subr.bf16.mxu0 %v5640_v16  ;;  %v5342_v27 = vld [vmem:[#allocation4 + $0x1b0] sm:$0xff]   ;;  %v4167_v31 = vld [vmem:[%s6316_s18 + $0x21] sm:$0x1f] }
 0x24e   : >> { %4749 = vmatprep.subr.bf16.mxu1 %v5640_v16 }
 0x250   : >> { %4730 = vmatpush3.bf16.msra.mxu0 %v5294_v36  ;;  %v5343_v36 = vld [vmem:[#allocation4 + $0x1f0] sm:$0xff]  }
 0x251   : >> { %4750 = vmatpush3.bf16.msra.mxu1 %v5295_v28  ;;  %4731 = vmatprep.subr.bf16.mxu0 %v5640_v16  ;;  %v5344_v28 = vld [vmem:[#allocation4 + $0x1b8] sm:$0xff]  }
 0x252   : >> { %4751 = vmatprep.subr.bf16.mxu1 %v5640_v16 }
 0x254   : >> { %4732 = vmatpush3.bf16.msra.mxu0 %v5296_v29  ;;  %v4158_v29 = vld [vmem:[%s6316_s18 + $0x20] sm:$0x1f] }
 0x255   : >> { %4752 = vmatpush3.bf16.msra.mxu1 %v5297_v30  ;;  %4757 = vmatprep.subr.bf16.mxu0 %v5640_v16  ;;  %v5345_v30 = vld [vmem:[#allocation4 + $0x1f8] sm:$0xff]   ;;  %v2215_v32 = vpack.c.bf16 %v4158_v29, %v4158_v29  ;;  %v6406_v29 = vld [vmem:[#allocation9] ss:$0 sm:$0xff] (%p1557_p10) }
 0x256   : >> { %4777 = vmatprep.subr.bf16.mxu1 %v5640_v16 }
 0x257   : >> { %4734 = vmatmul.mubr.bf16.vlgmr.msra.gmra.mrb[0].mxu0 %v1582_v33  ;;  %v5346_v33 = vld [vmem:[#allocation4 + $0x200] sm:$0xff]  }
 0x258   : >> { %4754 = vmatmul.mubr.bf16.vlgmr.msra.gmra.mrb[0].mxu1 %v1564_v34  ;;  %4758 = vmatpush3.bf16.msra.mxu0 %v5298_v35  ;;  %v2323_v34 = vpack.c.bf16 %v4167_v31, %v4167_v31  ;;  %v5347_v35 = vld [vmem:[#allocation4 + $0x208] sm:$0xff]  }
 0x259   : >> { %4778 = vmatpush3.bf16.msra.mxu1 %v5299_v37  ;;  %4759 = vmatprep.subr.bf16.mxu0 %v5640_v16  ;;  %v5348_v37 = vld [vmem:[#allocation4 + $0x210] sm:$0xff]  }
 0x25a   : >> { %4779 = vmatprep.subr.bf16.mxu1 %v5640_v16  ;;  %4773 = vmatprep.mubr.msk.bf16.mxu0 %vm5641_vm4, %v5640_v16 }
 0x25b   : >> { %4793 = vmatprep.mubr.msk.bf16.mxu1 %vm5641_vm4, %v5640_v16 }
 0x25c   : >> { %4760 = vmatpush3.bf16.msra.mxu0 %v5300_v38  ;;  %v5349_v38 = vld [vmem:[#allocation4 + $0x218] sm:$0xff]  }
 0x25d   : >> { %4780 = vmatpush3.bf16.msra.mxu1 %v5301_v39  ;;  %4761 = vmatprep.subr.bf16.mxu0 %v5640_v16  ;;  %v5350_v39 = vld [vmem:[#allocation4 + $0x220] sm:$0xff]  }
 0x25e   : >> { %4781 = vmatprep.subr.bf16.mxu1 %v5640_v16 }
 0x260   : >> { %4762 = vmatpush3.bf16.msra.mxu0 %v5302_v40  ;;  %v5351_v40 = vld [vmem:[#allocation4 + $0x228] sm:$0xff]  }
 0x261   : >> { %4782 = vmatpush3.bf16.msra.mxu1 %v5303_v41  ;;  %4763 = vmatprep.subr.bf16.mxu0 %v5640_v16  ;;  %v5352_v41 = vld [vmem:[#allocation4 + $0x230] sm:$0xff]  }
 0x262   : >> { %4783 = vmatprep.subr.bf16.mxu1 %v5640_v16 }
 0x264   : >> { %4764 = vmatpush3.bf16.msra.mxu0 %v5304_v42  ;;  %v5353_v42 = vld [vmem:[#allocation4 + $0x238] sm:$0xff]  }
 0x265   : >> { %4784 = vmatpush3.bf16.msra.mxu1 %v5305_v43  ;;  %4765 = vmatprep.subr.bf16.mxu0 %v5640_v16  ;;  %v4176_v43 = vld [vmem:[%s6316_s18 + $0x22] sm:$0x1f] }
 0x266   : >> { %4785 = vmatprep.subr.bf16.mxu1 %v5640_v16 }
 0x268   : >> { %4766 = vmatpush3.bf16.msra.mxu0 %v5306_v44  ;;  %v2431_v44 = vpack.c.bf16 %v4176_v43, %v4176_v43 }
 0x269   : >> { %4786 = vmatpush3.bf16.msra.mxu1 %v5307_v45  ;;  %4767 = vmatprep.subr.bf16.mxu0 %v5640_v16 }
 0x26a   : >> { %4787 = vmatprep.subr.bf16.mxu1 %v5640_v16 }
 0x26c   : >> { %4768 = vmatpush3.bf16.msra.mxu0 %v5308_v46 }
 0x26d   : >> { %4788 = vmatpush3.bf16.msra.mxu1 %v5309_v47  ;;  %4769 = vmatprep.subr.bf16.mxu0 %v5640_v16 }
 0x26e   : >> { %4789 = vmatprep.subr.bf16.mxu1 %v5640_v16 }
 0x270   : >> { %4770 = vmatpush3.bf16.msra.mxu0 %v5310_v48 }
 0x271   : >> { %4790 = vmatpush3.bf16.msra.mxu1 %v5311_v49  ;;  %4771 = vmatprep.subr.bf16.mxu0 %v5640_v16 }
 0x272   : >> { %4791 = vmatprep.subr.bf16.mxu1 %v5640_v16 }
 0x274   : >> { %4772 = vmatpush3.bf16.msra.mxu0 %v5312_v50 }
 0x275   : >> { %4792 = vmatpush3.bf16.msra.mxu1 %v5313_v51  ;;  %4797 = vmatprep.subr.bf16.mxu0 %v5640_v16 }
 0x276   : >> { %4817 = vmatprep.subr.bf16.mxu1 %v5640_v16 }
 0x277   : >> { %4774 = vmatmul.mubr.bf16.vlgmr.msra.gmra.mrb[4].mxu0 %v1777_v54 }
 0x278   : >> { %4798 = vmatpush3.bf16.msra.mxu0 %v5314_v55  ;;  %4794 = vmatmul.mubr.bf16.vlgmr.msra.gmra.mrb[4].mxu1 %v1888_v56 }
 0x279   : >> { %4818 = vmatpush3.bf16.msra.mxu1 %v5315_v57  ;;  %4799 = vmatprep.subr.bf16.mxu0 %v5640_v16 }
 0x27a   : >> { %4819 = vmatprep.subr.bf16.mxu1 %v5640_v16  ;;  %4813 = vmatprep.mubr.msk.bf16.mxu0 %vm5641_vm4, %v5640_v16 }
 0x27b   : >> { %4833 = vmatprep.mubr.msk.bf16.mxu1 %vm5641_vm4, %v5640_v16 }
 0x27c   : >> { %4800 = vmatpush3.bf16.msra.mxu0 %v5316_v58 }
 0x27d   : >> { %4820 = vmatpush3.bf16.msra.mxu1 %v5317_v59  ;;  %4801 = vmatprep.subr.bf16.mxu0 %v5640_v16 }
 0x27e   : >> { %4821 = vmatprep.subr.bf16.mxu1 %v5640_v16 }
 0x280   : >> { %4802 = vmatpush3.bf16.msra.mxu0 %v5318_v60 }
 0x281   : >> { %4822 = vmatpush3.bf16.msra.mxu1 %v5319_v61  ;;  %4803 = vmatprep.subr.bf16.mxu0 %v5640_v16 }
 0x282   : >> { %4823 = vmatprep.subr.bf16.mxu1 %v5640_v16 }
 0x284   : >> { %4804 = vmatpush3.bf16.msra.mxu0 %v5320_v62 }
 0x285   : >> { %4824 = vmatpush3.bf16.msra.mxu1 %v5321_v63  ;;  %4805 = vmatprep.subr.bf16.mxu0 %v5640_v16 }
 0x286   : >> { %4825 = vmatprep.subr.bf16.mxu1 %v5640_v16 }
 0x288   : >> { %4806 = vmatpush3.bf16.msra.mxu0 %v5322_v0 }
 0x289   : >> { %4826 = vmatpush3.bf16.msra.mxu1 %v5323_v3  ;;  %4807 = vmatprep.subr.bf16.mxu0 %v5640_v16 }
 0x28a   : >> { %4827 = vmatprep.subr.bf16.mxu1 %v5640_v16 }
 0x28c   : >> { %4808 = vmatpush3.bf16.msra.mxu0 %v5324_v4 }
 0x28d   : >> { %4828 = vmatpush3.bf16.msra.mxu1 %v5325_v5  ;;  %4809 = vmatprep.subr.bf16.mxu0 %v5640_v16 }
 0x28e   : >> { %4829 = vmatprep.subr.bf16.mxu1 %v5640_v16 }
 0x290   : >> { %4810 = vmatpush3.bf16.msra.mxu0 %v5326_v6 }
 0x291   : >> { %4830 = vmatpush3.bf16.msra.mxu1 %v5327_v7  ;;  %4811 = vmatprep.subr.bf16.mxu0 %v5640_v16 }
 0x292   : >> { %4831 = vmatprep.subr.bf16.mxu1 %v5640_v16 }
 0x294   : >> { %4812 = vmatpush3.bf16.msra.mxu0 %v5328_v8 }
 0x295   : >> { %4832 = vmatpush3.bf16.msra.mxu1 %v5329_v10  ;;  %4837 = vmatprep.subr.bf16.mxu0 %v5640_v16 }
 0x296   : >> { %4857 = vmatprep.subr.bf16.mxu1 %v5640_v16 }
 0x297   : >> { %4814 = vmatmul.mubr.bf16.vlgmr.msra.gmra.mrb[8].mxu0 %v1996_v12 }
 0x298   : >> { %4838 = vmatpush3.bf16.msra.mxu0 %v5330_v13  ;;  %4834 = vmatmul.mubr.bf16.vlgmr.msra.gmra.mrb[8].mxu1 %v2104_v14 }
 0x299   : >> { %4858 = vmatpush3.bf16.msra.mxu1 %v5331_v15  ;;  %4839 = vmatprep.subr.bf16.mxu0 %v5640_v16 }
 0x29a   : >> { %4859 = vmatprep.subr.bf16.mxu1 %v5640_v16  ;;  %4853 = vmatprep.mubr.msk.bf16.mxu0 %vm5641_vm4, %v5640_v16 }
 0x29b   : >> { %4873 = vmatprep.mubr.msk.bf16.mxu1 %vm5641_vm4, %v5640_v16 }
 0x29c   : >> { %4840 = vmatpush3.bf16.msra.mxu0 %v5332_v17 }
 0x29d   : >> { %4860 = vmatpush3.bf16.msra.mxu1 %v5333_v18  ;;  %4841 = vmatprep.subr.bf16.mxu0 %v5640_v16 }
 0x29e   : >> { %4861 = vmatprep.subr.bf16.mxu1 %v5640_v16 }
 0x2a0   : >> { %4842 = vmatpush3.bf16.msra.mxu0 %v5334_v19 }
 0x2a1   : >> { %4862 = vmatpush3.bf16.msra.mxu1 %v5335_v20  ;;  %4843 = vmatprep.subr.bf16.mxu0 %v5640_v16 }
 0x2a2   : >> { %4863 = vmatprep.subr.bf16.mxu1 %v5640_v16 }
 0x2a4   : >> { %4844 = vmatpush3.bf16.msra.mxu0 %v5336_v21 }
 0x2a5   : >> { %4864 = vmatpush3.bf16.msra.mxu1 %v5337_v22  ;;  %4845 = vmatprep.subr.bf16.mxu0 %v5640_v16 }
 0x2a6   : >> { %4865 = vmatprep.subr.bf16.mxu1 %v5640_v16 }
 0x2a8   : >> { %4846 = vmatpush3.bf16.msra.mxu0 %v5338_v23 }
 0x2a9   : >> { %4866 = vmatpush3.bf16.msra.mxu1 %v5339_v24  ;;  %4847 = vmatprep.subr.bf16.mxu0 %v5640_v16 }
 0x2aa   : >> { %4867 = vmatprep.subr.bf16.mxu1 %v5640_v16 }
 0x2ac   : >> { %4848 = vmatpush3.bf16.msra.mxu0 %v5340_v25 }
 0x2ad   : >> { %4868 = vmatpush3.bf16.msra.mxu1 %v5341_v26  ;;  %4849 = vmatprep.subr.bf16.mxu0 %v5640_v16 }
 0x2ae   : >> { %4869 = vmatprep.subr.bf16.mxu1 %v5640_v16 }
 0x2b0   : >> { %4850 = vmatpush3.bf16.msra.mxu0 %v5342_v27 }
 0x2b1   : >> { %4870 = vmatpush3.bf16.msra.mxu1 %v5343_v36  ;;  %4851 = vmatprep.subr.bf16.mxu0 %v5640_v16 }
 0x2b2   : >> { %4871 = vmatprep.subr.bf16.mxu1 %v5640_v16 }
 0x2b4   : >> { %4852 = vmatpush3.bf16.msra.mxu0 %v5344_v28 }
 0x2b5   : >> { %4872 = vmatpush3.bf16.msra.mxu1 %v5345_v30  ;;  %4877 = vmatprep.subr.bf16.mxu0 %v5640_v16  ;;  %v6408_v30 = vld [vmem:[#allocation9 + $0x1] ss:$0 sm:$0xff] (%p1557_p10) }
 0x2b7   : >> { %4854 = vmatmul.mubr.bf16.vlgmr.msra.gmra.mrb[12].mxu0 %v2215_v32 }
 0x2b8   : >> { %4878 = vmatpush3.bf16.msra.mxu0 %v5346_v33  ;;  %4874 = vmatmul.mubr.bf16.vlgmr.msra.gmra.mrb[12].mxu1 %v2323_v34 }
 0x2b9   : >> { %4879 = vmatprep.subr.bf16.mxu0 %v5640_v16  ;;  %4893 = vmatprep.mubr.msk.bf16.mxu0 %vm5641_vm4, %v5640_v16 }
 0x2bc   : >> { %4880 = vmatpush3.bf16.msra.mxu0 %v5347_v35 }
 0x2bd   : >> { %4881 = vmatprep.subr.bf16.mxu0 %v5640_v16 }
 0x2c0   : >> { %4882 = vmatpush3.bf16.msra.mxu0 %v5348_v37 }
 0x2c1   : >> { %4883 = vmatprep.subr.bf16.mxu0 %v5640_v16 }
 0x2c4   : >> { %4884 = vmatpush3.bf16.msra.mxu0 %v5349_v38 }
 0x2c5   : >> { %4885 = vmatprep.subr.bf16.mxu0 %v5640_v16 }
 0x2c8   : >> { %4886 = vmatpush3.bf16.msra.mxu0 %v5350_v39 }
 0x2c9   : >> { %4887 = vmatprep.subr.bf16.mxu0 %v5640_v16 }
 0x2cc   : >> { %4888 = vmatpush3.bf16.msra.mxu0 %v5351_v40 }
 0x2cd   : >> { %4889 = vmatprep.subr.bf16.mxu0 %v5640_v16 }
 0x2d0   : >> { %4890 = vmatpush3.bf16.msra.mxu0 %v5352_v41 }
 0x2d1   : >> { %4891 = vmatprep.subr.bf16.mxu0 %v5640_v16 }
 0x2d4   : >> { %4892 = vmatpush3.bf16.msra.mxu0 %v5353_v42 }
 0x2d7   : >> { %4894 = vmatmul.mubr.bf16.vlgmr.msra.gmra.mrb[16].mxu0 %v2431_v44 }
 0x32a   : >> { %v1682_v45 = vpop.f32.mrb[0].mxu0 }
 0x32b   : >> { %v4735_v46 = vpop.f32.mrb[1].mxu0  ;;  %v1770_v47 = vpop.f32.mrb[0].mxu1 }
 0x32c   : >> { %v1771_v48 = vadd.f32 %v1770_v47, %v1682_v45  ;;  %v1685_v49 = vpop.f32.mrb[2].mxu0  ;;  %v4755_v50 = vpop.f32.mrb[1].mxu1 }
 0x32d   : >> { %v4736_v51 = vpop.f32.mrb[3].mxu0  ;;  %v1773_v52 = vpop.f32.mrb[2].mxu1 }
 0x32e   : >> { %v4756_v53 = vpop.f32.mrb[3].mxu1 }
 0x34a   : >> { %v1877_v54 = vpop.f32.mrb[4].mxu0 }
 0x34b   : >> { %v1883_v55 = vadd.f32 %v1877_v54, %v1771_v48  ;;  %v4775_v56 = vpop.f32.mrb[5].mxu0  ;;  %v1988_v57 = vpop.f32.mrb[4].mxu1 }
 0x34c   : >> { %v1880_v58 = vpop.f32.mrb[6].mxu0  ;;  %v4795_v59 = vpop.f32.mrb[5].mxu1 }
 0x34d   : >> { %v1994_v60 = vadd.f32 %v1988_v57, %v1883_v55  ;;  %v4776_v16 = vpop.f32.mrb[7].mxu0  ;;  %v1991_v61 = vpop.f32.mrb[6].mxu1 }
 0x34e   : >> { %v4796_v62 = vpop.f32.mrb[7].mxu1 }
 0x36a   : >> { %v2096_v63 = vpop.f32.mrb[8].mxu0 }
 0x36b   : >> { %v2102_v0 = vadd.f32 %v2096_v63, %v1994_v60  ;;  %v4815_v3 = vpop.f32.mrb[9].mxu0  ;;  %v2204_v4 = vpop.f32.mrb[8].mxu1 }
 0x36c   : >> { %v2099_v5 = vpop.f32.mrb[10].mxu0  ;;  %v4835_v6 = vpop.f32.mrb[9].mxu1 }
 0x36d   : >> { %v2210_v7 = vadd.f32 %v2204_v4, %v2102_v0  ;;  %v4816_v8 = vpop.f32.mrb[11].mxu0  ;;  %v2207_v9 = vpop.f32.mrb[10].mxu1 }
 0x36e   : >> { %v4836_v10 = vpop.f32.mrb[11].mxu1 }
 0x38a   : >> { %v2315_v11 = vpop.f32.mrb[12].mxu0 }
 0x38b   : >> { %v2321_v12 = vadd.f32 %v2315_v11, %v2210_v7  ;;  %v4855_v13 = vpop.f32.mrb[13].mxu0  ;;  %v2423_v14 = vpop.f32.mrb[12].mxu1 }
 0x38c   : >> { %v2318_v15 = vpop.f32.mrb[14].mxu0  ;;  %v4875_v17 = vpop.f32.mrb[13].mxu1 }
 0x38d   : >> { %v2429_v18 = vadd.f32 %v2423_v14, %v2321_v12  ;;  %v4856_v19 = vpop.f32.mrb[15].mxu0  ;;  %v2426_v20 = vpop.f32.mrb[14].mxu1 }
 0x38e   : >> { %v4876_v21 = vpop.f32.mrb[15].mxu1 }
 0x3aa   : >> { %v2531_v22 = vpop.f32.mrb[16].mxu0 }
 0x3ab   : >> { %v2537_v23 = vadd.f32 %v2531_v22, %v2429_v18  ;;  %v4895_v24 = vpop.f32.mrb[17].mxu0 }
 0x3ac   : >> { %v2534_v25 = vpop.f32.mrb[18].mxu0  ;;  %1559 = sbr.rel (!%p1557_p10) target bundleno = 566 (0x236), region = 207 }
 0x3ad   : >> { %v2542_v26 = vadd.f32 %v6286_v1, %v2537_v23  ;;  %v4896_v27 = vpop.f32.mrb[19].mxu0 }
 0x3af   : >> { %vm2543_vm5 = vcmp.ge.f32.partialorder %v2542_v26, 0.0  ;;  %v2548_v36 = vmul.f32 %v6288_v2, %v2542_v26 }
 0x3b1   : >> { %v2549_v28 = vsel %vm2543_vm5, %v2542_v26, %v2548_v36 }
 0x3b2   : >> { %2551 = vst [vmem:[%s2550_s26] sm:$0x1f] %v2549_v28 }
 0x3b3 LB: >> { %v5354_v31 = vld [vmem:[#allocation8 + $0x40] sm:$0xff]   ;;  %v5642_v32 = vmov 0.0   ;;  %v5356_v34 = vld [vmem:[#allocation8 + $0x48] sm:$0xff]   ;;  %vm5643_vm6 = vmmov 0   ;;  %v5358_v2 = vld [vmem:[#allocation8 + $0x50] sm:$0xff]   ;;  %s4187_s17 = sshll.u32 %s5624_s21, 4  ;;  %s5624_s21 = sphi %s6410_s21, %s2559_s21  }
 0x3b4   : >> { %4897 = vmatprep.subr.bf16.mxu0 %v5642_v32  ;;  %4917 = vmatprep.subr.bf16.mxu1 %v5642_v32  ;;  %v5355_v33 = vld [vmem:[#allocation8] sm:$0xff]   ;;  %v5357_v1 = vld [vmem:[#allocation8 + $0x8] sm:$0xff]   ;;  %v5359_v35 = vld [vmem:[#allocation8 + $0x10] sm:$0xff]   ;;  %s6436_s22 = scalar_lea.vmem [#allocation3], %s4187_s17  ;;  %s3549_s11 = scalar_lea.vmem [#allocation2], %s4187_s17 }
 0x3b5   : >> { %4898 = vmatpush3.bf16.msra.mxu0 %v5354_v31  ;;  %4913 = vmatprep.mubr.msk.bf16.mxu0 %vm5643_vm6, %v5642_v32  ;;  %v5360_v37 = vld [vmem:[#allocation8 + $0x58] sm:$0xff]   ;;  %v5362_v39 = vld [vmem:[#allocation8 + $0x60] sm:$0xff]   ;;  %v5364_v41 = vld [vmem:[#allocation8 + $0x68] sm:$0xff]   ;;  %s2559_s21 = sadd.s32 1, %s5624_s21  }
 0x3b6   : >> { %4918 = vmatpush3.bf16.msra.mxu1 %v5355_v33  ;;  %4899 = vmatprep.subr.bf16.mxu0 %v5642_v32  ;;  %v5361_v38 = vld [vmem:[#allocation8 + $0x18] sm:$0xff]   ;;  %v5363_v40 = vld [vmem:[#allocation8 + $0x20] sm:$0xff]   ;;  %v5365_v42 = vld [vmem:[#allocation8 + $0x28] sm:$0xff]   ;;  %p2556_p11 = scmp.ge.s32.totalorder %s2559_s21, 3  }
 0x3b7   : >> { %4919 = vmatprep.subr.bf16.mxu1 %v5642_v32  ;;  %4933 = vmatprep.mubr.msk.bf16.mxu1 %vm5643_vm6, %v5642_v32  ;;  %v5366_v43 = vld [vmem:[#allocation8 + $0x70] sm:$0xff]   ;;  %v5368_v45 = vld [vmem:[#allocation8 + $0x78] sm:$0xff]   ;;  %v5370_v51 = vld [vmem:[#allocation8 + $0x80] sm:$0xff]   ;;  %s6608_s18 = smov (%p2556_p11), 0  }
 0x3b8   : >> { %v5367_v44 = vld [vmem:[#allocation8 + $0x30] sm:$0xff]   ;;  %v5369_v46 = vld [vmem:[#allocation8 + $0x38] sm:$0xff]   ;;  %v5371_v52 = vld [vmem:[#allocation8 + $0xc0] sm:$0xff]  }
 0x3b9   : >> { %4900 = vmatpush3.bf16.msra.mxu0 %v5356_v34  ;;  %v2580_v47 = vld [vmem:[%s6436_s22 + $0x1] sm:$0x7]  ;;  %v5374_v55 = vld [vmem:[#allocation8 + $0x90] sm:$0xff]   ;;  %v5376_v57 = vld [vmem:[#allocation8 + $0x98] sm:$0xff]  }
 0x3ba   : >> { %4920 = vmatpush3.bf16.msra.mxu1 %v5357_v1  ;;  %4901 = vmatprep.subr.bf16.mxu0 %v5642_v32  ;;  %v2562_v48 = vld [vmem:[%s6436_s22] sm:$0x7]  ;;  %v2581_v49 = vpack.c.bf16 %v2580_v47, %v2580_v47  ;;  %v5375_v56 = vld [vmem:[#allocation8 + $0xd0] sm:$0xff]   ;;  %v5377_v58 = vld [vmem:[#allocation8 + $0xd8] sm:$0xff]  }
 0x3bb   : >> { %4921 = vmatprep.subr.bf16.mxu1 %v5642_v32  ;;  %v2563_v50 = vpack.c.bf16 %v2562_v48, %v2562_v48  ;;  %v5372_v53 = vld [vmem:[#allocation8 + $0x88] sm:$0xff]   ;;  %v5378_v59 = vld [vmem:[#allocation8 + $0xa0] sm:$0xff]   ;;  %v5382_v62 = vld [vmem:[#allocation8 + $0xb0] sm:$0xff]  }
 0x3bc   : >> { %v5373_v54 = vld [vmem:[#allocation8 + $0xc8] sm:$0xff]   ;;  %v5379_v60 = vld [vmem:[#allocation8 + $0xe0] sm:$0xff]   ;;  %v5383_v63 = vld [vmem:[#allocation8 + $0xf0] sm:$0xff]  }
 0x3bd   : >> { %4902 = vmatpush3.bf16.msra.mxu0 %v5358_v2  ;;  %v5380_v16 = vld [vmem:[#allocation8 + $0xa8] sm:$0xff]   ;;  %v5384_v0 = vld [vmem:[#allocation8 + $0xb8] sm:$0xff]   ;;  %v5386_v7 = vld [vmem:[#allocation8 + $0x100] sm:$0xff]  }
 0x3be   : >> { %4922 = vmatpush3.bf16.msra.mxu1 %v5359_v35  ;;  %4903 = vmatprep.subr.bf16.mxu0 %v5642_v32  ;;  %v5381_v61 = vld [vmem:[#allocation8 + $0xe8] sm:$0xff]   ;;  %v5385_v3 = vld [vmem:[#allocation8 + $0xf8] sm:$0xff]   ;;  %v5387_v9 = vld [vmem:[#allocation8 + $0x140] sm:$0xff]  }
 0x3bf   : >> { %4923 = vmatprep.subr.bf16.mxu1 %v5642_v32  ;;  %v2775_v4 = vld [vmem:[%s6436_s22 + $0x2] sm:$0x7]  ;;  %v4213_v5 = vld [vmem:[%s6436_s22 + $0x10] sm:$0x7]  ;;  %v5394_v17 = vld [vmem:[#allocation8 + $0x120] sm:$0xff]  }
 0x3c0   : >> { %v2776_v6 = vpack.c.bf16 %v2775_v4, %v2775_v4  ;;  %v2887_v8 = vpack.c.bf16 %v4213_v5, %v4213_v5  ;;  %v5388_v10 = vld [vmem:[#allocation8 + $0x108] sm:$0xff]   ;;  %v5390_v12 = vld [vmem:[#allocation8 + $0x110] sm:$0xff]   ;;  %v5392_v14 = vld [vmem:[#allocation8 + $0x118] sm:$0xff]  }
 0x3c1   : >> { %4904 = vmatpush3.bf16.msra.mxu0 %v5360_v37  ;;  %v5389_v11 = vld [vmem:[#allocation8 + $0x148] sm:$0xff]   ;;  %v5391_v13 = vld [vmem:[#allocation8 + $0x150] sm:$0xff]   ;;  %v5393_v15 = vld [vmem:[#allocation8 + $0x158] sm:$0xff]  }
 0x3c2   : >> { %4924 = vmatpush3.bf16.msra.mxu1 %v5361_v38  ;;  %4905 = vmatprep.subr.bf16.mxu0 %v5642_v32  ;;  %v5395_v18 = vld [vmem:[#allocation8 + $0x160] sm:$0xff]   ;;  %v5396_v19 = vld [vmem:[#allocation8 + $0x128] sm:$0xff]   ;;  %v5398_v21 = vld [vmem:[#allocation8 + $0x130] sm:$0xff]  }
 0x3c3   : >> { %4925 = vmatprep.subr.bf16.mxu1 %v5642_v32  ;;  %v5397_v20 = vld [vmem:[#allocation8 + $0x168] sm:$0xff]   ;;  %v5399_v22 = vld [vmem:[#allocation8 + $0x170] sm:$0xff]   ;;  %v5400_v23 = vld [vmem:[#allocation8 + $0x138] sm:$0xff]  }
 0x3c4   : >> { %v4222_v24 = vld [vmem:[%s6436_s22 + $0x11] sm:$0x7]  ;;  %v5402_v36 = vld [vmem:[#allocation8 + $0x180] sm:$0xff]   ;;  %v5404_v33 = vld [vmem:[#allocation8 + $0x188] sm:$0xff]  }
 0x3c5   : >> { %4906 = vmatpush3.bf16.msra.mxu0 %v5362_v39  ;;  %v5401_v25 = vld [vmem:[#allocation8 + $0x178] sm:$0xff]   ;;  %v2995_v27 = vpack.c.bf16 %v4222_v24, %v4222_v24  ;;  %v5403_v31 = vld [vmem:[#allocation8 + $0x1c0] sm:$0xff]   ;;  %v5405_v34 = vld [vmem:[#allocation8 + $0x1c8] sm:$0xff]  }
 0x3c6   : >> { %4926 = vmatpush3.bf16.msra.mxu1 %v5363_v40  ;;  %4907 = vmatprep.subr.bf16.mxu0 %v5642_v32  ;;  %v4231_v26 = vld [vmem:[%s6436_s22 + $0x12] sm:$0x7]  ;;  %v5406_v1 = vld [vmem:[#allocation8 + $0x190] sm:$0xff]   ;;  %v5410_v38 = vld [vmem:[#allocation8 + $0x1a0] sm:$0xff]  }
 0x3c7   : >> { %4927 = vmatprep.subr.bf16.mxu1 %v5642_v32  ;;  %v3103_v28 = vpack.c.bf16 %v4231_v26, %v4231_v26  ;;  %v5407_v2 = vld [vmem:[#allocation8 + $0x1d0] sm:$0xff]   ;;  %v5408_v35 = vld [vmem:[#allocation8 + $0x198] sm:$0xff]   ;;  %v5411_v39 = vld [vmem:[#allocation8 + $0x1e0] sm:$0xff]  }
 0x3c8   : >> { %v5409_v37 = vld [vmem:[#allocation8 + $0x1d8] sm:$0xff]   ;;  %v5412_v40 = vld [vmem:[#allocation8 + $0x1a8] sm:$0xff]  }
 0x3c9   : >> { %4908 = vmatpush3.bf16.msra.mxu0 %v5364_v41  ;;  %v5413_v41 = vld [vmem:[#allocation8 + $0x1e8] sm:$0xff]  }
 0x3ca   : >> { %4928 = vmatpush3.bf16.msra.mxu1 %v5365_v42  ;;  %4909 = vmatprep.subr.bf16.mxu0 %v5642_v32  ;;  %v5414_v42 = vld [vmem:[#allocation8 + $0x1b0] sm:$0xff]   ;;  %v4250_v47 = vld [vmem:[%s6436_s22 + $0x21] sm:$0x7] }
 0x3cb   : >> { %4929 = vmatprep.subr.bf16.mxu1 %v5642_v32 }
 0x3cd   : >> { %4910 = vmatpush3.bf16.msra.mxu0 %v5366_v43  ;;  %v5415_v43 = vld [vmem:[#allocation8 + $0x1f0] sm:$0xff]  }
 0x3ce   : >> { %4930 = vmatpush3.bf16.msra.mxu1 %v5367_v44  ;;  %4911 = vmatprep.subr.bf16.mxu0 %v5642_v32  ;;  %v5416_v44 = vld [vmem:[#allocation8 + $0x1b8] sm:$0xff]  }
 0x3cf   : >> { %4931 = vmatprep.subr.bf16.mxu1 %v5642_v32 }
 0x3d1   : >> { %4912 = vmatpush3.bf16.msra.mxu0 %v5368_v45  ;;  %v4241_v45 = vld [vmem:[%s6436_s22 + $0x20] sm:$0x7] }
 0x3d2   : >> { %4932 = vmatpush3.bf16.msra.mxu1 %v5369_v46  ;;  %4937 = vmatprep.subr.bf16.mxu0 %v5642_v32  ;;  %v5417_v46 = vld [vmem:[#allocation8 + $0x1f8] sm:$0xff]   ;;  %v3214_v48 = vpack.c.bf16 %v4241_v45, %v4241_v45  ;;  %v6529_v45 = vld [vmem:[%s6646_s7] sm:$0xf] (%p2556_p11) }
 0x3d3   : >> { %4957 = vmatprep.subr.bf16.mxu1 %v5642_v32 }
 0x3d4   : >> { %4914 = vmatmul.mubr.bf16.vlgmr.msra.gmra.mrb[0].mxu0 %v2581_v49  ;;  %v5418_v49 = vld [vmem:[#allocation8 + $0x200] sm:$0xff]  }
 0x3d5   : >> { %4934 = vmatmul.mubr.bf16.vlgmr.msra.gmra.mrb[0].mxu1 %v2563_v50  ;;  %4938 = vmatpush3.bf16.msra.mxu0 %v5370_v51  ;;  %v3322_v50 = vpack.c.bf16 %v4250_v47, %v4250_v47  ;;  %v5419_v51 = vld [vmem:[#allocation8 + $0x208] sm:$0xff]  }
 0x3d6   : >> { %4958 = vmatpush3.bf16.msra.mxu1 %v5371_v52  ;;  %4939 = vmatprep.subr.bf16.mxu0 %v5642_v32  ;;  %v5420_v52 = vld [vmem:[#allocation8 + $0x210] sm:$0xff]  }
 0x3d7   : >> { %4959 = vmatprep.subr.bf16.mxu1 %v5642_v32  ;;  %4953 = vmatprep.mubr.msk.bf16.mxu0 %vm5643_vm6, %v5642_v32  ;;  %v6539_v47 = vld [vmem:[%s6646_s7 + $0x8] sm:$0xf] (%p2556_p11) }
 0x3d8   : >> { %4973 = vmatprep.mubr.msk.bf16.mxu1 %vm5643_vm6, %v5642_v32 }
 0x3d9   : >> { %4940 = vmatpush3.bf16.msra.mxu0 %v5372_v53  ;;  %v5421_v53 = vld [vmem:[#allocation8 + $0x218] sm:$0xff]  }
 0x3da   : >> { %4960 = vmatpush3.bf16.msra.mxu1 %v5373_v54  ;;  %4941 = vmatprep.subr.bf16.mxu0 %v5642_v32  ;;  %v5422_v54 = vld [vmem:[#allocation8 + $0x220] sm:$0xff]  }
 0x3db   : >> { %4961 = vmatprep.subr.bf16.mxu1 %v5642_v32 }
 0x3dd   : >> { %4942 = vmatpush3.bf16.msra.mxu0 %v5374_v55  ;;  %v5423_v55 = vld [vmem:[#allocation8 + $0x228] sm:$0xff]  }
 0x3de   : >> { %4962 = vmatpush3.bf16.msra.mxu1 %v5375_v56  ;;  %4943 = vmatprep.subr.bf16.mxu0 %v5642_v32  ;;  %v5424_v56 = vld [vmem:[#allocation8 + $0x230] sm:$0xff]  }
 0x3df   : >> { %4963 = vmatprep.subr.bf16.mxu1 %v5642_v32 }
 0x3e1   : >> { %4944 = vmatpush3.bf16.msra.mxu0 %v5376_v57  ;;  %v5425_v57 = vld [vmem:[#allocation8 + $0x238] sm:$0xff]  }
 0x3e2   : >> { %4964 = vmatpush3.bf16.msra.mxu1 %v5377_v58  ;;  %4945 = vmatprep.subr.bf16.mxu0 %v5642_v32  ;;  %v4259_v58 = vld [vmem:[%s6436_s22 + $0x22] sm:$0x7] }
 0x3e3   : >> { %4965 = vmatprep.subr.bf16.mxu1 %v5642_v32 }
 0x3e5   : >> { %4946 = vmatpush3.bf16.msra.mxu0 %v5378_v59  ;;  %v3430_v59 = vpack.c.bf16 %v4259_v58, %v4259_v58  ;;  %v6604_v58 = vld [vmem:[%s6646_s7 + $0x3c] sm:$0xf] (%p2556_p11) }
 0x3e6   : >> { %4966 = vmatpush3.bf16.msra.mxu1 %v5379_v60  ;;  %4947 = vmatprep.subr.bf16.mxu0 %v5642_v32 }
 0x3e7   : >> { %4967 = vmatprep.subr.bf16.mxu1 %v5642_v32 }
 0x3e9   : >> { %4948 = vmatpush3.bf16.msra.mxu0 %v5380_v16 }
 0x3ea   : >> { %4968 = vmatpush3.bf16.msra.mxu1 %v5381_v61  ;;  %4949 = vmatprep.subr.bf16.mxu0 %v5642_v32 }
 0x3eb   : >> { %4969 = vmatprep.subr.bf16.mxu1 %v5642_v32 }
 0x3ed   : >> { %4950 = vmatpush3.bf16.msra.mxu0 %v5382_v62 }
 0x3ee   : >> { %4970 = vmatpush3.bf16.msra.mxu1 %v5383_v63  ;;  %4951 = vmatprep.subr.bf16.mxu0 %v5642_v32 }
 0x3ef   : >> { %4971 = vmatprep.subr.bf16.mxu1 %v5642_v32 }
 0x3f1   : >> { %4952 = vmatpush3.bf16.msra.mxu0 %v5384_v0 }
 0x3f2   : >> { %4972 = vmatpush3.bf16.msra.mxu1 %v5385_v3  ;;  %4977 = vmatprep.subr.bf16.mxu0 %v5642_v32 }
 0x3f3   : >> { %4997 = vmatprep.subr.bf16.mxu1 %v5642_v32 }
 0x3f4   : >> { %4954 = vmatmul.mubr.bf16.vlgmr.msra.gmra.mrb[4].mxu0 %v2776_v6 }
 0x3f5   : >> { %4978 = vmatpush3.bf16.msra.mxu0 %v5386_v7  ;;  %4974 = vmatmul.mubr.bf16.vlgmr.msra.gmra.mrb[4].mxu1 %v2887_v8 }
 0x3f6   : >> { %4998 = vmatpush3.bf16.msra.mxu1 %v5387_v9  ;;  %4979 = vmatprep.subr.bf16.mxu0 %v5642_v32 }
 0x3f7   : >> { %4999 = vmatprep.subr.bf16.mxu1 %v5642_v32  ;;  %4993 = vmatprep.mubr.msk.bf16.mxu0 %vm5643_vm6, %v5642_v32 }
 0x3f8   : >> { %5013 = vmatprep.mubr.msk.bf16.mxu1 %vm5643_vm6, %v5642_v32 }
 0x3f9   : >> { %4980 = vmatpush3.bf16.msra.mxu0 %v5388_v10 }
 0x3fa   : >> { %5000 = vmatpush3.bf16.msra.mxu1 %v5389_v11  ;;  %4981 = vmatprep.subr.bf16.mxu0 %v5642_v32 }
 0x3fb   : >> { %5001 = vmatprep.subr.bf16.mxu1 %v5642_v32 }
 0x3fd   : >> { %4982 = vmatpush3.bf16.msra.mxu0 %v5390_v12 }
 0x3fe   : >> { %5002 = vmatpush3.bf16.msra.mxu1 %v5391_v13  ;;  %4983 = vmatprep.subr.bf16.mxu0 %v5642_v32 }
 0x3ff   : >> { %5003 = vmatprep.subr.bf16.mxu1 %v5642_v32 }
 0x401   : >> { %4984 = vmatpush3.bf16.msra.mxu0 %v5392_v14 }
 0x402   : >> { %5004 = vmatpush3.bf16.msra.mxu1 %v5393_v15  ;;  %4985 = vmatprep.subr.bf16.mxu0 %v5642_v32 }
 0x403   : >> { %5005 = vmatprep.subr.bf16.mxu1 %v5642_v32 }
 0x405   : >> { %4986 = vmatpush3.bf16.msra.mxu0 %v5394_v17 }
 0x406   : >> { %5006 = vmatpush3.bf16.msra.mxu1 %v5395_v18  ;;  %4987 = vmatprep.subr.bf16.mxu0 %v5642_v32 }
 0x407   : >> { %5007 = vmatprep.subr.bf16.mxu1 %v5642_v32 }
 0x409   : >> { %4988 = vmatpush3.bf16.msra.mxu0 %v5396_v19 }
 0x40a   : >> { %5008 = vmatpush3.bf16.msra.mxu1 %v5397_v20  ;;  %4989 = vmatprep.subr.bf16.mxu0 %v5642_v32 }
 0x40b   : >> { %5009 = vmatprep.subr.bf16.mxu1 %v5642_v32 }
 0x40d   : >> { %4990 = vmatpush3.bf16.msra.mxu0 %v5398_v21 }
 0x40e   : >> { %5010 = vmatpush3.bf16.msra.mxu1 %v5399_v22  ;;  %4991 = vmatprep.subr.bf16.mxu0 %v5642_v32 }
 0x40f   : >> { %5011 = vmatprep.subr.bf16.mxu1 %v5642_v32 }
 0x411   : >> { %4992 = vmatpush3.bf16.msra.mxu0 %v5400_v23 }
 0x412   : >> { %5012 = vmatpush3.bf16.msra.mxu1 %v5401_v25  ;;  %5017 = vmatprep.subr.bf16.mxu0 %v5642_v32 }
 0x413   : >> { %5037 = vmatprep.subr.bf16.mxu1 %v5642_v32 }
 0x414   : >> { %4994 = vmatmul.mubr.bf16.vlgmr.msra.gmra.mrb[8].mxu0 %v2995_v27 }
 0x415   : >> { %5018 = vmatpush3.bf16.msra.mxu0 %v5402_v36  ;;  %5014 = vmatmul.mubr.bf16.vlgmr.msra.gmra.mrb[8].mxu1 %v3103_v28 }
 0x416   : >> { %5038 = vmatpush3.bf16.msra.mxu1 %v5403_v31  ;;  %5019 = vmatprep.subr.bf16.mxu0 %v5642_v32 }
 0x417   : >> { %5039 = vmatprep.subr.bf16.mxu1 %v5642_v32  ;;  %5033 = vmatprep.mubr.msk.bf16.mxu0 %vm5643_vm6, %v5642_v32 }
 0x418   : >> { %5053 = vmatprep.mubr.msk.bf16.mxu1 %vm5643_vm6, %v5642_v32 }
 0x419   : >> { %5020 = vmatpush3.bf16.msra.mxu0 %v5404_v33 }
 0x41a   : >> { %5040 = vmatpush3.bf16.msra.mxu1 %v5405_v34  ;;  %5021 = vmatprep.subr.bf16.mxu0 %v5642_v32 }
 0x41b   : >> { %5041 = vmatprep.subr.bf16.mxu1 %v5642_v32 }
 0x41d   : >> { %5022 = vmatpush3.bf16.msra.mxu0 %v5406_v1 }
 0x41e   : >> { %5042 = vmatpush3.bf16.msra.mxu1 %v5407_v2  ;;  %5023 = vmatprep.subr.bf16.mxu0 %v5642_v32 }
 0x41f   : >> { %5043 = vmatprep.subr.bf16.mxu1 %v5642_v32 }
 0x421   : >> { %5024 = vmatpush3.bf16.msra.mxu0 %v5408_v35 }
 0x422   : >> { %5044 = vmatpush3.bf16.msra.mxu1 %v5409_v37  ;;  %5025 = vmatprep.subr.bf16.mxu0 %v5642_v32 }
 0x423   : >> { %5045 = vmatprep.subr.bf16.mxu1 %v5642_v32 }
 0x425   : >> { %5026 = vmatpush3.bf16.msra.mxu0 %v5410_v38 }
 0x426   : >> { %5046 = vmatpush3.bf16.msra.mxu1 %v5411_v39  ;;  %5027 = vmatprep.subr.bf16.mxu0 %v5642_v32 }
 0x427   : >> { %5047 = vmatprep.subr.bf16.mxu1 %v5642_v32 }
 0x429   : >> { %5028 = vmatpush3.bf16.msra.mxu0 %v5412_v40 }
 0x42a   : >> { %5048 = vmatpush3.bf16.msra.mxu1 %v5413_v41  ;;  %5029 = vmatprep.subr.bf16.mxu0 %v5642_v32 }
 0x42b   : >> { %5049 = vmatprep.subr.bf16.mxu1 %v5642_v32 }
 0x42d   : >> { %5030 = vmatpush3.bf16.msra.mxu0 %v5414_v42 }
 0x42e   : >> { %5050 = vmatpush3.bf16.msra.mxu1 %v5415_v43  ;;  %5031 = vmatprep.subr.bf16.mxu0 %v5642_v32 }
 0x42f   : >> { %5051 = vmatprep.subr.bf16.mxu1 %v5642_v32 }
 0x431   : >> { %5032 = vmatpush3.bf16.msra.mxu0 %v5416_v44 }
 0x432   : >> { %5052 = vmatpush3.bf16.msra.mxu1 %v5417_v46  ;;  %5057 = vmatprep.subr.bf16.mxu0 %v5642_v32  ;;  %v6534_v46 = vld [vmem:[%s6646_s7 + $0x4] sm:$0xf] (%p2556_p11) }
 0x434   : >> { %5034 = vmatmul.mubr.bf16.vlgmr.msra.gmra.mrb[12].mxu0 %v3214_v48  ;;  %v6544_v48 = vld [vmem:[%s6646_s7 + $0xc] sm:$0xf] (%p2556_p11) }
 0x435   : >> { %5058 = vmatpush3.bf16.msra.mxu0 %v5418_v49  ;;  %5054 = vmatmul.mubr.bf16.vlgmr.msra.gmra.mrb[12].mxu1 %v3322_v50  ;;  %v6559_v49 = vld [vmem:[%s6646_s7 + $0x18] sm:$0xf] (%p2556_p11)  ;;  %v6564_v50 = vld [vmem:[%s6646_s7 + $0x1c] sm:$0xf] (%p2556_p11) }
 0x436   : >> { %5059 = vmatprep.subr.bf16.mxu0 %v5642_v32  ;;  %5073 = vmatprep.mubr.msk.bf16.mxu0 %vm5643_vm6, %v5642_v32 }
 0x439   : >> { %5060 = vmatpush3.bf16.msra.mxu0 %v5419_v51  ;;  %v6569_v51 = vld [vmem:[%s6646_s7 + $0x20] sm:$0xf] (%p2556_p11) }
 0x43a   : >> { %5061 = vmatprep.subr.bf16.mxu0 %v5642_v32 }
 0x43d   : >> { %5062 = vmatpush3.bf16.msra.mxu0 %v5420_v52  ;;  %v6574_v52 = vld [vmem:[%s6646_s7 + $0x24] sm:$0xf] (%p2556_p11) }
 0x43e   : >> { %5063 = vmatprep.subr.bf16.mxu0 %v5642_v32 }
 0x441   : >> { %5064 = vmatpush3.bf16.msra.mxu0 %v5421_v53  ;;  %v6579_v53 = vld [vmem:[%s6646_s7 + $0x28] sm:$0xf] (%p2556_p11) }
 0x442   : >> { %5065 = vmatprep.subr.bf16.mxu0 %v5642_v32 }
 0x445   : >> { %5066 = vmatpush3.bf16.msra.mxu0 %v5422_v54  ;;  %v6584_v54 = vld [vmem:[%s6646_s7 + $0x2c] sm:$0xf] (%p2556_p11) }
 0x446   : >> { %5067 = vmatprep.subr.bf16.mxu0 %v5642_v32 }
 0x449   : >> { %5068 = vmatpush3.bf16.msra.mxu0 %v5423_v55  ;;  %v6589_v55 = vld [vmem:[%s6646_s7 + $0x30] sm:$0xf] (%p2556_p11) }
 0x44a   : >> { %5069 = vmatprep.subr.bf16.mxu0 %v5642_v32 }
 0x44d   : >> { %5070 = vmatpush3.bf16.msra.mxu0 %v5424_v56  ;;  %v6594_v56 = vld [vmem:[%s6646_s7 + $0x34] sm:$0xf] (%p2556_p11) }
 0x44e   : >> { %5071 = vmatprep.subr.bf16.mxu0 %v5642_v32 }
 0x451   : >> { %5072 = vmatpush3.bf16.msra.mxu0 %v5425_v57  ;;  %v6599_v57 = vld [vmem:[%s6646_s7 + $0x38] sm:$0xf] (%p2556_p11) }
 0x454   : >> { %5074 = vmatmul.mubr.bf16.vlgmr.msra.gmra.mrb[16].mxu0 %v3430_v59  ;;  %v6606_v59 = vld [vmem:[#allocation11] ss:$0 sm:$0xff] (%p2556_p11) }
 0x4a7   : >> { %v2681_v60 = vpop.f32.mrb[0].mxu0 }
 0x4a8   : >> { %v4915_v16 = vpop.f32.mrb[1].mxu0  ;;  %v2769_v61 = vpop.f32.mrb[0].mxu1 }
 0x4a9   : >> { %v2770_v62 = vadd.f32 %v2769_v61, %v2681_v60  ;;  %v2684_v63 = vpop.f32.mrb[2].mxu0  ;;  %v4935_v0 = vpop.f32.mrb[1].mxu1 }
 0x4aa   : >> { %v4916_v3 = vpop.f32.mrb[3].mxu0  ;;  %v2772_v4 = vpop.f32.mrb[2].mxu1 }
 0x4ab   : >> { %v4936_v5 = vpop.f32.mrb[3].mxu1 }
 0x4c7   : >> { %v2876_v6 = vpop.f32.mrb[4].mxu0 }
 0x4c8   : >> { %v2882_v7 = vadd.f32 %v2876_v6, %v2770_v62  ;;  %v4955_v8 = vpop.f32.mrb[5].mxu0  ;;  %v2987_v9 = vpop.f32.mrb[4].mxu1 }
 0x4c9   : >> { %v2879_v10 = vpop.f32.mrb[6].mxu0  ;;  %v4975_v11 = vpop.f32.mrb[5].mxu1 }
 0x4ca   : >> { %v2993_v12 = vadd.f32 %v2987_v9, %v2882_v7  ;;  %v4956_v32 = vpop.f32.mrb[7].mxu0  ;;  %v2990_v13 = vpop.f32.mrb[6].mxu1 }
 0x4cb   : >> { %v4976_v14 = vpop.f32.mrb[7].mxu1 }
 0x4e7   : >> { %v3095_v15 = vpop.f32.mrb[8].mxu0 }
 0x4e8   : >> { %v3101_v17 = vadd.f32 %v3095_v15, %v2993_v12  ;;  %v4995_v18 = vpop.f32.mrb[9].mxu0  ;;  %v3203_v19 = vpop.f32.mrb[8].mxu1 }
 0x4e9   : >> { %v3098_v20 = vpop.f32.mrb[10].mxu0  ;;  %v5015_v21 = vpop.f32.mrb[9].mxu1 }
 0x4ea   : >> { %v3209_v22 = vadd.f32 %v3203_v19, %v3101_v17  ;;  %v4996_v23 = vpop.f32.mrb[11].mxu0  ;;  %v3206_v24 = vpop.f32.mrb[10].mxu1 }
 0x4eb   : >> { %v5016_v25 = vpop.f32.mrb[11].mxu1 }
 0x507   : >> { %v3314_v26 = vpop.f32.mrb[12].mxu0 }
 0x508   : >> { %v3320_v27 = vadd.f32 %v3314_v26, %v3209_v22  ;;  %v5035_v36 = vpop.f32.mrb[13].mxu0  ;;  %v3422_v28 = vpop.f32.mrb[12].mxu1 }
 0x509   : >> { %v3317_v31 = vpop.f32.mrb[14].mxu0  ;;  %v5055_v33 = vpop.f32.mrb[13].mxu1 }
 0x50a   : >> { %v3428_v34 = vadd.f32 %v3422_v28, %v3320_v27  ;;  %v5036_v1 = vpop.f32.mrb[15].mxu0  ;;  %v3425_v2 = vpop.f32.mrb[14].mxu1 }
 0x50b   : >> { %v5056_v35 = vpop.f32.mrb[15].mxu1 }
 0x527   : >> { %v3530_v37 = vpop.f32.mrb[16].mxu0 }
 0x528   : >> { %v3536_v38 = vadd.f32 %v3530_v37, %v3428_v34  ;;  %v5075_v39 = vpop.f32.mrb[17].mxu0 }
 0x529   : >> { %v3533_v40 = vpop.f32.mrb[18].mxu0  ;;  %2558 = sbr.rel (!%p2556_p11) target bundleno = 947 (0x3b3), region = 218 }
 0x52a   : >> { %v3541_v41 = vadd.f32 %v6406_v29, %v3536_v38  ;;  %v5076_v42 = vpop.f32.mrb[19].mxu0  ;;  %v6549_v29 = vld [vmem:[%s6646_s7 + $0x10] sm:$0xf] (%p2556_p11) }
 0x52c   : >> { %vm3542_vm7 = vcmp.ge.f32.partialorder %v3541_v41, 0.0  ;;  %v3547_v43 = vmul.f32 %v6408_v30, %v3541_v41  ;;  %v6554_v30 = vld [vmem:[%s6646_s7 + $0x14] sm:$0xf] (%p2556_p11) }
 0x52e   : >> { %v3548_v44 = vsel %vm3542_vm7, %v3541_v41, %v3547_v43 }
 0x52f   : >> { %3550 = vst [vmem:[%s3549_s11] sm:$0x7] %v3548_v44 }
 0x530 LB: >> { %v4272_v60 = vcombine.low %v6529_v45, %v6534_v46  ;;  %v5644_v16 = vmov 0.0   ;;  %v4273_v61 = vcombine.low %v6539_v47, %v6544_v48  ;;  %vm5645_vm8 = vmmov 0   ;;  %s4270_s26 = sshll.u32 %s5628_s18, 4  ;;  %s4280_s17 = sshll.u32 %s5628_s18, 2  ;;  %s5628_s18 = sphi %s6608_s18, %s3573_s18  }
 0x531   : >> { %5077 = vmatprep.subr.bf16.mxu0 %v5644_v16  ;;  %5093 = vmatprep.mubr.msk.bf16.mxu0 %vm5645_vm8, %v5644_v16  ;;  %v4274_v62 = vcombine.low %v6549_v29, %v6554_v30  ;;  %v4275_v63 = vcombine.low %v6559_v49, %v6564_v50  ;;  %v4276_v0 = vcombine.low %v6569_v51, %v6574_v52  ;;  %s3575_s21 = scalar_lea.vmem [#allocation2], %s4270_s26  ;;  %s3682_s22 = scalar_lea.vmem %s5867_s25, %s4280_s17  ;;  %vm3685_vm9 = vcmask 2048  }
 0x532   : >> { %5078 = vmatpush3.bf16.msra.mxu0 %v4272_v60  ;;  %v4277_v3 = vcombine.low %v6579_v53, %v6584_v54  ;;  %v4278_v4 = vcombine.low %v6589_v55, %v6594_v56  ;;  %v4279_v5 = vcombine.low %v6599_v57, %v6604_v58  ;;  %s5646_s11 = smov 127   ;;  %s5647_s12 = smov 1   ;;  %vm3691_vm10 = vcmask 10248  }
 0x533   : >> { %5079 = vmatprep.subr.bf16.mxu0 %v5644_v16  ;;  %s3573_s18 = sadd.s32 1, %s5628_s18  }
 0x534   : >> { %p3570_p12 = scmp.ge.s32.totalorder %s3573_s18, 3  }
 0x536   : >> { %5080 = vmatpush3.bf16.msra.mxu0 %v4273_v61  ;;  %v3576_v6 = vld [vmem:[%s3575_s21] sm:$0x7] }
 0x537   : >> { %5081 = vmatprep.subr.bf16.mxu0 %v5644_v16  ;;  %v3577_v7 = vpack.c.bf16 %v3576_v6, %v3576_v6 }
 0x53a   : >> { %5082 = vmatpush3.bf16.msra.mxu0 %v4274_v62 }
 0x53b   : >> { %5083 = vmatprep.subr.bf16.mxu0 %v5644_v16 }
 0x53e   : >> { %5084 = vmatpush3.bf16.msra.mxu0 %v4275_v63 }
 0x53f   : >> { %5085 = vmatprep.subr.bf16.mxu0 %v5644_v16 }
 0x542   : >> { %5086 = vmatpush3.bf16.msra.mxu0 %v4276_v0 }
 0x543   : >> { %5087 = vmatprep.subr.bf16.mxu0 %v5644_v16 }
 0x546   : >> { %5088 = vmatpush3.bf16.msra.mxu0 %v4277_v3 }
 0x547   : >> { %5089 = vmatprep.subr.bf16.mxu0 %v5644_v16 }
 0x54a   : >> { %5090 = vmatpush3.bf16.msra.mxu0 %v4278_v4 }
 0x54b   : >> { %5091 = vmatprep.subr.bf16.mxu0 %v5644_v16 }
 0x54e   : >> { %5092 = vmatpush3.bf16.msra.mxu0 %v4279_v5 }
 0x551   : >> { %5094 = vmatmul.mubr.bf16.vlgmr.msra.gmra.mrb[0].mxu0 %v3577_v7 }
 0x624   : >> { %v3666_v8 = vpop.f32.mrb[0].mxu0 }
 0x625   : >> { %v3667_v9 = vadd.f32 %v6606_v59, %v3666_v8  ;;  %v5095_v10 = vpop.f32.mrb[1].mxu0 }
 0x626   : >> { %v3669_v11 = vpop.f32.mrb[2].mxu0 }
 0x627   : >> { %3683 = vst [vmem:[%s3682_s22] sm:$0x7] %v3667_v9  ;;  %3673 = vrot.lane.b32.xlu0 %v3667_v9, %s5646_s11  ;;  %v5096_v12 = vpop.f32.mrb[3].mxu0 }
 0x699   : >> { %v3674_v32 = vpop.permute.xlu0 %3673 }
 0x69a   : >> { %v3676_v13 = vsub.f32 %v3667_v9, %v3674_v32 }
 0x69c   : >> { %v3677_v14 = vmul.f32 1.442695, %v3676_v13 }
 0x69e   : >> { %5426 = vpow2.f32 %v3677_v14 }
 0x6a8   : >> { %v5427_v15 = vpop.eup %5426 }
 0x6a9   : >> { %v3679_v17 = vadd.f32 1.0, %v5427_v15 }
 0x6ab   : >> { %5428 = vrcp.f32 %v3679_v17 }
 0x6b5   : >> { %v5429_v18 = vpop.eup %5428 }
 0x6b6   : >> { %3688 = vrot.lane.b32.xlu0 %v5429_v18, %s5647_s12  ;;  %v3684_v19 = vsub.f32 1.0, %v5429_v18 }
 0x6b8   : >> { %3686 = vst.msk [vmem:[%s3682_s22] sm:$0x7] %vm3685_vm9, %v3684_v19 }
 0x723   : > { %3572 = sbr.rel (!%p3570_p12) target bundleno = 1328 (0x530), region = 229 }
 0x728   : >> { %v3689_v20 = vpop.permute.xlu0 %3688 }
 0x729   : >> { %3692 = vst.msk [vmem:[%s3682_s22] sm:$0x7] %vm3691_vm10, %v3689_v20 }
 0x72a PF: > { %s22_s30 = sadd.s32 1, %s5608_s30  }
 0x72b   : > { %p19_p13 = scmp.ge.s32.totalorder %s22_s30, 4  }
 0x72d   :  { %21 = sbr.rel (!%p19_p13) target bundleno = 3 (0x3), region = 240 }
 0x734   :  { %3714 = vsyncpa [#allocation5], 1 }
 0x735   :  { %3716 = vsyncpa [#allocation5 + $0x1], 1 }
 0x736   :  { %3717 = vsyncpa [#allocation7], 1 }
 0x737   :  { %3718 = vsyncpa [#allocation10], 1 }

</bundles_post_ra>
